<compile_context>
chip_gen: v6e
topology: v6e:2x2x1
jax: 0.10.0
libtpu: 0.0.40
codegen_flags: <defaults>
</compile_context>

<pallas_src>
import math

import numpy as np

import jax
import jax.numpy as jnp
from jax.experimental import pallas as pl
from jax.experimental.pallas import tpu as pltpu


_MSSSIM_WEIGHT = (0.0448, 0.2856, 0.3001, 0.2363, 0.1333)
_MXU_DTYPE = jnp.bfloat16      # matmul-operand dtype (f32 accumulate); set to
                               # jnp.float32 to trade speed for exactness.


# ---------------------------------------------------------------------------
# static operator construction (host side, numpy)
# ---------------------------------------------------------------------------
def _gaussian_1d(window_size, sigma):
    g = np.array(
        [math.exp(-(x - window_size // 2) ** 2 / float(2 * sigma ** 2))
         for x in range(window_size)],
        dtype=np.float64)
    return (g / g.sum()).astype(np.float32)


def _band_conv_matrix(n, ws, pad, g):
    """(n, n_out) matrix M so that (x @ M) == zero-padded 1-D cross-correlation."""
    n_out = n + 2 * pad - ws + 1
    m = np.zeros((n, n_out), dtype=np.float32)
    for j in range(n_out):
        for i in range(max(0, j - pad), min(n, j - pad + ws)):
            m[i, j] = g[i - j + pad]
    return m


def _pool_matrix(n):
    """(n, n//2) matrix M so that (x @ M) == 1-D average pooling (k=2, s=2)."""
    m = np.zeros((n, n // 2), dtype=np.float32)
    for v in range(n // 2):
        m[2 * v, v] = 0.5
        m[2 * v + 1, v] = 0.5
    return m


def _block_diag(block, reps):
    if reps == 1:
        return block
    r, c = block.shape
    out = np.zeros((reps * r, reps * c), dtype=block.dtype)
    for i in range(reps):
        out[i * r:(i + 1) * r, i * c:(i + 1) * c] = block
    return out


def _pick_tc(n, h, w, budget_bytes):
    """Channel-images per grid block (VMEM-budget bound, >=2 blocks when possible)."""
    per_img = h * w * 4 * 18            # x1/x2 + bf16 slabs + ~10 live f32 maps
    tc = max(1, int(budget_bytes) // max(per_img, 1))
    tc = min(tc, 16, n)                 # cap unrolled per-image matmul count
    if n >= 2:
        tc = min(tc, (n + 1) // 2)      # >= 2 grid blocks -> both v7x TCs busy
    if tc >= n:
        return n
    mult = 8 // math.gcd(h, 8)          # multi-block: tc*h must be 8-row aligned
    tc = max(mult, (tc // mult) * mult)
    return n if tc >= n else tc


def _build_levels(h0, w0, levels, tc):
    """Per-level geometry + bf16 banded conv / pooling operators."""
    geom, conv_mats, pool_mats = [], [], []
    h, w = h0, w0
    for l in range(levels):
        ws = min(h, w, 11)
        sigma = 1.5 * ws / 11.0
        pad = ws // 2
        ho = h + 2 * pad - ws + 1
        wo = w + 2 * pad - ws + 1
        g = _gaussian_1d(ws, sigma)
        gh = _band_conv_matrix(h, ws, pad, g).T            # (ho, h) left operator
        gw = _band_conv_matrix(w, ws, pad, g)              # (w, wo) right operator
        split_conv = (tc > 1) and (h >= 8)                 # per-image H-conv loop
        wide_conv = wo < 128                               # 4-wide block-diag W-conv
        conv_mats.append(jnp.asarray(gh if split_conv else _block_diag(gh, tc),
                                     _MXU_DTYPE))
        conv_mats.append(jnp.asarray(_block_diag(gw, 4) if wide_conv else gw,
                                     _MXU_DTYPE))
        h2, w2 = h // 2, w // 2
        split_pool = (tc > 1) and (h >= 8)
        wide_pool = w2 < 128
        geom.append((h, w, ho, wo, h2, w2,
                     split_conv, wide_conv, split_pool, wide_pool))
        if l < levels - 1:
            ph = _pool_matrix(h).T                         # (h2, h)
            pw = _pool_matrix(w)                           # (w, w2)
            pool_mats.append(jnp.asarray(ph if split_pool else _block_diag(ph, tc),
                                         _MXU_DTYPE))
            pool_mats.append(jnp.asarray(_block_diag(pw, 2) if wide_pool else pw,
                                         _MXU_DTYPE))
            h, w = h2, w2
    return geom, conv_mats, pool_mats


# ---------------------------------------------------------------------------
# kernel
# ---------------------------------------------------------------------------
def _make_msssim_kernel(levels, geom, tc, c1, c2):
    L = levels

    def _apply_h(mat, slab_b, h, split):
        """H-direction operator (left matmul), bf16 operands, f32 accumulate."""
        if split:
            # one small (Ho,H)@(H,N) matmul per channel-image: no tc-fold waste
            rows = [jnp.dot(mat, slab_b[i * h:(i + 1) * h, :],
                            preferred_element_type=jnp.float32)
                    for i in range(tc)]
            return jnp.concatenate(rows, axis=0) if tc > 1 else rows[0]
        # tiny deep-level slabs: one block-diagonal matmul
        return jnp.dot(mat, slab_b, preferred_element_type=jnp.float32)

    def kernel(x1_ref, x2_ref, *rest):
        conv_refs = rest[:2 * L]                      # (gh, gw) per level
        pool_refs = rest[2 * L:2 * L + 2 * (L - 1)]   # (ph, pw) per transition
        ssim_ref, mcs_ref = rest[-2], rest[-1]        # (1, levels) each

        x1 = x1_ref[...]                              # (tc*H0, W0) f32
        x2 = x2_ref[...]
        ssim_parts, mcs_parts = [], []

        # Only x1/x2 are carried between levels; all per-level intermediates
        # die at the end of each iteration (bounds live VMEM / vregs).
        for l in range(L):
            (h, w, ho, wo, h2, w2,
             split_conv, wide_conv, split_pool, wide_pool) = geom[l]
            gh = conv_refs[2 * l][...]
            gw = conv_refs[2 * l + 1][...]

            x1b = x1.astype(_MXU_DTYPE)
            x2b = x2.astype(_MXU_DTYPE)
            # four quantities sharing the Gaussian filter, batched along lanes
            qb = jnp.concatenate(
                [x1b, x2b,
                 (x1 * x1 + x2 * x2).astype(_MXU_DTYPE),
                 (x1 * x2).astype(_MXU_DTYPE)], axis=1)       # (tc*h, 4w)

            t = _apply_h(gh, qb, h, split_conv)               # (tc*ho, 4w) f32
            tb = t.astype(_MXU_DTYPE)
            if wide_conv:                                     # N = 4*wo lanes
                r = jnp.dot(tb, gw, preferred_element_type=jnp.float32)
                mu1, mu2 = r[:, :wo], r[:, wo:2 * wo]
                s_sum, s12 = r[:, 2 * wo:3 * wo], r[:, 3 * wo:]
            else:                                             # wo already wide
                mu1 = jnp.dot(tb[:, :w], gw, preferred_element_type=jnp.float32)
                mu2 = jnp.dot(tb[:, w:2 * w], gw, preferred_element_type=jnp.float32)
                s_sum = jnp.dot(tb[:, 2 * w:3 * w], gw,
                                preferred_element_type=jnp.float32)
                s12 = jnp.dot(tb[:, 3 * w:], gw, preferred_element_type=jnp.float32)

            # elementwise SSIM / MCS map math in f32 (VPU); divides on the EUP
            mu1_sq = mu1 * mu1
            mu2_sq = mu2 * mu2
            mu1_mu2 = mu1 * mu2
            v1 = 2.0 * (s12 - mu1_mu2) + c2                   # 2*sigma12 + C2
            v2 = (s_sum - mu1_sq - mu2_sq) + c2               # sig1^2+sig2^2 + C2
            r_v2 = pl.reciprocal(v2, approx=True)
            r_a = pl.reciprocal(mu1_sq + mu2_sq + c1, approx=True)
            mcs_map = v1 * r_v2
            ssim_map = (2.0 * mu1_mu2 + c1) * v1 * (r_a * r_v2)

            ssim_parts.append(jnp.sum(ssim_map).reshape(1, 1))
            mcs_parts.append(jnp.sum(mcs_map).reshape(1, 1))

            if l < L - 1:
                ph = pool_refs[2 * l][...]
                pw = pool_refs[2 * l + 1][...]
                pb = jnp.concatenate([x1b, x2b], axis=1)      # (tc*h, 2w)
                pt = _apply_h(ph, pb, h, split_pool)          # (tc*h2, 2w) f32
                ptb = pt.astype(_MXU_DTYPE)
                if wide_pool:                                 # N = 2*w2 lanes
                    pr = jnp.dot(ptb, pw, preferred_element_type=jnp.float32)
                    x1, x2 = pr[:, :w2], pr[:, w2:]
                else:
                    x1 = jnp.dot(ptb[:, :w], pw, preferred_element_type=jnp.float32)
                    x2 = jnp.dot(ptb[:, w:], pw, preferred_element_type=jnp.float32)

        # one dense store per output per block (no per-level masked sub-stores)
        ssim_ref[...] = jnp.concatenate(ssim_parts, axis=1)
        mcs_ref[...] = jnp.concatenate(mcs_parts, axis=1)

    return kernel


# ---------------------------------------------------------------------------
# wrapper
# ---------------------------------------------------------------------------
def ms_ssim_loss(img1, img2, max_val=1.0, levels=5):
    """Forward pass of MSSSIMLoss (size_average=True)."""
    if img1.shape != img2.shape or img1.ndim != 4:
        raise ValueError("expected two NCHW images of identical shape")
    b, c, h0, w0 = img1.shape
    n = b * c
    c1 = (0.01 * max_val) ** 2
    c2 = (0.03 * max_val) ** 2

    # ReLU on the inputs, exactly as the reference module's forward().
    x1 = jax.nn.relu(img1.astype(jnp.float32)).reshape(n, h0, w0)
    x2 = jax.nn.relu(img2.astype(jnp.float32)).reshape(n, h0, w0)

    # hardware-derived VMEM budgets (v7x: 64 MiB, v5e/v6e: 128 MiB)
    try:
        vmem_cap = int(pltpu.get_tpu_info().vmem_capacity_bytes)
    except Exception:
        vmem_cap = 64 * 1024 * 1024
    block_budget = (6 * 1024 * 1024 if vmem_cap <= 64 * 1024 * 1024
                    else 20 * 1024 * 1024)

    tc = _pick_tc(n, h0, w0, block_budget)
    g_blocks = -(-n // tc)                   # cdiv; >= 2 whenever n >= 2
    n_pad = g_blocks * tc
    if n_pad != n:
        zeros = jnp.zeros((n_pad - n, h0, w0), jnp.float32)
        x1 = jnp.concatenate([x1, zeros], axis=0)
        x2 = jnp.concatenate([x2, zeros], axis=0)
    x1 = x1.reshape(n_pad * h0, w0)          # channel-images stacked on sublanes
    x2 = x2.reshape(n_pad * h0, w0)

    geom, conv_mats, pool_mats = _build_levels(h0, w0, levels, tc)
    kernel = _make_msssim_kernel(levels, geom, tc, c1, c2)

    in_specs = [pl.BlockSpec((tc * h0, w0), lambda i: (i, 0)),
                pl.BlockSpec((tc * h0, w0), lambda i: (i, 0))]
    for m in conv_mats + pool_mats:
        # constant block index -> operator fetched once, stays VMEM-resident;
        # matrices are tiny (no tc expansion) so double-buffering is negligible.
        in_specs.append(pl.BlockSpec(m.shape, lambda i: (0, 0)))

    out_specs = (pl.BlockSpec((None, 1, levels), lambda i: (i, 0, 0)),
                 pl.BlockSpec((None, 1, levels), lambda i: (i, 0, 0)))
    out_shape = (jax.ShapeDtypeStruct((g_blocks, 1, levels), jnp.float32),
                 jax.ShapeDtypeStruct((g_blocks, 1, levels), jnp.float32))

    # rough cost / VMEM sizing hints
    flops, trans = 0, 0
    for l, gm in enumerate(geom):
        (h, w, ho, wo, h2, w2, split_conv, wide_conv, split_pool, wide_pool) = gm
        fh = (2 * tc * ho * h * 4 * w if split_conv
              else 2 * (tc * ho) * (tc * h) * 4 * w)
        fw = (2 * (tc * ho) * (4 * w) * (4 * wo) if wide_conv
              else 8 * (tc * ho) * w * wo)
        fl = fh + fw + 25 * tc * ho * wo
        if l < levels - 1:
            fl += (2 * tc * h2 * h * 2 * w if split_pool
                   else 2 * (tc * h2) * (tc * h) * 2 * w)
            fl += (2 * (tc * h2) * (2 * w) * (2 * w2) if wide_pool
                   else 4 * (tc * h2) * w * w2)
        flops += g_blocks * fl
        trans += g_blocks * 2 * tc * ho * wo

    mat_bytes = sum(int(m.size) * int(m.dtype.itemsize)
                    for m in conv_mats + pool_mats)
    bytes_accessed = 2 * int(x1.size) * 4 + mat_bytes + 2 * g_blocks * levels * 4
    block_bytes = tc * h0 * w0 * 4
    vmem_est = 18 * block_bytes + 2 * mat_bytes
    vmem_limit = int(min(max(2 * vmem_est, 32 << 20),
                         max((vmem_cap * 5) // 8, 32 << 20)))

    ssim_part, mcs_part = pl.pallas_call(
        kernel,
        out_shape=out_shape,
        grid_spec=pltpu.PrefetchScalarGridSpec(
            num_scalar_prefetch=0,
            grid=(g_blocks,),
            in_specs=in_specs,
            out_specs=out_specs),
        compiler_params=pltpu.CompilerParams(
            dimension_semantics=("parallel",),      # megacore / v7x 2-TC sharding
            vmem_limit_bytes=vmem_limit),
        cost_estimate=pl.CostEstimate(
            flops=int(flops),
            transcendentals=int(trans),
            bytes_accessed=int(bytes_accessed)),
    )(x1, x2, *conv_mats, *pool_mats)

    # tiny JAX epilogue: cross-block reduction, pad correction, weighted product.
    ssim_sums = jnp.sum(ssim_part.reshape(g_blocks, levels), axis=0)
    mcs_sums = jnp.sum(mcs_part.reshape(g_blocks, levels), axis=0)
    counts = jnp.asarray([n * gm[2] * gm[3] for gm in geom], jnp.float32)
    # a zero-padded channel-image contributes exactly ho*wo (maps == 1) per level
    pad_counts = jnp.asarray([(n_pad - n) * gm[2] * gm[3] for gm in geom],
                             jnp.float32)
    msssim = (ssim_sums - pad_counts) / counts
    mcs = (mcs_sums - pad_counts) / counts

    weight = jnp.asarray(_MSSSIM_WEIGHT[:levels], jnp.float32)
    value = jnp.prod(mcs[:levels - 1] ** weight[:levels - 1]) \
        * msssim[levels - 1] ** weight[levels - 1]
    return 1.0 - value


if __name__ == "__main__":
    key = jax.random.PRNGKey(0)
    k1, k2 = jax.random.split(key)
    # spatial >= 32 so the 5-level pyramid is valid (as in the torch reference)
    img1 = jax.random.uniform(k1, (2, 3, 32, 32), dtype=jnp.float32)
    img2 = jax.random.uniform(k2, (2, 3, 32, 32), dtype=jnp.float32)

    loss = jax.jit(ms_ssim_loss)(img1, img2)
    jax.block_until_ready(loss)
    print("KERNEL_OK")
</pallas_src>

<mosaic_0001>
module attributes {stable_mosaic.version = 11 : i64} {
  func.func @kernel(%arg0: i32, %arg1: memref<96x32xf32, #tpu.memory_space<vmem>>, %arg2: memref<96x32xf32, #tpu.memory_space<vmem>>, %arg3: memref<32x32xbf16, #tpu.memory_space<vmem>>, %arg4: memref<128x128xbf16, #tpu.memory_space<vmem>>, %arg5: memref<16x16xbf16, #tpu.memory_space<vmem>>, %arg6: memref<64x64xbf16, #tpu.memory_space<vmem>>, %arg7: memref<9x8xbf16, #tpu.memory_space<vmem>>, %arg8: memref<32x36xbf16, #tpu.memory_space<vmem>>, %arg9: memref<15x12xbf16, #tpu.memory_space<vmem>>, %arg10: memref<16x20xbf16, #tpu.memory_space<vmem>>, %arg11: memref<9x6xbf16, #tpu.memory_space<vmem>>, %arg12: memref<8x12xbf16, #tpu.memory_space<vmem>>, %arg13: memref<16x32xbf16, #tpu.memory_space<vmem>>, %arg14: memref<64x32xbf16, #tpu.memory_space<vmem>>, %arg15: memref<8x16xbf16, #tpu.memory_space<vmem>>, %arg16: memref<32x16xbf16, #tpu.memory_space<vmem>>, %arg17: memref<4x8xbf16, #tpu.memory_space<vmem>>, %arg18: memref<16x8xbf16, #tpu.memory_space<vmem>>, %arg19: memref<6x12xbf16, #tpu.memory_space<vmem>>, %arg20: memref<8x4xbf16, #tpu.memory_space<vmem>>, %arg21: memref<1x1x5xf32, #tpu.memory_space<vmem>>, %arg22: memref<1x1x5xf32, #tpu.memory_space<vmem>>) attributes {dimension_semantics = [#tpu.dimension_semantics<parallel>], iteration_bounds = array<i64: 2>, scalar_prefetch = 0 : i64, scratch_operands = 0 : i64, tpu.core_type = #tpu.core_type<tc>, window_params = [{transform_indices = @transform_0, window_bounds = array<i64: 96, 32>}, {transform_indices = @transform_1, window_bounds = array<i64: 96, 32>}, {pipeline_mode = #tpu.pipeline_mode<synchronous>, transform_indices = @transform_2, window_bounds = array<i64: 32, 32>}, {pipeline_mode = #tpu.pipeline_mode<synchronous>, transform_indices = @transform_3, window_bounds = array<i64: 128, 128>}, {pipeline_mode = #tpu.pipeline_mode<synchronous>, transform_indices = @transform_4, window_bounds = array<i64: 16, 16>}, {pipeline_mode = #tpu.pipeline_mode<synchronous>, transform_indices = @transform_5, window_bounds = array<i64: 64, 64>}, {pipeline_mode = #tpu.pipeline_mode<synchronous>, transform_indices = @transform_6, window_bounds = array<i64: 9, 8>}, {pipeline_mode = #tpu.pipeline_mode<synchronous>, transform_indices = @transform_7, window_bounds = array<i64: 32, 36>}, {pipeline_mode = #tpu.pipeline_mode<synchronous>, transform_indices = @transform_8, window_bounds = array<i64: 15, 12>}, {pipeline_mode = #tpu.pipeline_mode<synchronous>, transform_indices = @transform_9, window_bounds = array<i64: 16, 20>}, {pipeline_mode = #tpu.pipeline_mode<synchronous>, transform_indices = @transform_10, window_bounds = array<i64: 9, 6>}, {pipeline_mode = #tpu.pipeline_mode<synchronous>, transform_indices = @transform_11, window_bounds = array<i64: 8, 12>}, {pipeline_mode = #tpu.pipeline_mode<synchronous>, transform_indices = @transform_12, window_bounds = array<i64: 16, 32>}, {pipeline_mode = #tpu.pipeline_mode<synchronous>, transform_indices = @transform_13, window_bounds = array<i64: 64, 32>}, {pipeline_mode = #tpu.pipeline_mode<synchronous>, transform_indices = @transform_14, window_bounds = array<i64: 8, 16>}, {pipeline_mode = #tpu.pipeline_mode<synchronous>, transform_indices = @transform_15, window_bounds = array<i64: 32, 16>}, {pipeline_mode = #tpu.pipeline_mode<synchronous>, transform_indices = @transform_16, window_bounds = array<i64: 4, 8>}, {pipeline_mode = #tpu.pipeline_mode<synchronous>, transform_indices = @transform_17, window_bounds = array<i64: 16, 8>}, {pipeline_mode = #tpu.pipeline_mode<synchronous>, transform_indices = @transform_18, window_bounds = array<i64: 6, 12>}, {pipeline_mode = #tpu.pipeline_mode<synchronous>, transform_indices = @transform_19, window_bounds = array<i64: 8, 4>}, {transform_indices = @transform_20, window_bounds = array<i64: 1, 1, 5>}, {transform_indices = @transform_21, window_bounds = array<i64: 1, 1, 5>}]} {
    %c0 = arith.constant 0 : index
    %c0_0 = arith.constant 0 : index
    %0 = vector.load %arg1[%c0, %c0_0] : memref<96x32xf32, #tpu.memory_space<vmem>>, vector<96x32xf32>
    %c0_1 = arith.constant 0 : index
    %c0_2 = arith.constant 0 : index
    %1 = vector.load %arg2[%c0_1, %c0_2] : memref<96x32xf32, #tpu.memory_space<vmem>>, vector<96x32xf32>
    %c0_3 = arith.constant 0 : index
    %c0_4 = arith.constant 0 : index
    %2 = vector.load %arg3[%c0_3, %c0_4] : memref<32x32xbf16, #tpu.memory_space<vmem>>, vector<32x32xbf16>
    %c0_5 = arith.constant 0 : index
    %c0_6 = arith.constant 0 : index
    %3 = vector.load %arg4[%c0_5, %c0_6] : memref<128x128xbf16, #tpu.memory_space<vmem>>, vector<128x128xbf16>
    %4 = arith.truncf %0 : vector<96x32xf32> to vector<96x32xbf16>
    %5 = arith.truncf %1 : vector<96x32xf32> to vector<96x32xbf16>
    %6 = arith.mulf %0, %0 : vector<96x32xf32>
    %7 = arith.mulf %1, %1 : vector<96x32xf32>
    %8 = arith.addf %6, %7 : vector<96x32xf32>
    %9 = arith.truncf %8 : vector<96x32xf32> to vector<96x32xbf16>
    %10 = arith.mulf %0, %1 : vector<96x32xf32>
    %11 = arith.truncf %10 : vector<96x32xf32> to vector<96x32xbf16>
    %12 = tpu.concatenate %4, %5, %9, %11 in 1 : vector<96x32xbf16>, vector<96x32xbf16>, vector<96x32xbf16>, vector<96x32xbf16> -> vector<96x128xbf16>
    %13 = vector.extract_strided_slice %12 {offsets = [0, 0], sizes = [32, 128], strides = [1, 1]} : vector<96x128xbf16> to vector<32x128xbf16>
    %cst = arith.constant dense<0.000000e+00> : vector<32x128xf32>
    %14 = tpu.matmul %2, %13, %cst {dimension_numbers = #tpu.dot_dimension_numbers<[1], [0], [0], [1], [0, 0, 1, 1], [], []>} : vector<32x32xbf16>, vector<32x128xbf16>, vector<32x128xf32> -> vector<32x128xf32>
    %15 = vector.extract_strided_slice %12 {offsets = [32, 0], sizes = [32, 128], strides = [1, 1]} : vector<96x128xbf16> to vector<32x128xbf16>
    %cst_7 = arith.constant dense<0.000000e+00> : vector<32x128xf32>
    %16 = tpu.matmul %2, %15, %cst_7 {dimension_numbers = #tpu.dot_dimension_numbers<[1], [0], [0], [1], [0, 0, 1, 1], [], []>} : vector<32x32xbf16>, vector<32x128xbf16>, vector<32x128xf32> -> vector<32x128xf32>
    %17 = vector.extract_strided_slice %12 {offsets = [64, 0], sizes = [32, 128], strides = [1, 1]} : vector<96x128xbf16> to vector<32x128xbf16>
    %cst_8 = arith.constant dense<0.000000e+00> : vector<32x128xf32>
    %18 = tpu.matmul %2, %17, %cst_8 {dimension_numbers = #tpu.dot_dimension_numbers<[1], [0], [0], [1], [0, 0, 1, 1], [], []>} : vector<32x32xbf16>, vector<32x128xbf16>, vector<32x128xf32> -> vector<32x128xf32>
    %19 = tpu.concatenate %14, %16, %18 in 0 : vector<32x128xf32>, vector<32x128xf32>, vector<32x128xf32> -> vector<96x128xf32>
    %20 = arith.truncf %19 : vector<96x128xf32> to vector<96x128xbf16>
    %cst_9 = arith.constant dense<0.000000e+00> : vector<96x128xf32>
    %21 = tpu.matmul %20, %3, %cst_9 {dimension_numbers = #tpu.dot_dimension_numbers<[1], [0], [0], [1], [0, 0, 1, 1], [], []>} : vector<96x128xbf16>, vector<128x128xbf16>, vector<96x128xf32> -> vector<96x128xf32>
    %22 = vector.extract_strided_slice %21 {offsets = [0, 0], sizes = [96, 32], strides = [1, 1]} : vector<96x128xf32> to vector<96x32xf32>
    %23 = vector.extract_strided_slice %21 {offsets = [0, 32], sizes = [96, 32], strides = [1, 1]} : vector<96x128xf32> to vector<96x32xf32>
    %24 = vector.extract_strided_slice %21 {offsets = [0, 64], sizes = [96, 32], strides = [1, 1]} : vector<96x128xf32> to vector<96x32xf32>
    %25 = vector.extract_strided_slice %21 {offsets = [0, 96], sizes = [96, 32], strides = [1, 1]} : vector<96x128xf32> to vector<96x32xf32>
    %26 = arith.mulf %22, %22 : vector<96x32xf32>
    %27 = arith.mulf %23, %23 : vector<96x32xf32>
    %28 = arith.mulf %22, %23 : vector<96x32xf32>
    %29 = arith.subf %25, %28 : vector<96x32xf32>
    %cst_10 = arith.constant 2.000000e+00 : f32
    %30 = vector.broadcast %cst_10 : f32 to vector<96x32xf32>
    %31 = arith.mulf %30, %29 : vector<96x32xf32>
    %cst_11 = arith.constant 8.99999984E-4 : f32
    %32 = vector.broadcast %cst_11 : f32 to vector<96x32xf32>
    %33 = arith.addf %31, %32 : vector<96x32xf32>
    %34 = arith.subf %24, %26 : vector<96x32xf32>
    %35 = arith.subf %34, %27 : vector<96x32xf32>
    %cst_12 = arith.constant 8.99999984E-4 : f32
    %36 = vector.broadcast %cst_12 : f32 to vector<96x32xf32>
    %37 = arith.addf %35, %36 : vector<96x32xf32>
    %38 = tpu.reciprocal %37 {approx = true} : vector<96x32xf32> -> vector<96x32xf32>
    %39 = arith.addf %26, %27 : vector<96x32xf32>
    %cst_13 = arith.constant 9.99999974E-5 : f32
    %40 = vector.broadcast %cst_13 : f32 to vector<96x32xf32>
    %41 = arith.addf %39, %40 : vector<96x32xf32>
    %42 = tpu.reciprocal %41 {approx = true} : vector<96x32xf32> -> vector<96x32xf32>
    %43 = arith.mulf %33, %38 : vector<96x32xf32>
    %cst_14 = arith.constant 2.000000e+00 : f32
    %44 = vector.broadcast %cst_14 : f32 to vector<96x32xf32>
    %45 = arith.mulf %44, %28 : vector<96x32xf32>
    %cst_15 = arith.constant 9.99999974E-5 : f32
    %46 = vector.broadcast %cst_15 : f32 to vector<96x32xf32>
    %47 = arith.addf %45, %46 : vector<96x32xf32>
    %48 = arith.mulf %47, %33 : vector<96x32xf32>
    %49 = arith.mulf %42, %38 : vector<96x32xf32>
    %50 = arith.mulf %48, %49 : vector<96x32xf32>
    %51 = vector.shape_cast %50 : vector<96x32xf32> to vector<1x96x32xf32>
    %cst_16 = arith.constant dense<0.000000e+00> : vector<1xf32>
    %52 = vector.multi_reduction <add>, %51, %cst_16 [1, 2] : vector<1x96x32xf32> to vector<1xf32>
    %53 = vector.shape_cast %52 : vector<1xf32> to vector<1x1x1xf32>
    %54 = vector.extract %53[0, 0, 0] : f32 from vector<1x1x1xf32>
    %55 = vector.broadcast %54 : f32 to vector<1x1xf32>
    %56 = vector.shape_cast %43 : vector<96x32xf32> to vector<1x96x32xf32>
    %cst_17 = arith.constant dense<0.000000e+00> : vector<1xf32>
    %57 = vector.multi_reduction <add>, %56, %cst_17 [1, 2] : vector<1x96x32xf32> to vector<1xf32>
    %58 = vector.shape_cast %57 : vector<1xf32> to vector<1x1x1xf32>
    %59 = vector.extract %58[0, 0, 0] : f32 from vector<1x1x1xf32>
    %60 = vector.broadcast %59 : f32 to vector<1x1xf32>
    %c0_18 = arith.constant 0 : index
    %c0_19 = arith.constant 0 : index
    %61 = vector.load %arg13[%c0_18, %c0_19] : memref<16x32xbf16, #tpu.memory_space<vmem>>, vector<16x32xbf16>
    %c0_20 = arith.constant 0 : index
    %c0_21 = arith.constant 0 : index
    %62 = vector.load %arg14[%c0_20, %c0_21] : memref<64x32xbf16, #tpu.memory_space<vmem>>, vector<64x32xbf16>
    %63 = tpu.concatenate %4, %5 in 1 : vector<96x32xbf16>, vector<96x32xbf16> -> vector<96x64xbf16>
    %64 = vector.extract_strided_slice %63 {offsets = [0, 0], sizes = [32, 64], strides = [1, 1]} : vector<96x64xbf16> to vector<32x64xbf16>
    %cst_22 = arith.constant dense<0.000000e+00> : vector<16x64xf32>
    %65 = tpu.matmul %61, %64, %cst_22 {dimension_numbers = #tpu.dot_dimension_numbers<[1], [0], [0], [1], [0, 0, 1, 1], [], []>} : vector<16x32xbf16>, vector<32x64xbf16>, vector<16x64xf32> -> vector<16x64xf32>
    %66 = vector.extract_strided_slice %63 {offsets = [32, 0], sizes = [32, 64], strides = [1, 1]} : vector<96x64xbf16> to vector<32x64xbf16>
    %cst_23 = arith.constant dense<0.000000e+00> : vector<16x64xf32>
    %67 = tpu.matmul %61, %66, %cst_23 {dimension_numbers = #tpu.dot_dimension_numbers<[1], [0], [0], [1], [0, 0, 1, 1], [], []>} : vector<16x32xbf16>, vector<32x64xbf16>, vector<16x64xf32> -> vector<16x64xf32>
    %68 = vector.extract_strided_slice %63 {offsets = [64, 0], sizes = [32, 64], strides = [1, 1]} : vector<96x64xbf16> to vector<32x64xbf16>
    %cst_24 = arith.constant dense<0.000000e+00> : vector<16x64xf32>
    %69 = tpu.matmul %61, %68, %cst_24 {dimension_numbers = #tpu.dot_dimension_numbers<[1], [0], [0], [1], [0, 0, 1, 1], [], []>} : vector<16x32xbf16>, vector<32x64xbf16>, vector<16x64xf32> -> vector<16x64xf32>
    %70 = tpu.concatenate %65, %67, %69 in 0 : vector<16x64xf32>, vector<16x64xf32>, vector<16x64xf32> -> vector<48x64xf32>
    %71 = arith.truncf %70 : vector<48x64xf32> to vector<48x64xbf16>
    %cst_25 = arith.constant dense<0.000000e+00> : vector<48x32xf32>
    %72 = tpu.matmul %71, %62, %cst_25 {dimension_numbers = #tpu.dot_dimension_numbers<[1], [0], [0], [1], [0, 0, 1, 1], [], []>} : vector<48x64xbf16>, vector<64x32xbf16>, vector<48x32xf32> -> vector<48x32xf32>
    %73 = vector.extract_strided_slice %72 {offsets = [0, 0], sizes = [48, 16], strides = [1, 1]} : vector<48x32xf32> to vector<48x16xf32>
    %74 = vector.extract_strided_slice %72 {offsets = [0, 16], sizes = [48, 16], strides = [1, 1]} : vector<48x32xf32> to vector<48x16xf32>
    %c0_26 = arith.constant 0 : index
    %c0_27 = arith.constant 0 : index
    %75 = vector.load %arg5[%c0_26, %c0_27] : memref<16x16xbf16, #tpu.memory_space<vmem>>, vector<16x16xbf16>
    %c0_28 = arith.constant 0 : index
    %c0_29 = arith.constant 0 : index
    %76 = vector.load %arg6[%c0_28, %c0_29] : memref<64x64xbf16, #tpu.memory_space<vmem>>, vector<64x64xbf16>
    %77 = arith.truncf %73 : vector<48x16xf32> to vector<48x16xbf16>
    %78 = arith.truncf %74 : vector<48x16xf32> to vector<48x16xbf16>
    %79 = arith.mulf %73, %73 : vector<48x16xf32>
    %80 = arith.mulf %74, %74 : vector<48x16xf32>
    %81 = arith.addf %79, %80 : vector<48x16xf32>
    %82 = arith.truncf %81 : vector<48x16xf32> to vector<48x16xbf16>
    %83 = arith.mulf %73, %74 : vector<48x16xf32>
    %84 = arith.truncf %83 : vector<48x16xf32> to vector<48x16xbf16>
    %85 = tpu.concatenate %77, %78, %82, %84 in 1 : vector<48x16xbf16>, vector<48x16xbf16>, vector<48x16xbf16>, vector<48x16xbf16> -> vector<48x64xbf16>
    %86 = vector.extract_strided_slice %85 {offsets = [0, 0], sizes = [16, 64], strides = [1, 1]} : vector<48x64xbf16> to vector<16x64xbf16>
    %cst_30 = arith.constant dense<0.000000e+00> : vector<16x64xf32>
    %87 = tpu.matmul %75, %86, %cst_30 {dimension_numbers = #tpu.dot_dimension_numbers<[1], [0], [0], [1], [0, 0, 1, 1], [], []>} : vector<16x16xbf16>, vector<16x64xbf16>, vector<16x64xf32> -> vector<16x64xf32>
    %88 = vector.extract_strided_slice %85 {offsets = [16, 0], sizes = [16, 64], strides = [1, 1]} : vector<48x64xbf16> to vector<16x64xbf16>
    %cst_31 = arith.constant dense<0.000000e+00> : vector<16x64xf32>
    %89 = tpu.matmul %75, %88, %cst_31 {dimension_numbers = #tpu.dot_dimension_numbers<[1], [0], [0], [1], [0, 0, 1, 1], [], []>} : vector<16x16xbf16>, vector<16x64xbf16>, vector<16x64xf32> -> vector<16x64xf32>
    %90 = vector.extract_strided_slice %85 {offsets = [32, 0], sizes = [16, 64], strides = [1, 1]} : vector<48x64xbf16> to vector<16x64xbf16>
    %cst_32 = arith.constant dense<0.000000e+00> : vector<16x64xf32>
    %91 = tpu.matmul %75, %90, %cst_32 {dimension_numbers = #tpu.dot_dimension_numbers<[1], [0], [0], [1], [0, 0, 1, 1], [], []>} : vector<16x16xbf16>, vector<16x64xbf16>, vector<16x64xf32> -> vector<16x64xf32>
    %92 = tpu.concatenate %87, %89, %91 in 0 : vector<16x64xf32>, vector<16x64xf32>, vector<16x64xf32> -> vector<48x64xf32>
    %93 = arith.truncf %92 : vector<48x64xf32> to vector<48x64xbf16>
    %cst_33 = arith.constant dense<0.000000e+00> : vector<48x64xf32>
    %94 = tpu.matmul %93, %76, %cst_33 {dimension_numbers = #tpu.dot_dimension_numbers<[1], [0], [0], [1], [0, 0, 1, 1], [], []>} : vector<48x64xbf16>, vector<64x64xbf16>, vector<48x64xf32> -> vector<48x64xf32>
    %95 = vector.extract_strided_slice %94 {offsets = [0, 0], sizes = [48, 16], strides = [1, 1]} : vector<48x64xf32> to vector<48x16xf32>
    %96 = vector.extract_strided_slice %94 {offsets = [0, 16], sizes = [48, 16], strides = [1, 1]} : vector<48x64xf32> to vector<48x16xf32>
    %97 = vector.extract_strided_slice %94 {offsets = [0, 32], sizes = [48, 16], strides = [1, 1]} : vector<48x64xf32> to vector<48x16xf32>
    %98 = vector.extract_strided_slice %94 {offsets = [0, 48], sizes = [48, 16], strides = [1, 1]} : vector<48x64xf32> to vector<48x16xf32>
    %99 = arith.mulf %95, %95 : vector<48x16xf32>
    %100 = arith.mulf %96, %96 : vector<48x16xf32>
    %101 = arith.mulf %95, %96 : vector<48x16xf32>
    %102 = arith.subf %98, %101 : vector<48x16xf32>
    %cst_34 = arith.constant 2.000000e+00 : f32
    %103 = vector.broadcast %cst_34 : f32 to vector<48x16xf32>
    %104 = arith.mulf %103, %102 : vector<48x16xf32>
    %cst_35 = arith.constant 8.99999984E-4 : f32
    %105 = vector.broadcast %cst_35 : f32 to vector<48x16xf32>
    %106 = arith.addf %104, %105 : vector<48x16xf32>
    %107 = arith.subf %97, %99 : vector<48x16xf32>
    %108 = arith.subf %107, %100 : vector<48x16xf32>
    %cst_36 = arith.constant 8.99999984E-4 : f32
    %109 = vector.broadcast %cst_36 : f32 to vector<48x16xf32>
    %110 = arith.addf %108, %109 : vector<48x16xf32>
    %111 = tpu.reciprocal %110 {approx = true} : vector<48x16xf32> -> vector<48x16xf32>
    %112 = arith.addf %99, %100 : vector<48x16xf32>
    %cst_37 = arith.constant 9.99999974E-5 : f32
    %113 = vector.broadcast %cst_37 : f32 to vector<48x16xf32>
    %114 = arith.addf %112, %113 : vector<48x16xf32>
    %115 = tpu.reciprocal %114 {approx = true} : vector<48x16xf32> -> vector<48x16xf32>
    %116 = arith.mulf %106, %111 : vector<48x16xf32>
    %cst_38 = arith.constant 2.000000e+00 : f32
    %117 = vector.broadcast %cst_38 : f32 to vector<48x16xf32>
    %118 = arith.mulf %117, %101 : vector<48x16xf32>
    %cst_39 = arith.constant 9.99999974E-5 : f32
    %119 = vector.broadcast %cst_39 : f32 to vector<48x16xf32>
    %120 = arith.addf %118, %119 : vector<48x16xf32>
    %121 = arith.mulf %120, %106 : vector<48x16xf32>
    %122 = arith.mulf %115, %111 : vector<48x16xf32>
    %123 = arith.mulf %121, %122 : vector<48x16xf32>
    %124 = vector.shape_cast %123 : vector<48x16xf32> to vector<1x48x16xf32>
    %cst_40 = arith.constant dense<0.000000e+00> : vector<1xf32>
    %125 = vector.multi_reduction <add>, %124, %cst_40 [1, 2] : vector<1x48x16xf32> to vector<1xf32>
    %126 = vector.shape_cast %125 : vector<1xf32> to vector<1x1x1xf32>
    %127 = vector.extract %126[0, 0, 0] : f32 from vector<1x1x1xf32>
    %128 = vector.broadcast %127 : f32 to vector<1x1xf32>
    %129 = vector.shape_cast %116 : vector<48x16xf32> to vector<1x48x16xf32>
    %cst_41 = arith.constant dense<0.000000e+00> : vector<1xf32>
    %130 = vector.multi_reduction <add>, %129, %cst_41 [1, 2] : vector<1x48x16xf32> to vector<1xf32>
    %131 = vector.shape_cast %130 : vector<1xf32> to vector<1x1x1xf32>
    %132 = vector.extract %131[0, 0, 0] : f32 from vector<1x1x1xf32>
    %133 = vector.broadcast %132 : f32 to vector<1x1xf32>
    %c0_42 = arith.constant 0 : index
    %c0_43 = arith.constant 0 : index
    %134 = vector.load %arg15[%c0_42, %c0_43] : memref<8x16xbf16, #tpu.memory_space<vmem>>, vector<8x16xbf16>
    %c0_44 = arith.constant 0 : index
    %c0_45 = arith.constant 0 : index
    %135 = vector.load %arg16[%c0_44, %c0_45] : memref<32x16xbf16, #tpu.memory_space<vmem>>, vector<32x16xbf16>
    %136 = tpu.concatenate %77, %78 in 1 : vector<48x16xbf16>, vector<48x16xbf16> -> vector<48x32xbf16>
    %137 = vector.extract_strided_slice %136 {offsets = [0, 0], sizes = [16, 32], strides = [1, 1]} : vector<48x32xbf16> to vector<16x32xbf16>
    %cst_46 = arith.constant dense<0.000000e+00> : vector<8x32xf32>
    %138 = tpu.matmul %134, %137, %cst_46 {dimension_numbers = #tpu.dot_dimension_numbers<[1], [0], [0], [1], [0, 0, 1, 1], [], []>} : vector<8x16xbf16>, vector<16x32xbf16>, vector<8x32xf32> -> vector<8x32xf32>
    %139 = vector.extract_strided_slice %136 {offsets = [16, 0], sizes = [16, 32], strides = [1, 1]} : vector<48x32xbf16> to vector<16x32xbf16>
    %cst_47 = arith.constant dense<0.000000e+00> : vector<8x32xf32>
    %140 = tpu.matmul %134, %139, %cst_47 {dimension_numbers = #tpu.dot_dimension_numbers<[1], [0], [0], [1], [0, 0, 1, 1], [], []>} : vector<8x16xbf16>, vector<16x32xbf16>, vector<8x32xf32> -> vector<8x32xf32>
    %141 = vector.extract_strided_slice %136 {offsets = [32, 0], sizes = [16, 32], strides = [1, 1]} : vector<48x32xbf16> to vector<16x32xbf16>
    %cst_48 = arith.constant dense<0.000000e+00> : vector<8x32xf32>
    %142 = tpu.matmul %134, %141, %cst_48 {dimension_numbers = #tpu.dot_dimension_numbers<[1], [0], [0], [1], [0, 0, 1, 1], [], []>} : vector<8x16xbf16>, vector<16x32xbf16>, vector<8x32xf32> -> vector<8x32xf32>
    %143 = tpu.concatenate %138, %140, %142 in 0 : vector<8x32xf32>, vector<8x32xf32>, vector<8x32xf32> -> vector<24x32xf32>
    %144 = arith.truncf %143 : vector<24x32xf32> to vector<24x32xbf16>
    %cst_49 = arith.constant dense<0.000000e+00> : vector<24x16xf32>
    %145 = tpu.matmul %144, %135, %cst_49 {dimension_numbers = #tpu.dot_dimension_numbers<[1], [0], [0], [1], [0, 0, 1, 1], [], []>} : vector<24x32xbf16>, vector<32x16xbf16>, vector<24x16xf32> -> vector<24x16xf32>
    %146 = vector.extract_strided_slice %145 {offsets = [0, 0], sizes = [24, 8], strides = [1, 1]} : vector<24x16xf32> to vector<24x8xf32>
    %147 = vector.extract_strided_slice %145 {offsets = [0, 8], sizes = [24, 8], strides = [1, 1]} : vector<24x16xf32> to vector<24x8xf32>
    %c0_50 = arith.constant 0 : index
    %c0_51 = arith.constant 0 : index
    %148 = vector.load %arg7[%c0_50, %c0_51] : memref<9x8xbf16, #tpu.memory_space<vmem>>, vector<9x8xbf16>
    %c0_52 = arith.constant 0 : index
    %c0_53 = arith.constant 0 : index
    %149 = vector.load %arg8[%c0_52, %c0_53] : memref<32x36xbf16, #tpu.memory_space<vmem>>, vector<32x36xbf16>
    %150 = arith.truncf %146 : vector<24x8xf32> to vector<24x8xbf16>
    %151 = arith.truncf %147 : vector<24x8xf32> to vector<24x8xbf16>
    %152 = arith.mulf %146, %146 : vector<24x8xf32>
    %153 = arith.mulf %147, %147 : vector<24x8xf32>
    %154 = arith.addf %152, %153 : vector<24x8xf32>
    %155 = arith.truncf %154 : vector<24x8xf32> to vector<24x8xbf16>
    %156 = arith.mulf %146, %147 : vector<24x8xf32>
    %157 = arith.truncf %156 : vector<24x8xf32> to vector<24x8xbf16>
    %158 = tpu.concatenate %150, %151, %155, %157 in 1 : vector<24x8xbf16>, vector<24x8xbf16>, vector<24x8xbf16>, vector<24x8xbf16> -> vector<24x32xbf16>
    %159 = vector.extract_strided_slice %158 {offsets = [0, 0], sizes = [8, 32], strides = [1, 1]} : vector<24x32xbf16> to vector<8x32xbf16>
    %cst_54 = arith.constant dense<0.000000e+00> : vector<9x32xf32>
    %160 = tpu.matmul %148, %159, %cst_54 {dimension_numbers = #tpu.dot_dimension_numbers<[1], [0], [0], [1], [0, 0, 1, 1], [], []>} : vector<9x8xbf16>, vector<8x32xbf16>, vector<9x32xf32> -> vector<9x32xf32>
    %161 = vector.extract_strided_slice %158 {offsets = [8, 0], sizes = [8, 32], strides = [1, 1]} : vector<24x32xbf16> to vector<8x32xbf16>
    %cst_55 = arith.constant dense<0.000000e+00> : vector<9x32xf32>
    %162 = tpu.matmul %148, %161, %cst_55 {dimension_numbers = #tpu.dot_dimension_numbers<[1], [0], [0], [1], [0, 0, 1, 1], [], []>} : vector<9x8xbf16>, vector<8x32xbf16>, vector<9x32xf32> -> vector<9x32xf32>
    %163 = vector.extract_strided_slice %158 {offsets = [16, 0], sizes = [8, 32], strides = [1, 1]} : vector<24x32xbf16> to vector<8x32xbf16>
    %cst_56 = arith.constant dense<0.000000e+00> : vector<9x32xf32>
    %164 = tpu.matmul %148, %163, %cst_56 {dimension_numbers = #tpu.dot_dimension_numbers<[1], [0], [0], [1], [0, 0, 1, 1], [], []>} : vector<9x8xbf16>, vector<8x32xbf16>, vector<9x32xf32> -> vector<9x32xf32>
    %165 = tpu.concatenate %160, %162, %164 in 0 : vector<9x32xf32>, vector<9x32xf32>, vector<9x32xf32> -> vector<27x32xf32>
    %166 = arith.truncf %165 : vector<27x32xf32> to vector<27x32xbf16>
    %cst_57 = arith.constant dense<0.000000e+00> : vector<27x36xf32>
    %167 = tpu.matmul %166, %149, %cst_57 {dimension_numbers = #tpu.dot_dimension_numbers<[1], [0], [0], [1], [0, 0, 1, 1], [], []>} : vector<27x32xbf16>, vector<32x36xbf16>, vector<27x36xf32> -> vector<27x36xf32>
    %168 = vector.extract_strided_slice %167 {offsets = [0, 0], sizes = [27, 9], strides = [1, 1]} : vector<27x36xf32> to vector<27x9xf32>
    %169 = vector.extract_strided_slice %167 {offsets = [0, 9], sizes = [27, 9], strides = [1, 1]} : vector<27x36xf32> to vector<27x9xf32>
    %170 = vector.extract_strided_slice %167 {offsets = [0, 18], sizes = [27, 9], strides = [1, 1]} : vector<27x36xf32> to vector<27x9xf32>
    %171 = vector.extract_strided_slice %167 {offsets = [0, 27], sizes = [27, 9], strides = [1, 1]} : vector<27x36xf32> to vector<27x9xf32>
    %172 = arith.mulf %168, %168 : vector<27x9xf32>
    %173 = arith.mulf %169, %169 : vector<27x9xf32>
    %174 = arith.mulf %168, %169 : vector<27x9xf32>
    %175 = arith.subf %171, %174 : vector<27x9xf32>
    %cst_58 = arith.constant 2.000000e+00 : f32
    %176 = vector.broadcast %cst_58 : f32 to vector<27x9xf32>
    %177 = arith.mulf %176, %175 : vector<27x9xf32>
    %cst_59 = arith.constant 8.99999984E-4 : f32
    %178 = vector.broadcast %cst_59 : f32 to vector<27x9xf32>
    %179 = arith.addf %177, %178 : vector<27x9xf32>
    %180 = arith.subf %170, %172 : vector<27x9xf32>
    %181 = arith.subf %180, %173 : vector<27x9xf32>
    %cst_60 = arith.constant 8.99999984E-4 : f32
    %182 = vector.broadcast %cst_60 : f32 to vector<27x9xf32>
    %183 = arith.addf %181, %182 : vector<27x9xf32>
    %184 = tpu.reciprocal %183 {approx = true} : vector<27x9xf32> -> vector<27x9xf32>
    %185 = arith.addf %172, %173 : vector<27x9xf32>
    %cst_61 = arith.constant 9.99999974E-5 : f32
    %186 = vector.broadcast %cst_61 : f32 to vector<27x9xf32>
    %187 = arith.addf %185, %186 : vector<27x9xf32>
    %188 = tpu.reciprocal %187 {approx = true} : vector<27x9xf32> -> vector<27x9xf32>
    %189 = arith.mulf %179, %184 : vector<27x9xf32>
    %cst_62 = arith.constant 2.000000e+00 : f32
    %190 = vector.broadcast %cst_62 : f32 to vector<27x9xf32>
    %191 = arith.mulf %190, %174 : vector<27x9xf32>
    %cst_63 = arith.constant 9.99999974E-5 : f32
    %192 = vector.broadcast %cst_63 : f32 to vector<27x9xf32>
    %193 = arith.addf %191, %192 : vector<27x9xf32>
    %194 = arith.mulf %193, %179 : vector<27x9xf32>
    %195 = arith.mulf %188, %184 : vector<27x9xf32>
    %196 = arith.mulf %194, %195 : vector<27x9xf32>
    %197 = vector.shape_cast %196 : vector<27x9xf32> to vector<1x27x9xf32>
    %cst_64 = arith.constant dense<0.000000e+00> : vector<1xf32>
    %198 = vector.multi_reduction <add>, %197, %cst_64 [1, 2] : vector<1x27x9xf32> to vector<1xf32>
    %199 = vector.shape_cast %198 : vector<1xf32> to vector<1x1x1xf32>
    %200 = vector.extract %199[0, 0, 0] : f32 from vector<1x1x1xf32>
    %201 = vector.broadcast %200 : f32 to vector<1x1xf32>
    %202 = vector.shape_cast %189 : vector<27x9xf32> to vector<1x27x9xf32>
    %cst_65 = arith.constant dense<0.000000e+00> : vector<1xf32>
    %203 = vector.multi_reduction <add>, %202, %cst_65 [1, 2] : vector<1x27x9xf32> to vector<1xf32>
    %204 = vector.shape_cast %203 : vector<1xf32> to vector<1x1x1xf32>
    %205 = vector.extract %204[0, 0, 0] : f32 from vector<1x1x1xf32>
    %206 = vector.broadcast %205 : f32 to vector<1x1xf32>
    %c0_66 = arith.constant 0 : index
    %c0_67 = arith.constant 0 : index
    %207 = vector.load %arg17[%c0_66, %c0_67] : memref<4x8xbf16, #tpu.memory_space<vmem>>, vector<4x8xbf16>
    %c0_68 = arith.constant 0 : index
    %c0_69 = arith.constant 0 : index
    %208 = vector.load %arg18[%c0_68, %c0_69] : memref<16x8xbf16, #tpu.memory_space<vmem>>, vector<16x8xbf16>
    %209 = tpu.concatenate %150, %151 in 1 : vector<24x8xbf16>, vector<24x8xbf16> -> vector<24x16xbf16>
    %210 = vector.extract_strided_slice %209 {offsets = [0, 0], sizes = [8, 16], strides = [1, 1]} : vector<24x16xbf16> to vector<8x16xbf16>
    %cst_70 = arith.constant dense<0.000000e+00> : vector<4x16xf32>
    %211 = tpu.matmul %207, %210, %cst_70 {dimension_numbers = #tpu.dot_dimension_numbers<[1], [0], [0], [1], [0, 0, 1, 1], [], []>} : vector<4x8xbf16>, vector<8x16xbf16>, vector<4x16xf32> -> vector<4x16xf32>
    %212 = vector.extract_strided_slice %209 {offsets = [8, 0], sizes = [8, 16], strides = [1, 1]} : vector<24x16xbf16> to vector<8x16xbf16>
    %cst_71 = arith.constant dense<0.000000e+00> : vector<4x16xf32>
    %213 = tpu.matmul %207, %212, %cst_71 {dimension_numbers = #tpu.dot_dimension_numbers<[1], [0], [0], [1], [0, 0, 1, 1], [], []>} : vector<4x8xbf16>, vector<8x16xbf16>, vector<4x16xf32> -> vector<4x16xf32>
    %214 = vector.extract_strided_slice %209 {offsets = [16, 0], sizes = [8, 16], strides = [1, 1]} : vector<24x16xbf16> to vector<8x16xbf16>
    %cst_72 = arith.constant dense<0.000000e+00> : vector<4x16xf32>
    %215 = tpu.matmul %207, %214, %cst_72 {dimension_numbers = #tpu.dot_dimension_numbers<[1], [0], [0], [1], [0, 0, 1, 1], [], []>} : vector<4x8xbf16>, vector<8x16xbf16>, vector<4x16xf32> -> vector<4x16xf32>
    %216 = tpu.concatenate %211, %213, %215 in 0 : vector<4x16xf32>, vector<4x16xf32>, vector<4x16xf32> -> vector<12x16xf32>
    %217 = arith.truncf %216 : vector<12x16xf32> to vector<12x16xbf16>
    %cst_73 = arith.constant dense<0.000000e+00> : vector<12x8xf32>
    %218 = tpu.matmul %217, %208, %cst_73 {dimension_numbers = #tpu.dot_dimension_numbers<[1], [0], [0], [1], [0, 0, 1, 1], [], []>} : vector<12x16xbf16>, vector<16x8xbf16>, vector<12x8xf32> -> vector<12x8xf32>
    %219 = vector.extract_strided_slice %218 {offsets = [0, 0], sizes = [12, 4], strides = [1, 1]} : vector<12x8xf32> to vector<12x4xf32>
    %220 = vector.extract_strided_slice %218 {offsets = [0, 4], sizes = [12, 4], strides = [1, 1]} : vector<12x8xf32> to vector<12x4xf32>
    %c0_74 = arith.constant 0 : index
    %c0_75 = arith.constant 0 : index
    %221 = vector.load %arg9[%c0_74, %c0_75] : memref<15x12xbf16, #tpu.memory_space<vmem>>, vector<15x12xbf16>
    %c0_76 = arith.constant 0 : index
    %c0_77 = arith.constant 0 : index
    %222 = vector.load %arg10[%c0_76, %c0_77] : memref<16x20xbf16, #tpu.memory_space<vmem>>, vector<16x20xbf16>
    %223 = arith.truncf %219 : vector<12x4xf32> to vector<12x4xbf16>
    %224 = arith.truncf %220 : vector<12x4xf32> to vector<12x4xbf16>
    %225 = arith.mulf %219, %219 : vector<12x4xf32>
    %226 = arith.mulf %220, %220 : vector<12x4xf32>
    %227 = arith.addf %225, %226 : vector<12x4xf32>
    %228 = arith.truncf %227 : vector<12x4xf32> to vector<12x4xbf16>
    %229 = arith.mulf %219, %220 : vector<12x4xf32>
    %230 = arith.truncf %229 : vector<12x4xf32> to vector<12x4xbf16>
    %231 = tpu.concatenate %223, %224, %228, %230 in 1 : vector<12x4xbf16>, vector<12x4xbf16>, vector<12x4xbf16>, vector<12x4xbf16> -> vector<12x16xbf16>
    %cst_78 = arith.constant dense<0.000000e+00> : vector<15x16xf32>
    %232 = tpu.matmul %221, %231, %cst_78 {dimension_numbers = #tpu.dot_dimension_numbers<[1], [0], [0], [1], [0, 0, 1, 1], [], []>} : vector<15x12xbf16>, vector<12x16xbf16>, vector<15x16xf32> -> vector<15x16xf32>
    %233 = arith.truncf %232 : vector<15x16xf32> to vector<15x16xbf16>
    %cst_79 = arith.constant dense<0.000000e+00> : vector<15x20xf32>
    %234 = tpu.matmul %233, %222, %cst_79 {dimension_numbers = #tpu.dot_dimension_numbers<[1], [0], [0], [1], [0, 0, 1, 1], [], []>} : vector<15x16xbf16>, vector<16x20xbf16>, vector<15x20xf32> -> vector<15x20xf32>
    %235 = vector.extract_strided_slice %234 {offsets = [0, 0], sizes = [15, 5], strides = [1, 1]} : vector<15x20xf32> to vector<15x5xf32>
    %236 = vector.extract_strided_slice %234 {offsets = [0, 5], sizes = [15, 5], strides = [1, 1]} : vector<15x20xf32> to vector<15x5xf32>
    %237 = vector.extract_strided_slice %234 {offsets = [0, 10], sizes = [15, 5], strides = [1, 1]} : vector<15x20xf32> to vector<15x5xf32>
    %238 = vector.extract_strided_slice %234 {offsets = [0, 15], sizes = [15, 5], strides = [1, 1]} : vector<15x20xf32> to vector<15x5xf32>
    %239 = arith.mulf %235, %235 : vector<15x5xf32>
    %240 = arith.mulf %236, %236 : vector<15x5xf32>
    %241 = arith.mulf %235, %236 : vector<15x5xf32>
    %242 = arith.subf %238, %241 : vector<15x5xf32>
    %cst_80 = arith.constant 2.000000e+00 : f32
    %243 = vector.broadcast %cst_80 : f32 to vector<15x5xf32>
    %244 = arith.mulf %243, %242 : vector<15x5xf32>
    %cst_81 = arith.constant 8.99999984E-4 : f32
    %245 = vector.broadcast %cst_81 : f32 to vector<15x5xf32>
    %246 = arith.addf %244, %245 : vector<15x5xf32>
    %247 = arith.subf %237, %239 : vector<15x5xf32>
    %248 = arith.subf %247, %240 : vector<15x5xf32>
    %cst_82 = arith.constant 8.99999984E-4 : f32
    %249 = vector.broadcast %cst_82 : f32 to vector<15x5xf32>
    %250 = arith.addf %248, %249 : vector<15x5xf32>
    %251 = tpu.reciprocal %250 {approx = true} : vector<15x5xf32> -> vector<15x5xf32>
    %252 = arith.addf %239, %240 : vector<15x5xf32>
    %cst_83 = arith.constant 9.99999974E-5 : f32
    %253 = vector.broadcast %cst_83 : f32 to vector<15x5xf32>
    %254 = arith.addf %252, %253 : vector<15x5xf32>
    %255 = tpu.reciprocal %254 {approx = true} : vector<15x5xf32> -> vector<15x5xf32>
    %256 = arith.mulf %246, %251 : vector<15x5xf32>
    %cst_84 = arith.constant 2.000000e+00 : f32
    %257 = vector.broadcast %cst_84 : f32 to vector<15x5xf32>
    %258 = arith.mulf %257, %241 : vector<15x5xf32>
    %cst_85 = arith.constant 9.99999974E-5 : f32
    %259 = vector.broadcast %cst_85 : f32 to vector<15x5xf32>
    %260 = arith.addf %258, %259 : vector<15x5xf32>
    %261 = arith.mulf %260, %246 : vector<15x5xf32>
    %262 = arith.mulf %255, %251 : vector<15x5xf32>
    %263 = arith.mulf %261, %262 : vector<15x5xf32>
    %264 = vector.shape_cast %263 : vector<15x5xf32> to vector<1x15x5xf32>
    %cst_86 = arith.constant dense<0.000000e+00> : vector<1xf32>
    %265 = vector.multi_reduction <add>, %264, %cst_86 [1, 2] : vector<1x15x5xf32> to vector<1xf32>
    %266 = vector.shape_cast %265 : vector<1xf32> to vector<1x1x1xf32>
    %267 = vector.extract %266[0, 0, 0] : f32 from vector<1x1x1xf32>
    %268 = vector.broadcast %267 : f32 to vector<1x1xf32>
    %269 = vector.shape_cast %256 : vector<15x5xf32> to vector<1x15x5xf32>
    %cst_87 = arith.constant dense<0.000000e+00> : vector<1xf32>
    %270 = vector.multi_reduction <add>, %269, %cst_87 [1, 2] : vector<1x15x5xf32> to vector<1xf32>
    %271 = vector.shape_cast %270 : vector<1xf32> to vector<1x1x1xf32>
    %272 = vector.extract %271[0, 0, 0] : f32 from vector<1x1x1xf32>
    %273 = vector.broadcast %272 : f32 to vector<1x1xf32>
    %c0_88 = arith.constant 0 : index
    %c0_89 = arith.constant 0 : index
    %274 = vector.load %arg19[%c0_88, %c0_89] : memref<6x12xbf16, #tpu.memory_space<vmem>>, vector<6x12xbf16>
    %c0_90 = arith.constant 0 : index
    %c0_91 = arith.constant 0 : index
    %275 = vector.load %arg20[%c0_90, %c0_91] : memref<8x4xbf16, #tpu.memory_space<vmem>>, vector<8x4xbf16>
    %276 = tpu.concatenate %223, %224 in 1 : vector<12x4xbf16>, vector<12x4xbf16> -> vector<12x8xbf16>
    %cst_92 = arith.constant dense<0.000000e+00> : vector<6x8xf32>
    %277 = tpu.matmul %274, %276, %cst_92 {dimension_numbers = #tpu.dot_dimension_numbers<[1], [0], [0], [1], [0, 0, 1, 1], [], []>} : vector<6x12xbf16>, vector<12x8xbf16>, vector<6x8xf32> -> vector<6x8xf32>
    %278 = arith.truncf %277 : vector<6x8xf32> to vector<6x8xbf16>
    %cst_93 = arith.constant dense<0.000000e+00> : vector<6x4xf32>
    %279 = tpu.matmul %278, %275, %cst_93 {dimension_numbers = #tpu.dot_dimension_numbers<[1], [0], [0], [1], [0, 0, 1, 1], [], []>} : vector<6x8xbf16>, vector<8x4xbf16>, vector<6x4xf32> -> vector<6x4xf32>
    %280 = vector.extract_strided_slice %279 {offsets = [0, 0], sizes = [6, 2], strides = [1, 1]} : vector<6x4xf32> to vector<6x2xf32>
    %281 = vector.extract_strided_slice %279 {offsets = [0, 2], sizes = [6, 2], strides = [1, 1]} : vector<6x4xf32> to vector<6x2xf32>
    %c0_94 = arith.constant 0 : index
    %c0_95 = arith.constant 0 : index
    %282 = vector.load %arg11[%c0_94, %c0_95] : memref<9x6xbf16, #tpu.memory_space<vmem>>, vector<9x6xbf16>
    %c0_96 = arith.constant 0 : index
    %c0_97 = arith.constant 0 : index
    %283 = vector.load %arg12[%c0_96, %c0_97] : memref<8x12xbf16, #tpu.memory_space<vmem>>, vector<8x12xbf16>
    %284 = arith.truncf %280 : vector<6x2xf32> to vector<6x2xbf16>
    %285 = arith.truncf %281 : vector<6x2xf32> to vector<6x2xbf16>
    %286 = arith.mulf %280, %280 : vector<6x2xf32>
    %287 = arith.mulf %281, %281 : vector<6x2xf32>
    %288 = arith.addf %286, %287 : vector<6x2xf32>
    %289 = arith.truncf %288 : vector<6x2xf32> to vector<6x2xbf16>
    %290 = arith.mulf %280, %281 : vector<6x2xf32>
    %291 = arith.truncf %290 : vector<6x2xf32> to vector<6x2xbf16>
    %292 = tpu.concatenate %284, %285, %289, %291 in 1 : vector<6x2xbf16>, vector<6x2xbf16>, vector<6x2xbf16>, vector<6x2xbf16> -> vector<6x8xbf16>
    %cst_98 = arith.constant dense<0.000000e+00> : vector<9x8xf32>
    %293 = tpu.matmul %282, %292, %cst_98 {dimension_numbers = #tpu.dot_dimension_numbers<[1], [0], [0], [1], [0, 0, 1, 1], [], []>} : vector<9x6xbf16>, vector<6x8xbf16>, vector<9x8xf32> -> vector<9x8xf32>
    %294 = arith.truncf %293 : vector<9x8xf32> to vector<9x8xbf16>
    %cst_99 = arith.constant dense<0.000000e+00> : vector<9x12xf32>
    %295 = tpu.matmul %294, %283, %cst_99 {dimension_numbers = #tpu.dot_dimension_numbers<[1], [0], [0], [1], [0, 0, 1, 1], [], []>} : vector<9x8xbf16>, vector<8x12xbf16>, vector<9x12xf32> -> vector<9x12xf32>
    %296 = vector.extract_strided_slice %295 {offsets = [0, 0], sizes = [9, 3], strides = [1, 1]} : vector<9x12xf32> to vector<9x3xf32>
    %297 = vector.extract_strided_slice %295 {offsets = [0, 3], sizes = [9, 3], strides = [1, 1]} : vector<9x12xf32> to vector<9x3xf32>
    %298 = vector.extract_strided_slice %295 {offsets = [0, 6], sizes = [9, 3], strides = [1, 1]} : vector<9x12xf32> to vector<9x3xf32>
    %299 = vector.extract_strided_slice %295 {offsets = [0, 9], sizes = [9, 3], strides = [1, 1]} : vector<9x12xf32> to vector<9x3xf32>
    %300 = arith.mulf %296, %296 : vector<9x3xf32>
    %301 = arith.mulf %297, %297 : vector<9x3xf32>
    %302 = arith.mulf %296, %297 : vector<9x3xf32>
    %303 = arith.subf %299, %302 : vector<9x3xf32>
    %cst_100 = arith.constant 2.000000e+00 : f32
    %304 = vector.broadcast %cst_100 : f32 to vector<9x3xf32>
    %305 = arith.mulf %304, %303 : vector<9x3xf32>
    %cst_101 = arith.constant 8.99999984E-4 : f32
    %306 = vector.broadcast %cst_101 : f32 to vector<9x3xf32>
    %307 = arith.addf %305, %306 : vector<9x3xf32>
    %308 = arith.subf %298, %300 : vector<9x3xf32>
    %309 = arith.subf %308, %301 : vector<9x3xf32>
    %cst_102 = arith.constant 8.99999984E-4 : f32
    %310 = vector.broadcast %cst_102 : f32 to vector<9x3xf32>
    %311 = arith.addf %309, %310 : vector<9x3xf32>
    %312 = tpu.reciprocal %311 {approx = true} : vector<9x3xf32> -> vector<9x3xf32>
    %313 = arith.addf %300, %301 : vector<9x3xf32>
    %cst_103 = arith.constant 9.99999974E-5 : f32
    %314 = vector.broadcast %cst_103 : f32 to vector<9x3xf32>
    %315 = arith.addf %313, %314 : vector<9x3xf32>
    %316 = tpu.reciprocal %315 {approx = true} : vector<9x3xf32> -> vector<9x3xf32>
    %317 = arith.mulf %307, %312 : vector<9x3xf32>
    %cst_104 = arith.constant 2.000000e+00 : f32
    %318 = vector.broadcast %cst_104 : f32 to vector<9x3xf32>
    %319 = arith.mulf %318, %302 : vector<9x3xf32>
    %cst_105 = arith.constant 9.99999974E-5 : f32
    %320 = vector.broadcast %cst_105 : f32 to vector<9x3xf32>
    %321 = arith.addf %319, %320 : vector<9x3xf32>
    %322 = arith.mulf %321, %307 : vector<9x3xf32>
    %323 = arith.mulf %316, %312 : vector<9x3xf32>
    %324 = arith.mulf %322, %323 : vector<9x3xf32>
    %325 = vector.shape_cast %324 : vector<9x3xf32> to vector<1x9x3xf32>
    %cst_106 = arith.constant dense<0.000000e+00> : vector<1xf32>
    %326 = vector.multi_reduction <add>, %325, %cst_106 [1, 2] : vector<1x9x3xf32> to vector<1xf32>
    %327 = vector.shape_cast %326 : vector<1xf32> to vector<1x1x1xf32>
    %328 = vector.extract %327[0, 0, 0] : f32 from vector<1x1x1xf32>
    %329 = vector.broadcast %328 : f32 to vector<1x1xf32>
    %330 = vector.shape_cast %317 : vector<9x3xf32> to vector<1x9x3xf32>
    %cst_107 = arith.constant dense<0.000000e+00> : vector<1xf32>
    %331 = vector.multi_reduction <add>, %330, %cst_107 [1, 2] : vector<1x9x3xf32> to vector<1xf32>
    %332 = vector.shape_cast %331 : vector<1xf32> to vector<1x1x1xf32>
    %333 = vector.extract %332[0, 0, 0] : f32 from vector<1x1x1xf32>
    %334 = vector.broadcast %333 : f32 to vector<1x1xf32>
    %335 = tpu.concatenate %55, %128, %201, %268, %329 in 1 : vector<1x1xf32>, vector<1x1xf32>, vector<1x1xf32>, vector<1x1xf32>, vector<1x1xf32> -> vector<1x5xf32>
    %c0_108 = arith.constant 0 : index
    %c0_109 = arith.constant 0 : index
    %c0_110 = arith.constant 0 : index
    %336 = vector.load %arg21[%c0_108, %c0_109, %c0_110] : memref<1x1x5xf32, #tpu.memory_space<vmem>>, vector<1x1x5xf32>
    %337 = vector.shape_cast %336 : vector<1x1x5xf32> to vector<1x5xf32>
    %338 = vector.shape_cast %335 : vector<1x5xf32> to vector<1x1x5xf32>
    tpu.vector_store %arg21[%c0_108, %c0_109, %c0_110], %338 {strides = array<i32>} : memref<1x1x5xf32, #tpu.memory_space<vmem>>, vector<1x1x5xf32>,
    %339 = tpu.concatenate %60, %133, %206, %273, %334 in 1 : vector<1x1xf32>, vector<1x1xf32>, vector<1x1xf32>, vector<1x1xf32>, vector<1x1xf32> -> vector<1x5xf32>
    %c0_111 = arith.constant 0 : index
    %c0_112 = arith.constant 0 : index
    %c0_113 = arith.constant 0 : index
    %340 = vector.load %arg22[%c0_111, %c0_112, %c0_113] : memref<1x1x5xf32, #tpu.memory_space<vmem>>, vector<1x1x5xf32>
    %341 = vector.shape_cast %340 : vector<1x1x5xf32> to vector<1x5xf32>
    %342 = vector.shape_cast %339 : vector<1x5xf32> to vector<1x1x5xf32>
    tpu.vector_store %arg22[%c0_111, %c0_112, %c0_113], %342 {strides = array<i32>} : memref<1x1x5xf32, #tpu.memory_space<vmem>>, vector<1x1x5xf32>,
    return
  }
  func.func @transform_0(%arg0: i32) -> (i32, i32) {
    %c0_i32 = arith.constant 0 : i32
    %c0_i32_0 = arith.constant 0 : i32
    return %arg0, %c0_i32 : i32, i32
  }
  func.func @transform_1(%arg0: i32) -> (i32, i32) {
    %c0_i32 = arith.constant 0 : i32
    %c0_i32_0 = arith.constant 0 : i32
    return %arg0, %c0_i32 : i32, i32
  }
  func.func @transform_2(%arg0: i32) -> (i32, i32) {
    %c0_i32 = arith.constant 0 : i32
    %c0_i32_0 = arith.constant 0 : i32
    %c0_i32_1 = arith.constant 0 : i32
    return %c0_i32, %c0_i32_0 : i32, i32
  }
  func.func @transform_3(%arg0: i32) -> (i32, i32) {
    %c0_i32 = arith.constant 0 : i32
    %c0_i32_0 = arith.constant 0 : i32
    %c0_i32_1 = arith.constant 0 : i32
    return %c0_i32, %c0_i32_0 : i32, i32
  }
  func.func @transform_4(%arg0: i32) -> (i32, i32) {
    %c0_i32 = arith.constant 0 : i32
    %c0_i32_0 = arith.constant 0 : i32
    %c0_i32_1 = arith.constant 0 : i32
    return %c0_i32, %c0_i32_0 : i32, i32
  }
  func.func @transform_5(%arg0: i32) -> (i32, i32) {
    %c0_i32 = arith.constant 0 : i32
    %c0_i32_0 = arith.constant 0 : i32
    %c0_i32_1 = arith.constant 0 : i32
    return %c0_i32, %c0_i32_0 : i32, i32
  }
  func.func @transform_6(%arg0: i32) -> (i32, i32) {
    %c0_i32 = arith.constant 0 : i32
    %c0_i32_0 = arith.constant 0 : i32
    %c0_i32_1 = arith.constant 0 : i32
    return %c0_i32, %c0_i32_0 : i32, i32
  }
  func.func @transform_7(%arg0: i32) -> (i32, i32) {
    %c0_i32 = arith.constant 0 : i32
    %c0_i32_0 = arith.constant 0 : i32
    %c0_i32_1 = arith.constant 0 : i32
    return %c0_i32, %c0_i32_0 : i32, i32
  }
  func.func @transform_8(%arg0: i32) -> (i32, i32) {
    %c0_i32 = arith.constant 0 : i32
    %c0_i32_0 = arith.constant 0 : i32
    %c0_i32_1 = arith.constant 0 : i32
    return %c0_i32, %c0_i32_0 : i32, i32
  }
  func.func @transform_9(%arg0: i32) -> (i32, i32) {
    %c0_i32 = arith.constant 0 : i32
    %c0_i32_0 = arith.constant 0 : i32
    %c0_i32_1 = arith.constant 0 : i32
    return %c0_i32, %c0_i32_0 : i32, i32
  }
  func.func @transform_10(%arg0: i32) -> (i32, i32) {
    %c0_i32 = arith.constant 0 : i32
    %c0_i32_0 = arith.constant 0 : i32
    %c0_i32_1 = arith.constant 0 : i32
    return %c0_i32, %c0_i32_0 : i32, i32
  }
  func.func @transform_11(%arg0: i32) -> (i32, i32) {
    %c0_i32 = arith.constant 0 : i32
    %c0_i32_0 = arith.constant 0 : i32
    %c0_i32_1 = arith.constant 0 : i32
    return %c0_i32, %c0_i32_0 : i32, i32
  }
  func.func @transform_12(%arg0: i32) -> (i32, i32) {
    %c0_i32 = arith.constant 0 : i32
    %c0_i32_0 = arith.constant 0 : i32
    %c0_i32_1 = arith.constant 0 : i32
    return %c0_i32, %c0_i32_0 : i32, i32
  }
  func.func @transform_13(%arg0: i32) -> (i32, i32) {
    %c0_i32 = arith.constant 0 : i32
    %c0_i32_0 = arith.constant 0 : i32
    %c0_i32_1 = arith.constant 0 : i32
    return %c0_i32, %c0_i32_0 : i32, i32
  }
  func.func @transform_14(%arg0: i32) -> (i32, i32) {
    %c0_i32 = arith.constant 0 : i32
    %c0_i32_0 = arith.constant 0 : i32
    %c0_i32_1 = arith.constant 0 : i32
    return %c0_i32, %c0_i32_0 : i32, i32
  }
  func.func @transform_15(%arg0: i32) -> (i32, i32) {
    %c0_i32 = arith.constant 0 : i32
    %c0_i32_0 = arith.constant 0 : i32
    %c0_i32_1 = arith.constant 0 : i32
    return %c0_i32, %c0_i32_0 : i32, i32
  }
  func.func @transform_16(%arg0: i32) -> (i32, i32) {
    %c0_i32 = arith.constant 0 : i32
    %c0_i32_0 = arith.constant 0 : i32
    %c0_i32_1 = arith.constant 0 : i32
    return %c0_i32, %c0_i32_0 : i32, i32
  }
  func.func @transform_17(%arg0: i32) -> (i32, i32) {
    %c0_i32 = arith.constant 0 : i32
    %c0_i32_0 = arith.constant 0 : i32
    %c0_i32_1 = arith.constant 0 : i32
    return %c0_i32, %c0_i32_0 : i32, i32
  }
  func.func @transform_18(%arg0: i32) -> (i32, i32) {
    %c0_i32 = arith.constant 0 : i32
    %c0_i32_0 = arith.constant 0 : i32
    %c0_i32_1 = arith.constant 0 : i32
    return %c0_i32, %c0_i32_0 : i32, i32
  }
  func.func @transform_19(%arg0: i32) -> (i32, i32) {
    %c0_i32 = arith.constant 0 : i32
    %c0_i32_0 = arith.constant 0 : i32
    %c0_i32_1 = arith.constant 0 : i32
    return %c0_i32, %c0_i32_0 : i32, i32
  }
  func.func @transform_20(%arg0: i32) -> (i32, i32, i32) {
    %c0_i32 = arith.constant 0 : i32
    %c0_i32_0 = arith.constant 0 : i32
    %c0_i32_1 = arith.constant 0 : i32
    return %arg0, %c0_i32, %c0_i32_0 : i32, i32, i32
  }
  func.func @transform_21(%arg0: i32) -> (i32, i32, i32) {
    %c0_i32 = arith.constant 0 : i32
    %c0_i32_0 = arith.constant 0 : i32
    %c0_i32_1 = arith.constant 0 : i32
    return %arg0, %c0_i32, %c0_i32_0 : i32, i32, i32
  }
}

</mosaic_0001>

<bundles_post_ra>
// kernel: ms_ssim_loss.1
= control target key start
LH: loop header
LB: loop body
LE: loop exit
PB: predicated region body
PF: predicated region fallthrough
CT: control target
= control target key end

     0   :  { %s6833_s0 = inlined_call_operand.vmem [shape: f32[192,32], index: 0, kind: input, shape index: {}]   ;;  %s6834_s1 = inlined_call_operand.vmem [shape: f32[192,32], index: 1, kind: input, shape index: {}]   ;;  %s6835_s2 = inlined_call_operand.vmem [shape: bf16[32,32], index: 2, kind: input, shape index: {}]   ;;  %s6836_s3 = inlined_call_operand.vmem [shape: bf16[128,128], index: 3, kind: input, shape index: {}]   ;;  %s6837_s4 = inlined_call_operand.vmem [shape: bf16[16,16], index: 4, kind: input, shape index: {}]   ;;  %s6838_s5 = inlined_call_operand.vmem [shape: bf16[64,64], index: 5, kind: input, shape index: {}]   ;;  %s6839_s6 = inlined_call_operand.vmem [shape: bf16[9,8], index: 6, kind: input, shape index: {}]   ;;  %s6840_s7 = inlined_call_operand.vmem [shape: bf16[32,36], index: 7, kind: input, shape index: {}]   ;;  %s6841_s8 = inlined_call_operand.vmem [shape: bf16[15,12], index: 8, kind: input, shape index: {}]   ;;  %s6842_s9 = inlined_call_operand.vmem [shape: bf16[16,20], index: 9, kind: input, shape index: {}]   ;;  %s6843_s10 = inlined_call_operand.vmem [shape: bf16[9,6], index: 10, kind: input, shape index: {}]   ;;  %s6844_s11 = inlined_call_operand.vmem [shape: bf16[8,12], index: 11, kind: input, shape index: {}]   ;;  %s6845_s12 = inlined_call_operand.vmem [shape: bf16[16,32], index: 12, kind: input, shape index: {}]   ;;  %s6846_s13 = inlined_call_operand.vmem [shape: bf16[64,32], index: 13, kind: input, shape index: {}]   ;;  %s6847_s14 = inlined_call_operand.vmem [shape: bf16[8,16], index: 14, kind: input, shape index: {}]   ;;  %s6848_s15 = inlined_call_operand.vmem [shape: bf16[32,16], index: 15, kind: input, shape index: {}]   ;;  %s6849_s16 = inlined_call_operand.vmem [shape: bf16[4,8], index: 16, kind: input, shape index: {}]   ;;  %s6850_s17 = inlined_call_operand.vmem [shape: bf16[16,8], index: 17, kind: input, shape index: {}]   ;;  %s6851_s18 = inlined_call_operand.vmem [shape: bf16[6,12], index: 18, kind: input, shape index: {}]   ;;  %s6852_s19 = inlined_call_operand.vmem [shape: bf16[8,4], index: 19, kind: input, shape index: {}]   ;;  %s6853_s20 = inlined_call_operand.vmem [shape: f32[2,1,5], index: 20, kind: output, shape index: {0}]   ;;  %s6854_s21 = inlined_call_operand.vmem [shape: f32[2,1,5], index: 21, kind: output, shape index: {1}]  }
   0x1   :  { %6886 = sst [smem:[#allocation26_spill]] %s6833_s0 }
   0x2   :  { %6887 = sst [smem:[#allocation27_spill]] %s6834_s1 }
   0x3   :  { %6888 = sst [smem:[#allocation28_spill]] %s6835_s2  ;;  %s5230_s2 = smov 0  }
   0x4   :  { %6889 = sst [smem:[#allocation29_spill]] %s6836_s3 }
   0x5   :  { %6890 = sst [smem:[#allocation30_spill]] %s6837_s4 }
   0x6   :  { %6891 = sst [smem:[#allocation31_spill]] %s6838_s5 }
   0x7   :  { %6892 = sst [smem:[#allocation32_spill]] %s6839_s6 }
   0x8   :  { %6893 = sst [smem:[#allocation33_spill]] %s6840_s7 }
   0x9 LB: > { %s5236_s25 = sadd.s32 4294967295, %s5086_s2   ;;  %p4474_p0 = scmp.ge.s32.totalorder %s5086_s2, 1  ;;  %s5086_s2 = sphi %s5230_s2, %s32_s2  }
   0xa   : > { %p602_p1 = scmp.lt.s32.totalorder %s5086_s2, 3 }
   0xc   : > { %p603_p2 = pnand %p4474_p0, %p602_p1 }
   0xe   : > { %606 = sbr.rel (%p603_p2) target bundleno = 4528 (0x11b0), region = 100 }
  0x13   : > { %s668_s26 = smul.u32 12, %s5236_s25  ;;  %s6894_s29 = sld [smem:[#allocation27_spill]]  ;;  %vm857_vm0 = vcmask 261120   ;;  %vm876_vm1 = vcmask 523264   ;;  %vm889_vm2 = vcmask 785408   ;;  %vm5092_vm3 = vmmov 0  }
  0x14   : > { %s6895_s5 = sld [smem:[#allocation26_spill]]  ;;  %s5088_s23 = smov 32   ;;  %vm2237_vm4 = vcmask 392192   ;;  %vm2227_vm5 = vcmask 130048   ;;  %vm3082_vm6 = vcmask 195584   ;;  %vm3095_vm7 = vcmask 1043456  }
  0x15   : > { %p669_p3 = scmp.lt.s32.totalorder %s668_s26, 23  ;;  %s5090_s3 = smov 64   ;;  %vm3075_vm8 = vcmask 64512   ;;  %vm3230_vm9 = vcmask 1040384   ;;  %vm3238_vm10 = vcmask 1041408   ;;  %vm3784_vm11 = vcmask 97280  }
  0x16   : > { %s6860_s4 = smov 112   ;;  %s6858_s30 = smov 48   ;;  %vm3795_vm12 = vcmask 1045504   ;;  %vm3780_vm13 = vcmask 31744   ;;  %vm4141_vm14 = vcmask 48128   ;;  %vm4152_vm15 = vcmask 1042432  }
  0x17   : > { %s6953_s26 = smov (!%p669_p3, %s668_s26), 23  ;;  %s6897_s1 = sld [smem:[#allocation30_spill]] }
  0x18   : > { %s4475_s27 = sshll.u32 %s6953_s26, 3  ;;  %s6896_s26 = sld [smem:[#allocation28_spill]] }
  0x19   : > { %s5244_s0 = scalar_lea.vmem %s6894_s29, %s4475_s27  ;;  %s6898_s29 = sld [smem:[#allocation29_spill]] }
  0x1a   : > { %s5249_s22 = scalar_lea.vmem %s6895_s5, %s4475_s27  ;;  %v701_v0 = vld [vmem:[%s5244_s0 + $0x10] sm:$0xff]  ;;  %v702_v1 = vld [vmem:[%s5244_s0 + $0x18] sm:$0xff]  ;;  %v699_v2 = vld [vmem:[%s5244_s0] sm:$0xff]  ;;  %s5089_s27 = smov 96  }
  0x1b   : > { %v738_v3 = vpack.c.bf16 %v702_v1, %v701_v0  ;;  %v757_v4 = vmul.f32 %v701_v0, %v701_v0  ;;  %v758_v5 = vmul.f32 %v702_v1, %v702_v1  ;;  %v700_v6 = vld [vmem:[%s5244_s0 + $0x8] sm:$0xff]  ;;  %v755_v7 = vmul.f32 %v699_v2, %v699_v2  ;;  %v709_v8 = vld [vmem:[%s5244_s0 + $0x50] sm:$0xff]  ;;  %v710_v9 = vld [vmem:[%s5244_s0 + $0x58] sm:$0xff]  ;;  %s6899_s24 = sld [smem:[#allocation31_spill]]  ;;  %s5100_s28 = smov 12  }
  0x1c   : > { %v737_v10 = vpack.c.bf16 %v700_v6, %v699_v2  ;;  %v756_v11 = vmul.f32 %v700_v6, %v700_v6  ;;  %v742_v12 = vpack.c.bf16 %v710_v9, %v709_v8  ;;  %v5258_v13 = vld [vmem:[%s5249_s22 + $0x10] sm:$0xff]  ;;  %v5261_v14 = vld [vmem:[%s5249_s22 + $0x18] sm:$0xff]  ;;  %v5264_v15 = vld [vmem:[%s5249_s22] sm:$0xff]  ;;  %v765_v16 = vmul.f32 %v709_v8, %v709_v8  ;;  %s6906_s6 = sld [smem:[#allocation32_spill]]  ;;  %s5110_s5 = smov 3  }
  0x1d   : > { %811 = vrot.lane.b32.xlu0 %v738_v3, %s5088_s23  ;;  %v787_v17 = vmul.f32 %v701_v0, %v5258_v13  ;;  %v788_v18 = vmul.f32 %v702_v1, %v5261_v14  ;;  %v745_v19 = vmul.f32 %v5258_v13, %v5258_v13  ;;  %v746_v20 = vmul.f32 %v5261_v14, %v5261_v14  ;;  %v5274_v21 = vld [vmem:[%s5249_s22 + $0x8] sm:$0xff]  ;;  %v5277_v22 = vld [vmem:[%s5249_s22 + $0x50] sm:$0xff]  ;;  %v5280_v23 = vld [vmem:[%s5249_s22 + $0x58] sm:$0xff]  ;;  %s6907_s7 = sld [smem:[#allocation33_spill]]  ;;  %p680_p4 = scmp.lt.s32.totalorder %s5236_s25, 1 }
  0x1e   : > { %809 = vrot.lane.b32.xlu1 %v737_v10, %s5088_s23  ;;  %v785_v24 = vmul.f32 %v699_v2, %v5264_v15  ;;  %v786_v25 = vmul.f32 %v700_v6, %v5274_v21  ;;  %v753_v26 = vmul.f32 %v5277_v22, %v5277_v22  ;;  %v754_v27 = vmul.f32 %v5280_v23, %v5280_v23  ;;  %v707_v34 = vld [vmem:[%s5244_s0 + $0x40] sm:$0xff]  ;;  %v708_v35 = vld [vmem:[%s5244_s0 + $0x48] sm:$0xff]  ;;  %v5333_v63 = vld [vmem:[%s5244_s0 + $0x30] sm:$0xff] }
  0x1f   : > { %v798_v28 = vpack.c.bf16 %v788_v18, %v787_v17  ;;  %v769_v29 = vadd.f32 %v757_v4, %v745_v19  ;;  %v770_v30 = vadd.f32 %v758_v5, %v746_v20  ;;  %v766_v31 = vmul.f32 %v710_v9, %v710_v9  ;;  %v5296_v36 = vld [vmem:[%s5249_s22 + $0x40] sm:$0xff]  ;;  %v5305_v40 = vld [vmem:[%s5249_s22 + $0x48] sm:$0xff]  ;;  %v5336_v0 = vld [vmem:[%s5244_s0 + $0x38] sm:$0xff]  ;;  %s6955_s25 = smov (!%p680_p4, %s5236_s25), 1 }
  0x20   : > { %v743_v32 = vmul.f32 %v5264_v15, %v5264_v15  ;;  %v744_v33 = vmul.f32 %v5274_v21, %v5274_v21  ;;  %v5301_v37 = vld [vmem:[%s6896_s26] sm:$0xff]   ;;  %v797_v39 = vpack.c.bf16 %v786_v25, %v785_v24  ;;  %v777_v41 = vadd.f32 %v765_v16, %v753_v26  ;;  %v5344_v4 = vld [vmem:[%s5244_s0 + $0x28] sm:$0xff] }
  0x21   : > { %819 = vrot.lane.b32.xlu0 %v742_v12, %s5088_s23  ;;  %v780_v38 = vpack.c.bf16 %v770_v30, %v769_v29  ;;  %v778_v42 = vadd.f32 %v766_v31, %v754_v27  ;;  %4645 = vmatprep.mubr.msk.bf16.mxu0 %vm857_vm0, %v5301_v37  ;;  %v795_v45 = vmul.f32 %v709_v8, %v5277_v22  ;;  %v5341_v3 = vld [vmem:[%s5244_s0 + $0x20] sm:$0xff]  ;;  %s5108_s0 = smov 5  }
  0x22   : > { %847 = vrot.lane.b32.xlu1 %v798_v28, %s5089_s27  ;;  %v767_v43 = vadd.f32 %v755_v7, %v743_v32  ;;  %v768_v44 = vadd.f32 %v756_v11, %v744_v33  ;;  %v796_v46 = vmul.f32 %v710_v9, %v5280_v23  ;;  %v751_v47 = vmul.f32 %v5296_v36, %v5296_v36  ;;  %v5377_v33 = vld [vmem:[%s5249_s22 + $0x30] sm:$0xff] }
  0x23   : > { %v752_v48 = vmul.f32 %v5305_v40, %v5305_v40  ;;  %4653 = vmatprep.mubr.msk.bf16.mxu1 %vm857_vm0, %v5301_v37  ;;  %v763_v50 = vmul.f32 %v707_v34, %v707_v34  ;;  %v764_v51 = vmul.f32 %v708_v35, %v708_v35  ;;  %v732_v52 = vpack.c.bf16 %v5261_v14, %v5258_v13 }
  0x24   : > { %v779_v49 = vpack.c.bf16 %v768_v44, %v767_v43  ;;  %v784_v53 = vpack.c.bf16 %v778_v42, %v777_v41  ;;  %v731_v54 = vpack.c.bf16 %v5274_v21, %v5264_v15  ;;  %v736_v55 = vpack.c.bf16 %v5280_v23, %v5277_v22  ;;  %v5364_v22 = vld [vmem:[%s6896_s26 + $0x8] sm:$0xff]   ;;  %v4950_v44 = vld [vmem:[%s6846_s13 + $0x18] sm:$0xff]  }
  0x25   : > { %829 = vrot.lane.b32.xlu0 %v780_v38, %s5090_s3  ;;  %v735_v56 = vpack.c.bf16 %v5305_v40, %v5296_v36  ;;  %v802_v57 = vpack.c.bf16 %v796_v46, %v795_v45  ;;  %v775_v58 = vadd.f32 %v763_v50, %v751_v47  ;;  %v776_v59 = vadd.f32 %v764_v51, %v752_v48  ;;  %v5393_v38 = vld [vmem:[%s5249_s22 + $0x28] sm:$0xff]  ;;  %v4951_v45 = vld [vmem:[%s6846_s13 + $0x10] sm:$0xff]   ;;  %v4953_v47 = vld [vmem:[%s6846_s13] sm:$0xff]  }
  0x26   : > { %845 = vrot.lane.b32.xlu1 %v797_v39, %s5089_s27  ;;  %v741_v60 = vpack.c.bf16 %v708_v35, %v707_v34  ;;  %v793_v61 = vmul.f32 %v707_v34, %v5296_v36  ;;  %v794_v62 = vmul.f32 %v708_v35, %v5305_v40  ;;  %v740_v5 = vpack.c.bf16 %v5336_v0, %v5333_v63  ;;  %v5380_v34 = vld [vmem:[%s5249_s22 + $0x38] sm:$0xff]  ;;  %v4949_v39 = vld [vmem:[%s6845_s12] sm:$0xff]   ;;  %v4952_v46 = vld [vmem:[%s6846_s13 + $0x8] sm:$0xff]  }
  0x27   : > { %v783_v1 = vpack.c.bf16 %v776_v59, %v775_v58  ;;  %v739_v6 = vpack.c.bf16 %v5344_v4, %v5341_v3  ;;  %v5091_v32 = vmov 0.0   ;;  %v734_v35 = vpack.c.bf16 %v5380_v34, %v5377_v33 }
  0x28   : > { %v801_v2 = vpack.c.bf16 %v794_v62, %v793_v61 }
  0x29   : > { %827 = vrot.lane.b32.xlu0 %v779_v49, %s5090_s3 }
  0x2a   : > { %837 = vrot.lane.b32.xlu1 %v784_v53, %s5090_s3 }
  0x2d   : > { %855 = vrot.lane.b32.xlu0 %v802_v57, %s5089_s27 }
  0x2e   : > { %817 = vrot.lane.b32.xlu1 %v741_v60, %s5088_s23 }
  0x31   : > { %835 = vrot.lane.b32.xlu0 %v783_v1, %s5090_s3 }
  0x32   : > { %853 = vrot.lane.b32.xlu1 %v801_v2, %s5089_s27 }
  0x35   : > { %815 = vrot.lane.b32.xlu0 %v740_v5, %s5088_s23 }
  0x36   : > { %813 = vrot.lane.b32.xlu1 %v739_v6, %s5088_s23 }
  0x8f   : > { %v812_v7 = vpop.permute.xlu0 %811 }
  0x90   : > { %v810_v8 = vpop.permute.xlu1 %809  ;;  %v863_v11 = vsel %vm857_vm0, %v732_v52, %v812_v7 }
  0x91   : > { %v860_v16 = vsel %vm857_vm0, %v731_v54, %v810_v8 }
  0x93   : > { %v820_v9 = vpop.permute.xlu0 %819 }
  0x94   : > { %v848_v10 = vpop.permute.xlu1 %847  ;;  %v875_v21 = vsel %vm857_vm0, %v736_v55, %v820_v9 }
  0x97   : > { %v830_v12 = vpop.permute.xlu0 %829 }
  0x98   : > { %v880_v13 = vsel %vm876_vm1, %v863_v11, %v830_v12  ;;  %v846_v14 = vpop.permute.xlu1 %845 }
  0x99   : > { %v894_v15 = vsel %vm889_vm2, %v880_v13, %v848_v10 }
  0x9a   : > { %4641 = vmatprep.subr.bf16.mxu0 %v894_v15 }
  0x9b   : > { %4642 = vmatpush3.bf16.msra.mxu0 %v894_v15  ;;  %v828_v17 = vpop.permute.xlu0 %827 }
  0x9c   : > { %v838_v18 = vpop.permute.xlu1 %837  ;;  %v878_v19 = vsel %vm876_vm1, %v860_v16, %v828_v17 }
  0x9d   : > { %v891_v20 = vsel %vm889_vm2, %v878_v19, %v846_v14  ;;  %v888_v23 = vsel %vm876_vm1, %v875_v21, %v838_v18 }
  0x9e   : > { %4643 = vmatprep.subr.bf16.mxu0 %v891_v20 }
  0x9f   : > { %v856_v24 = vpop.permute.xlu0 %855  ;;  %4644 = vmatpush3.bf16.msra.mxu0 %v891_v20 }
  0xa0   : > { %v818_v25 = vpop.permute.xlu1 %817  ;;  %v906_v26 = vsel %vm889_vm2, %v888_v23, %v856_v24 }
  0xa1   : > { %4657 = vmatprep.subr.bf16.mxu0 %v906_v26  ;;  %v872_v27 = vsel %vm857_vm0, %v735_v56, %v818_v25 }
  0xa2   : > { %4646 = vmatmul.mubr.msk.bf16.vlgmr.msra.gmra.mxu0 %vm857_vm0, %v5364_v22 }
  0xa3   : > { %v836_v28 = vpop.permute.xlu0 %835  ;;  %4658 = vmatpush3.bf16.msra.mxu0 %v906_v26  ;;  %4661 = vmatprep.mubr.msk.bf16.mxu0 %vm857_vm0, %v5301_v37  ;;  %v5390_v37 = vld [vmem:[%s5249_s22 + $0x20] sm:$0xff]  ;;  %s5101_s22 = smov 126  }
  0xa4   : > { %v886_v29 = vsel %vm876_vm1, %v872_v27, %v836_v28  ;;  %v854_v30 = vpop.permute.xlu1 %853  ;;  %v733_v41 = vpack.c.bf16 %v5393_v38, %v5390_v37 }
  0xa5   : > { %v903_v31 = vsel %vm889_vm2, %v886_v29, %v854_v30 }
  0xa6   : > { %4659 = vmatprep.subr.bf16.mxu0 %v903_v31 }
  0xa7   : > { %4660 = vmatpush3.bf16.msra.mxu0 %v903_v31  ;;  %v816_v36 = vpop.permute.xlu0 %815  ;;  %v749_v31 = vmul.f32 %v5377_v33, %v5377_v33 }
  0xa8   : > { %4693 = vmatprep.subr.bf16.mxu0 %v5091_v32  ;;  %v5399_v40 = vsel %vm857_vm0, %v734_v35, %v816_v36  ;;  %v814_v42 = vpop.permute.xlu1 %813  ;;  %v750_v35 = vmul.f32 %v5380_v34, %v5380_v34  ;;  %v761_v36 = vmul.f32 %v5333_v63, %v5333_v63 }
  0xa9   : > { %v5409_v43 = vsel %vm857_vm0, %v733_v41, %v814_v42 }
  0xaa   : > { %4662 = vmatmul.mubr.msk.bf16.vlgmr.msra.gmra.mxu0 %vm857_vm0, %v5364_v22  ;;  %v773_v42 = vadd.f32 %v761_v36, %v749_v31 }
  0xab   : > { %4694 = vmatpush3.bf16.msra.mxu0 %v863_v11  ;;  %4697 = vmatprep.mubr.msk.bf16.mxu0 %vm5092_vm3, %v5091_v32 }
  0xac   : > { %4695 = vmatprep.subr.bf16.mxu0 %v5091_v32 }
  0xaf   : > { %4696 = vmatpush3.bf16.msra.mxu0 %v860_v16 }
  0xb0   : > { %4701 = vmatprep.subr.bf16.mxu0 %v5091_v32 }
  0xb2   : > { %4698 = vmatmul.mubr.msk.bf16.vlgmr.msra.gmra.mxu0 %vm857_vm0, %v4949_v39 }
  0xb3   : > { %4702 = vmatpush3.bf16.msra.mxu0 %v5399_v40  ;;  %4705 = vmatprep.mubr.msk.bf16.mxu0 %vm5092_vm3, %v5091_v32 }
  0xb4   : > { %4703 = vmatprep.subr.bf16.mxu0 %v5091_v32 }
  0xb7   : > { %4704 = vmatpush3.bf16.msra.mxu0 %v5409_v43 }
  0xb8   : > { %4709 = vmatprep.subr.bf16.mxu0 %v5091_v32 }
  0xba   : > { %4706 = vmatmul.mubr.msk.bf16.vlgmr.msra.gmra.mxu0 %vm857_vm0, %v4949_v39 }
  0xbb   : > { %4710 = vmatpush3.bf16.msra.mxu0 %v875_v21  ;;  %4713 = vmatprep.mubr.msk.bf16.mxu0 %vm5092_vm3, %v5091_v32 }
  0xbc   : > { %4711 = vmatprep.subr.bf16.mxu0 %v5091_v32 }
  0xbf   : > { %4712 = vmatpush3.bf16.msra.mxu0 %v872_v27 }
  0xc0   : > { %4717 = vmatprep.subr.bf16.mxu0 %v5091_v32 }
  0xc2   : > { %4714 = vmatmul.mubr.msk.bf16.vlgmr.msra.gmra.mxu0 %vm857_vm0, %v4949_v39  ;;  %v762_v39 = vmul.f32 %v5336_v0, %v5336_v0 }
  0xc3   : > { %4725 = vmatprep.mubr.msk.bf16.mxu0 %vm5092_vm3, %v5091_v32  ;;  %4718 = vmatpush3.bf16.msra.mxu0 %v4950_v44 }
  0xc4   : > { %4719 = vmatprep.subr.bf16.mxu0 %v5091_v32  ;;  %v774_v44 = vadd.f32 %v762_v39, %v750_v35 }
  0xc7   : > { %4720 = vmatpush3.bf16.msra.mxu0 %v4951_v45  ;;  %v747_v45 = vmul.f32 %v5390_v37, %v5390_v37 }
  0xc8   : > { %4721 = vmatprep.subr.bf16.mxu0 %v5091_v32 }
  0xcb   : > { %4722 = vmatpush3.bf16.msra.mxu0 %v4952_v46  ;;  %v748_v46 = vmul.f32 %v5393_v38, %v5393_v38 }
  0xcc   : > { %4723 = vmatprep.subr.bf16.mxu0 %v5091_v32 }
  0xcf   : > { %4724 = vmatpush3.bf16.msra.mxu0 %v4953_v47 }
  0xd0   : > { %4749 = vmatprep.subr.bf16.mxu0 %v5091_v32 }
 0x162   : > { %v5438_v48 = vpop.f32.mrf.mxu0 }
 0x164   : > { %v5440_v49 = vpop.f32.mrf.mxu0 }
 0x166   : > { %v5442_v50 = vpop.f32.mrf.mxu0 }
 0x167   : > { %v1072_v51 = vpack.c.bf16 %v5442_v50, %v5438_v48 }
 0x168   : > { %v5446_v52 = vpop.f32.mrf.mxu0 }
 0x169   : > { %v1071_v53 = vpack.c.bf16 %v5446_v52, %v5440_v49 }
 0x16a   : > { %v5450_v54 = vpop.f32.mrf.mxu0 }
 0x16c   : > { %v5452_v55 = vpop.f32.mrf.mxu0 }
 0x16e   : > { %v5454_v56 = vpop.f32.mrf.mxu0 }
 0x16f   : > { %v1076_v57 = vpack.c.bf16 %v5454_v56, %v5450_v54  ;;  %v4965_v54 = vld [vmem:[%s6899_s24 + $0x18] sm:$0xff]   ;;  %v4966_v56 = vld [vmem:[%s6899_s24 + $0x10] sm:$0xff]  }
 0x170   : > { %v5458_v58 = vpop.f32.mrf.mxu0 }
 0x171   : > { %v1075_v59 = vpack.c.bf16 %v5458_v58, %v5452_v55 }
 0x172   : > { %v1942_v60 = vpop.f32.mrf.mxu0 }
 0x174   : > { %v4699_v61 = vpop.f32.mrf.mxu0 }
 0x175   : > { %v759_v61 = vmul.f32 %v5341_v3, %v5341_v3 }
 0x176   : > { %v1945_v62 = vpop.f32.mrf.mxu0 }
 0x177   : > { %v2031_v1 = vpack.c.bf16 %v1945_v62, %v1942_v60  ;;  %v760_v62 = vmul.f32 %v5344_v4, %v5344_v4 }
 0x178   : > { %v4700_v2 = vpop.f32.mrf.mxu0 }
 0x179   : > { %4726 = vmatmul.mubr.msk.bf16.vlgmr.msra.gmra.mxu0 %vm876_vm1, %v2031_v1 }
 0x17a   : > { %v1983_v5 = vpop.f32.mrf.mxu0  ;;  %4729 = vmatprep.mubr.msk.bf16.mxu0 %vm5092_vm3, %v5091_v32 }
 0x17c   : > { %v4707_v6 = vpop.f32.mrf.mxu0 }
 0x17d   : > { %v782_v6 = vpack.c.bf16 %v774_v44, %v773_v42  ;;  %v2819_v42 = vld [vmem:[%s6847_s14] sm:$0xf] }
 0x17e   : > { %v1986_v7 = vpop.f32.mrf.mxu0 }
 0x17f   : > { %v2032_v8 = vpack.c.bf16 %v1986_v7, %v1983_v5  ;;  %v791_v7 = vmul.f32 %v5333_v63, %v5377_v33  ;;  %v789_v63 = vmul.f32 %v5341_v3, %v5390_v37 }
 0x180   : > { %v4708_v9 = vpop.f32.mrf.mxu0 }
 0x181   : > { %4730 = vmatmul.mubr.msk.bf16.gmra.mxu0 %vm876_vm1, %v2032_v8  ;;  %v792_v8 = vmul.f32 %v5336_v0, %v5380_v34  ;;  %v790_v0 = vmul.f32 %v5344_v4, %v5393_v38 }
 0x182   : > { %v2024_v10 = vpop.f32.mrf.mxu0  ;;  %4733 = vmatprep.mubr.msk.bf16.mxu0 %vm5092_vm3, %v5091_v32 }
 0x183   : > { %v799_v33 = vpack.c.bf16 %v790_v0, %v789_v63 }
 0x184   : > { %v4715_v11 = vpop.f32.mrf.mxu0 }
 0x185   : > { %v771_v11 = vadd.f32 %v759_v61, %v747_v45 }
 0x186   : > { %v2027_v12 = vpop.f32.mrf.mxu0 }
 0x187   : > { %v2033_v13 = vpack.c.bf16 %v2027_v12, %v2024_v10  ;;  %v772_v12 = vadd.f32 %v760_v62, %v748_v46  ;;  %v4956_v46 = vld [vmem:[%s6898_s29 + $0x30] sm:$0xff]  }
 0x188   : > { %v4716_v14 = vpop.f32.mrf.mxu0 }
 0x189   : > { %4734 = vmatmul.mubr.msk.bf16.gmra.mxu0 %vm876_vm1, %v2033_v13  ;;  %v800_v14 = vpack.c.bf16 %v792_v8, %v791_v7 }
 0x18a   : > { %4751 = vmatprep.mubr.msk.bf16.mxu0 %vm5092_vm3, %v5091_v32 }
 0x239   : > { %v5471_v15 = vpop.f32.mrf.mxu0 }
 0x23a   : > { %v2137_v34 = vmul.f32 %v5471_v15, %v5471_v15 }
 0x23b   : > { %v4727_v16 = vpop.f32.mrf.mxu0 }
 0x23c   : > { %v781_v16 = vpack.c.bf16 %v772_v12, %v771_v11 }
 0x23d   : > { %v5473_v17 = vpop.f32.mrf.mxu0 }
 0x23f   : > { %v4728_v18 = vpop.f32.mrf.mxu0 }
 0x240   : > { %v2138_v18 = vmul.f32 %v5473_v17, %v5473_v17 }
 0x241   : > { %v5475_v19 = vpop.f32.mrf.mxu0 }
 0x242   : > { %v5523_v3 = vmul.f32 %v5475_v19, %v5475_v19 }
 0x243   : > { %v4731_v20 = vpop.f32.mrf.mxu0 }
 0x245   : > { %v5477_v21 = vpop.f32.mrf.mxu0 }
 0x246   : > { %v2140_v4 = vmul.f32 %v5477_v21, %v5477_v21  ;;  %v5568_v44 = vpack.c.bf16 %v5477_v21, %v5475_v19 }
 0x247   : > { %v4732_v23 = vpop.f32.mrf.mxu0 }
 0x249   : > { %v2117_v24 = vpop.f32.mrf.mxu0 }
 0x24a   : > { %v2141_v25 = vmul.f32 %v2117_v24, %v2117_v24 }
 0x24b   : > { %v4735_v26 = vpop.f32.mrf.mxu0 }
 0x24c   : > { %2157 = vrot.lane.b32.xlu0 %v2141_v25, %s6860_s4 }
 0x24d   : > { %v2120_v27 = vpop.f32.mrf.mxu0 }
 0x24e   : > { %v2142_v28 = vmul.f32 %v2120_v27, %v2120_v27  ;;  %v2136_v38 = vpack.c.bf16 %v2120_v27, %v2117_v24 }
 0x24f   : > { %v4736_v29 = vpop.f32.mrf.mxu0 }
 0x250   : > { %2190 = vrot.lane.b32.xlu0 %v2117_v24, %s6860_s4  ;;  %2159 = vrot.lane.b32.xlu1 %v2142_v28, %s6860_s4  ;;  %v5546_v29 = vpack.c.bf16 %v5473_v17, %v5471_v15 }
 0x254   : > { %2192 = vrot.lane.b32.xlu1 %v2120_v27, %s6860_s4 }
 0x2be   : > { %v2158_v30 = vpop.permute.xlu0 %2157 }
 0x2bf   : > { %v2171_v47 = vadd.f32 %v2158_v30, %v2141_v25 }
 0x2c2   : > { %v2160_v41 = vpop.permute.xlu1 %2159  ;;  %v2191_v1 = vpop.permute.xlu0 %2190 }
 0x2c3   : > { %v2172_v60 = vadd.f32 %v2160_v41, %v2142_v28  ;;  %v2204_v9 = vmul.f32 %v2191_v1, %v2117_v24  ;;  %v5541_v28 = vld [vmem:[%s6897_s1] sm:$0xff]   ;;  %s5097_s1 = smov 24  }
 0x2c5   : > { %v2175_v2 = vpack.c.bf16 %v2172_v60, %v2171_v47 }
 0x2c6   : > { %v2193_v5 = vpop.permute.xlu1 %2192 }
 0x2c7   : > { %v2205_v10 = vmul.f32 %v2193_v5, %v2120_v27  ;;  %2216 = vrot.lane.b32.xlu0 %v2175_v2, %s5088_s23  ;;  %v4957_v2 = vld [vmem:[%s6898_s29 + $0x28] sm:$0xff]  }
 0x2c9   : > { %v2208_v13 = vpack.c.bf16 %v2205_v10, %v2204_v9  ;;  %v4959_v9 = vld [vmem:[%s6898_s29 + $0x18] sm:$0xff]  }
 0x2cb   : > { %833 = vrot.lane.b32.xlu0 %v782_v6, %s5090_s3  ;;  %2225 = vrot.lane.b32.xlu1 %v2208_v13, %s6858_s30  ;;  %v4960_v13 = vld [vmem:[%s6898_s29 + $0x10] sm:$0xff]  }
 0x2cf   : > { %831 = vrot.lane.b32.xlu0 %v781_v16, %s5090_s3  ;;  %851 = vrot.lane.b32.xlu1 %v800_v14, %s5089_s27  ;;  %v4963_v14 = vld [vmem:[%s6848_s15 + $0x8] sm:$0xff]   ;;  %v4964_v16 = vld [vmem:[%s6848_s15] sm:$0xff]  }
 0x2d3   : > { %2149 = vrot.lane.b32.xlu0 %v2137_v34, %s6860_s4  ;;  %849 = vrot.lane.b32.xlu1 %v799_v33, %s5089_s27 }
 0x2d7   : > { %2182 = vrot.lane.b32.xlu0 %v5471_v15, %s6860_s4  ;;  %2151 = vrot.lane.b32.xlu1 %v2138_v18, %s6860_s4 }
 0x2db   : > { %2153 = vrot.lane.b32.xlu0 %v5523_v3, %s6860_s4  ;;  %2184 = vrot.lane.b32.xlu1 %v5473_v17, %s6860_s4 }
 0x2df   : > { %2186 = vrot.lane.b32.xlu0 %v5475_v19, %s6860_s4  ;;  %2155 = vrot.lane.b32.xlu1 %v2140_v4, %s6860_s4 }
 0x2e3   : > { %2188 = vrot.lane.b32.xlu1 %v5477_v21, %s6860_s4  ;;  %s5095_s4 = smov 120  }
 0x339   : > { %v2217_v37 = vpop.permute.xlu0 %2216 }
 0x33a   : > { %v2236_v20 = vsel %vm857_vm0, %v2136_v38, %v2217_v37 }
 0x33d   : > { %v834_v23 = vpop.permute.xlu0 %833  ;;  %v2226_v25 = vpop.permute.xlu1 %2225 }
 0x33e   : > { %v2245_v26 = vsel %vm2237_vm4, %v2236_v20, %v2226_v25  ;;  %v884_v24 = vsel %vm876_vm1, %v5399_v40, %v834_v23  ;;  %v4955_v40 = vld [vmem:[%s6898_s29 + $0x38] sm:$0xff]  }
 0x33f   : > { %4750 = vmatpush3.bf16.msra.mxu0 %v2245_v26 }
 0x340   : > { %4775 = vmatprep.subr.bf16.mxu0 %v5091_v32 }
 0x341   : > { %v832_v27 = vpop.permute.xlu0 %831  ;;  %v852_v30 = vpop.permute.xlu1 %851 }
 0x342   : > { %4752 = vmatmul.mubr.msk.bf16.vlgmr.msra.gmra.mxu0 %vm2227_vm5, %v5541_v28  ;;  %v900_v31 = vsel %vm889_vm2, %v884_v24, %v852_v30  ;;  %v882_v35 = vsel %vm876_vm1, %v5409_v43, %v832_v27 }
 0x343   : > { %4649 = vmatprep.subr.bf16.mxu1 %v900_v31  ;;  %4776 = vmatpush3.bf16.msra.mxu0 %v5546_v29 }
 0x344   : > { %4650 = vmatpush3.bf16.msra.mxu1 %v900_v31  ;;  %4777 = vmatprep.mubr.msk.bf16.mxu0 %vm5092_vm3, %v5091_v32 }
 0x345   : > { %v2150_v36 = vpop.permute.xlu0 %2149  ;;  %v850_v39 = vpop.permute.xlu1 %849  ;;  %4781 = vmatprep.subr.bf16.mxu0 %v5091_v32 }
 0x346   : > { %v897_v41 = vsel %vm889_vm2, %v882_v35, %v850_v39  ;;  %v2167_v47 = vadd.f32 %v2150_v36, %v2137_v34  ;;  %vm3984_vm2 = vcmask 39936  }
 0x347   : > { %4651 = vmatprep.subr.bf16.mxu1 %v897_v41 }
 0x348   : > { %4652 = vmatpush3.bf16.msra.mxu1 %v897_v41 }
 0x349   : > { %v2183_v43 = vpop.permute.xlu0 %2182  ;;  %v2152_v45 = vpop.permute.xlu1 %2151  ;;  %4665 = vmatprep.subr.bf16.mxu1 %v4955_v40 }
 0x34a   : > { %v2168_v60 = vadd.f32 %v2152_v45, %v2138_v18  ;;  %4778 = vmatmul.mubr.msk.bf16.vlgmr.msra.gmra.mxu0 %vm2227_vm5, %v2819_v42  ;;  %v2200_v5 = vmul.f32 %v2183_v43, %v5471_v15 }
 0x34b   : > { %4782 = vmatpush3.bf16.msra.mxu0 %v5568_v44  ;;  %4654 = vmatmul.mubr.msk.bf16.vlgmr.msra.gmra.mxu1 %vm857_vm0, %v5364_v22 }
 0x34c   : > { %v2173_v61 = vpack.c.bf16 %v2168_v60, %v2167_v47  ;;  %4666 = vmatpush3.bf16.msra.mxu1 %v4955_v40  ;;  %4681 = vmatprep.mubr.bf16.mxu1 %v1071_v53  ;;  %v4958_v53 = vld [vmem:[%s6898_s29 + $0x20] sm:$0xff]  }
 0x34d   : > { %v2154_v62 = vpop.permute.xlu0 %2153  ;;  %v2185_v1 = vpop.permute.xlu1 %2184  ;;  %4667 = vmatprep.subr.bf16.mxu1 %v4956_v46  ;;  %4783 = vmatprep.mubr.msk.bf16.mxu0 %vm5092_vm3, %v5091_v32 }
 0x34e   : > { %v2201_v22 = vmul.f32 %v2185_v1, %v5473_v17  ;;  %2212 = vrot.lane.b32.xlu0 %v2173_v61, %s5088_s23  ;;  %4787 = vmatprep.subr.bf16.mxu0 %v5091_v32  ;;  %v2169_v6 = vadd.f32 %v2154_v62, %v5523_v3 }
 0x350   : > { %v2206_v49 = vpack.c.bf16 %v2201_v22, %v2200_v5  ;;  %4668 = vmatpush3.bf16.msra.mxu1 %v4956_v46 }
 0x351   : > { %v2156_v52 = vpop.permute.xlu1 %2155  ;;  %4669 = vmatprep.subr.bf16.mxu1 %v4957_v2  ;;  %v2187_v15 = vpop.permute.xlu0 %2186 }
 0x352   : > { %v2170_v7 = vadd.f32 %v2156_v52, %v2140_v4  ;;  %2221 = vrot.lane.b32.xlu1 %v2206_v49, %s6858_s30  ;;  %4784 = vmatmul.mubr.msk.bf16.vlgmr.msra.gmra.mxu0 %vm2227_vm5, %v2819_v42  ;;  %v2202_v10 = vmul.f32 %v2187_v15, %v5475_v19  ;;  %v4961_v19 = vld [vmem:[%s6898_s29 + $0x8] sm:$0xff]  }
 0x353   : > { %4788 = vmatpush3.bf16.msra.mxu0 %v2136_v38  ;;  %4789 = vmatprep.mubr.msk.bf16.mxu0 %vm5092_vm3, %v5091_v32 }
 0x354   : > { %v2174_v17 = vpack.c.bf16 %v2170_v7, %v2169_v6  ;;  %4670 = vmatpush3.bf16.msra.mxu1 %v4957_v2  ;;  %4793 = vmatprep.subr.bf16.mxu0 %v4963_v14 }
 0x355   : > { %v2189_v8 = vpop.permute.xlu1 %2188  ;;  %4671 = vmatprep.subr.bf16.mxu1 %v4958_v53 }
 0x356   : > { %v2203_v11 = vmul.f32 %v2189_v8, %v5477_v21  ;;  %2214 = vrot.lane.b32.xlu0 %v2174_v17, %s5088_s23  ;;  %v4962_v21 = vld [vmem:[%s6898_s29] sm:$0xff]  }
 0x358   : > { %v2207_v12 = vpack.c.bf16 %v2203_v11, %v2202_v10  ;;  %4672 = vmatpush3.bf16.msra.mxu1 %v4958_v53 }
 0x359   : > { %4673 = vmatprep.subr.bf16.mxu1 %v4959_v9 }
 0x35a   : > { %2223 = vrot.lane.b32.xlu1 %v2207_v12, %s6858_s30  ;;  %4790 = vmatmul.mubr.msk.bf16.vlgmr.msra.gmra.mxu0 %vm2227_vm5, %v2819_v42  ;;  %s5096_s30 = smov 16  }
 0x35b   : > { %4794 = vmatpush3.bf16.msra.mxu0 %v4963_v14 }
 0x35c   : > { %4674 = vmatpush3.bf16.msra.mxu1 %v4959_v9  ;;  %4795 = vmatprep.subr.bf16.mxu0 %v4964_v16 }
 0x35d   : > { %4675 = vmatprep.subr.bf16.mxu1 %v4960_v13 }
 0x35f   : > { %4796 = vmatpush3.bf16.msra.mxu0 %v4964_v16 }
 0x360   : > { %4676 = vmatpush3.bf16.msra.mxu1 %v4960_v13  ;;  %4807 = vmatprep.subr.bf16.mxu0 %v5091_v32 }
 0x361   : > { %4677 = vmatprep.subr.bf16.mxu1 %v4961_v19 }
 0x364   : > { %4678 = vmatpush3.bf16.msra.mxu1 %v4961_v19 }
 0x365   : > { %4679 = vmatprep.subr.bf16.mxu1 %v4962_v21 }
 0x368   : > { %4680 = vmatpush3.bf16.msra.mxu1 %v4962_v21 }
 0x369   : > { %4737 = vmatprep.subr.bf16.mxu1 %v5091_v32 }
 0x36b   : > { %4682 = vmatmul.mubr.bf16.vlgmr.msra.gmra.mxu1 %v1072_v51 }
 0x3c0   : > { %v2213_v63 = vpop.permute.xlu0 %2212 }
 0x3c1   : > { %v2232_v0 = vsel %vm857_vm0, %v5546_v29, %v2213_v63 }
 0x3c4   : > { %v2222_v48 = vpop.permute.xlu1 %2221 }
 0x3c5   : > { %v2239_v50 = vsel %vm2237_vm4, %v2232_v0, %v2222_v48 }
 0x3c6   : > { %4738 = vmatpush3.bf16.msra.mxu1 %v2239_v50 }
 0x3c7   : > { %4743 = vmatprep.subr.bf16.mxu1 %v5091_v32 }
 0x3c8   : > { %v2215_v58 = vpop.permute.xlu0 %2214 }
 0x3c9   : > { %v2234_v45 = vsel %vm857_vm0, %v5568_v44, %v2215_v58 }
 0x402   : > { %v5629_v51 = vpop.f32.mrf.mxu0 }
 0x404   : > { %v4753_v33 = vpop.f32.mrf.mxu0 }
 0x406   : > { %v5631_v34 = vpop.f32.mrf.mxu0 }
 0x407   : > { %v2380_v18 = vpack.c.bf16 %v5631_v34, %v5629_v51 }
 0x408   : > { %v4754_v3 = vpop.f32.mrf.mxu0 }
 0x40a   : > { %v2864_v4 = vpop.f32.mrf.mxu0 }
 0x40b   : > { %v4655_v37 = vpop.f32.mrf.mxu1 }
 0x40c   : > { %v4779_v38 = vpop.f32.mrf.mxu0 }
 0x40d   : > { %v1007_v20 = vpop.f32.mrf.mxu1 }
 0x40e   : > { %v2867_v23 = vpop.f32.mrf.mxu0 }
 0x40f   : > { %v4656_v25 = vpop.f32.mrf.mxu1 }
 0x410   : > { %v4780_v26 = vpop.f32.mrf.mxu0  ;;  %v1074_v29 = vpack.c.bf16 %v4656_v25, %v4655_v37 }
 0x411   : > { %v1010_v24 = vpop.f32.mrf.mxu1 }
 0x412   : > { %v1073_v27 = vpack.c.bf16 %v1010_v24, %v1007_v20  ;;  %v2904_v30 = vpop.f32.mrf.mxu0 }
 0x413   : > { %v2950_v31 = vpack.c.bf16 %v2904_v30, %v2864_v4 }
 0x414   : > { %4685 = vmatprep.mubr.bf16.mxu1 %v1073_v27  ;;  %v4785_v35 = vpop.f32.mrf.mxu0 }
 0x415   : > { %4686 = vmatmul.mubr.bf16.gmra.mxu1 %v1074_v29  ;;  %4797 = vmatprep.mubr.msk.bf16.mxu0 %vm857_vm0, %v2950_v31 }
 0x416   : > { %4689 = vmatprep.mubr.bf16.mxu1 %v1075_v59  ;;  %v2907_v36 = vpop.f32.mrf.mxu0  ;;  %v2224_v59 = vpop.permute.xlu1 %2223 }
 0x417   : > { %v2242_v46 = vsel %vm2237_vm4, %v2234_v45, %v2224_v59  ;;  %vm4338_vm4 = vcmask 23552  }
 0x418   : > { %v4786_v39 = vpop.f32.mrf.mxu0 }
 0x41a   : > { %v2944_v40 = vpop.f32.mrf.mxu0 }
 0x41b   : > { %v2951_v41 = vpack.c.bf16 %v2944_v40, %v2944_v40 }
 0x41c   : > { %v4791_v42 = vpop.f32.mrf.mxu0 }
 0x41d   : > { %4690 = vmatmul.mubr.bf16.gmra.mxu1 %v1076_v57  ;;  %4798 = vmatmul.mubr.msk.bf16.vlgmr.msra.gmra.mxu0 %vm857_vm0, %v2951_v41  ;;  %v4967_v57 = vld [vmem:[%s6899_s24 + $0x8] sm:$0xff]  }
 0x41e   : > { %v2947_v43 = vpop.f32.mrf.mxu0  ;;  %4739 = vmatprep.mubr.msk.bf16.mxu1 %vm5092_vm3, %v5091_v32  ;;  %4809 = vmatprep.mubr.msk.bf16.mxu0 %vm5092_vm3, %v5091_v32 }
 0x420   : > { %v4792_v55 = vpop.f32.mrf.mxu0 }
 0x425   : > { %4740 = vmatmul.mubr.msk.bf16.vlgmr.msra.gmra.mxu1 %vm2227_vm5, %v5541_v28 }
 0x426   : > { %4744 = vmatpush3.bf16.msra.mxu1 %v2242_v46  ;;  %4745 = vmatprep.mubr.msk.bf16.mxu1 %vm5092_vm3, %v5091_v32 }
 0x427   : > { %4755 = vmatprep.subr.bf16.mxu1 %v5091_v32 }
 0x42b   : > { %v5675_v44 = vpop.f32.mrf.mxu1 }
 0x42d   : > { %4746 = vmatmul.mubr.msk.bf16.vlgmr.msra.gmra.mxu1 %vm2227_vm5, %v5541_v28  ;;  %v4968_v28 = vld [vmem:[%s6899_s24] sm:$0xff]   ;;  %v5677_v47 = vpop.f32.mrf.mxu1 }
 0x42e   : > { %4763 = vmatprep.mubr.msk.bf16.mxu1 %vm5092_vm3, %v5091_v32  ;;  %4756 = vmatpush3.bf16.msra.mxu1 %v4965_v54 }
 0x42f   : > { %4757 = vmatprep.subr.bf16.mxu1 %v5091_v32  ;;  %v5679_v60 = vpop.f32.mrf.mxu1 }
 0x431   : > { %v5681_v61 = vpop.f32.mrf.mxu1 }
 0x432   : > { %4758 = vmatpush3.bf16.msra.mxu1 %v4966_v56 }
 0x433   : > { %4759 = vmatprep.subr.bf16.mxu1 %v5091_v32 }
 0x436   : > { %4760 = vmatpush3.bf16.msra.mxu1 %v4967_v57 }
 0x437   : > { %4761 = vmatprep.subr.bf16.mxu1 %v5091_v32 }
 0x43a   : > { %4762 = vmatpush3.bf16.msra.mxu1 %v4968_v28 }
 0x43b   : > { %4801 = vmatprep.subr.bf16.mxu1 %v5091_v32 }
 0x4d5   : > { %v5683_v62 = vpop.f32.mrf.mxu1 }
 0x4d7   : > { %v5685_v1 = vpop.f32.mrf.mxu1 }
 0x4d9   : > { %v5687_v2 = vpop.f32.mrf.mxu1 }
 0x4db   : > { %v5689_v5 = vpop.f32.mrf.mxu1 }
 0x4dd   : > { %v5691_v22 = vpop.f32.mrf.mxu1  ;;  %v5693_v49 = vpop.f32.mrf.mxu0 }
 0x4de   : > { %v3028_v12 = vmul.f32 %v5693_v49, %v5693_v49 }
 0x4df   : > { %v5695_v52 = vpop.f32.mrf.mxu1  ;;  %v5697_v53 = vpop.f32.mrf.mxu0 }
 0x4e0   : > { %v3026_v6 = vmul.f32 %v5697_v53, %v5697_v53 }
 0x4e1   : > { %v5701_v7 = vpop.f32.mrf.mxu1  ;;  %v4800_v15 = vpop.f32.mrf.mxu0 }
 0x4e2   : > { %3032 = vrot.lane.b32.xlu0 %v3026_v6, %s5095_s4 }
 0x4e3   : > { %v5703_v17 = vpop.f32.mrf.mxu1  ;;  %v3007_v8 = vpop.f32.mrf.mxu0 }
 0x4e4   : > { %v3027_v9 = vmul.f32 %v3007_v8, %v3007_v8  ;;  %v5738_v46 = vpack.c.bf16 %v3007_v8, %v5697_v53 }
 0x4e5   : > { %v2289_v10 = vpop.f32.mrf.mxu1 }
 0x4e6   : > { %3049 = vrot.lane.b32.xlu0 %v5697_v53, %s5095_s4  ;;  %3034 = vrot.lane.b32.xlu1 %v3027_v9, %s5095_s4 }
 0x4e7   : > { %v4741_v11 = vpop.f32.mrf.mxu1 }
 0x4e9   : > { %v2292_v13 = vpop.f32.mrf.mxu1 }
 0x4ea   : > { %v2378_v19 = vpack.c.bf16 %v2292_v13, %v2289_v10  ;;  %3036 = vrot.lane.b32.xlu0 %v3028_v12, %s5095_s4  ;;  %3051 = vrot.lane.b32.xlu1 %v3007_v8, %s5095_s4  ;;  %v3561_v13 = vsel %vm3095_vm7, %v5738_v46, 0 }
 0x4eb   : > { %v4742_v21 = vpop.f32.mrf.mxu1 }
 0x4ec   : > { %4764 = vmatmul.mubr.msk.bf16.vlgmr.msra.gmra.mxu1 %vm876_vm1, %v2378_v19  ;;  %v3555_v19 = vld [vmem:[%s6849_s16] sm:$0x3] }
 0x4ed   : > { %v2330_v14 = vpop.f32.mrf.mxu1  ;;  %4767 = vmatprep.mubr.msk.bf16.mxu1 %vm5092_vm3, %v5091_v32 }
 0x4ee   : > { %3053 = vrot.lane.b32.xlu1 %v5693_v49, %s5095_s4  ;;  %s5098_s4 = smov 124  }
 0x4ef   : > { %v4747_v16 = vpop.f32.mrf.mxu1 }
 0x4f0   : > { %v4971_v16 = vld [vmem:[%s6907_s7] sm:$0xff]  }
 0x4f1   : > { %v2333_v63 = vpop.f32.mrf.mxu1 }
 0x4f2   : > { %v2379_v0 = vpack.c.bf16 %v2333_v63, %v2330_v14  ;;  %v4970_v14 = vld [vmem:[%s6907_s7 + $0x8] sm:$0xff]  }
 0x4f3   : > { %v4748_v48 = vpop.f32.mrf.mxu1 }
 0x4f4   : > { %4768 = vmatmul.mubr.msk.bf16.gmra.mxu1 %vm876_vm1, %v2379_v0 }
 0x4f5   : > { %4771 = vmatprep.mubr.msk.bf16.mxu1 %vm5092_vm3, %v5091_v32 }
 0x4fc   : > { %4772 = vmatmul.mubr.msk.bf16.gmra.mxu1 %vm876_vm1, %v2380_v18  ;;  %vm3509_vm1 = vcmask 67584  }
 0x4fd   : > { %4803 = vmatprep.mubr.msk.bf16.mxu1 %vm5092_vm3, %v5091_v32 }
 0x554   : > { %v3033_v50 = vpop.permute.xlu0 %3032 }
 0x555   : > { %v3041_v4 = vadd.f32 %v3033_v50, %v3026_v6  ;;  %v3025_v6 = vpack.c.bf16 %v5693_v49, %v5693_v49 }
 0x557   : > { %v3648_v21 = vsel %vm3095_vm7, %v3025_v6, 0 }
 0x558   : > { %v3050_v33 = vpop.permute.xlu0 %3049  ;;  %v3035_v3 = vpop.permute.xlu1 %3034 }
 0x559   : > { %v3042_v37 = vadd.f32 %v3035_v3, %v3027_v9  ;;  %v3058_v25 = vmul.f32 %v3050_v33, %v5697_v53  ;;  %v4969_v53 = vld [vmem:[%s6906_s6] sm:$0x1f]   ;;  %s682_s6 = scalar_lea.vmem %s6853_s20, %s6955_s25 }
 0x55b   : > { %v3044_v38 = vpack.c.bf16 %v3042_v37, %v3041_v4 }
 0x55c   : > { %v3037_v20 = vpop.permute.xlu0 %3036  ;;  %v3052_v23 = vpop.permute.xlu1 %3051 }
 0x55d   : > { %v3043_v26 = vadd.f32 %v3037_v20, %v3028_v12  ;;  %v3059_v29 = vmul.f32 %v3052_v23, %v3007_v8  ;;  %3065 = vrot.lane.b32.xlu0 %v3044_v38, %s5096_s30 }
 0x55f   : > { %v3045_v51 = vpack.c.bf16 %v3043_v26, %v3043_v26  ;;  %v3061_v34 = vpack.c.bf16 %v3059_v29, %v3058_v25 }
 0x560   : > { %v3054_v18 = vpop.permute.xlu1 %3053 }
 0x561   : > { %v3060_v24 = vmul.f32 %v5693_v49, %v3054_v18  ;;  %3067 = vrot.lane.b32.xlu0 %v3045_v51, %s5096_s30  ;;  %3071 = vrot.lane.b32.xlu1 %v3061_v34, %s5097_s1 }
 0x563   : > { %v3062_v27 = vpack.c.bf16 %v3060_v24, %v3060_v24 }
 0x565   : > { %3073 = vrot.lane.b32.xlu1 %v3062_v27, %s5097_s1  ;;  %v3604_v27 = vrot.slane %v5738_v46, 4  ;;  %s5099_s1 = smov 8  }
 0x5ac   : > { %v5725_v30 = vpop.f32.mrf.mxu1 }
 0x5ad   : > { %6900 = vst [vmem:[#allocation2_spill] sm:$0xff] %v5725_v30 }
 0x5ae   : > { %v4765_v31 = vpop.f32.mrf.mxu1 }
 0x5b0   : > { %v5727_v35 = vpop.f32.mrf.mxu1 }
 0x5b1   : > { %6901 = vst [vmem:[#allocation3_spill] sm:$0xff] %v5727_v35 }
 0x5b2   : > { %v4766_v36 = vpop.f32.mrf.mxu1 }
 0x5b4   : > { %v5729_v39 = vpop.f32.mrf.mxu1 }
 0x5b5   : > { %6902 = vst [vmem:[#allocation4_spill] sm:$0xff] %v5729_v39 }
 0x5b6   : > { %v4769_v40 = vpop.f32.mrf.mxu1 }
 0x5b8   : > { %v5731_v41 = vpop.f32.mrf.mxu1 }
 0x5b9   : > { %6903 = vst [vmem:[#allocation5_spill] sm:$0xff] %v5731_v41 }
 0x5ba   : > { %v4770_v42 = vpop.f32.mrf.mxu1 }
 0x5bc   : > { %v5733_v43 = vpop.f32.mrf.mxu1 }
 0x5bd   : > { %6904 = vst [vmem:[#allocation6_spill] sm:$0xff] %v5733_v43 }
 0x5be   : > { %v4773_v55 = vpop.f32.mrf.mxu1 }
 0x5bf   : > { %v3606_v55 = vsel %vm3095_vm7, %v3604_v27, 0 }
 0x5c0   : > { %v5735_v58 = vpop.f32.mrf.mxu1 }
 0x5c1   : > { %6905 = vst [vmem:[#allocation7_spill] sm:$0xff] %v5735_v58 }
 0x5c2   : > { %v4774_v59 = vpop.f32.mrf.mxu1 }
 0x5cf   : > { %v3066_v45 = vpop.permute.xlu0 %3065 }
 0x5d0   : > { %v3079_v54 = vsel %vm2227_vm5, %v5738_v46, %v3066_v45 }
 0x5d3   : > { %v3072_v56 = vpop.permute.xlu1 %3071  ;;  %v3068_v57 = vpop.permute.xlu0 %3067 }
 0x5d4   : > { %v3084_v28 = vsel %vm3082_vm6, %v3079_v54, %v3072_v56  ;;  %v3081_v8 = vsel %vm2227_vm5, %v3025_v6, %v3068_v57 }
 0x5d5   : > { %v3096_v15 = vsel %vm3095_vm7, %v3084_v28, 0  ;;  %v3140_v9 = vrot.slane %v3084_v28, 4  ;;  %v4972_v28 = vld [vmem:[%s6850_s17] sm:$0xff]  }
 0x5d6   : > { %4802 = vmatpush3.bf16.msra.mxu1 %v3096_v15 }
 0x5d7   : > { %v3074_v10 = vpop.permute.xlu1 %3073  ;;  %v3142_v11 = vsel %vm3095_vm7, %v3140_v9, 0  ;;  %4813 = vmatprep.subr.bf16.mxu1 %v5091_v32 }
 0x5d8   : > { %v3086_v12 = vsel %vm3082_vm6, %v3081_v8, %v3074_v10  ;;  %4808 = vmatpush3.bf16.msra.mxu0 %v3142_v11  ;;  %vm4374_vm6 = vcmask 7168  }
 0x5d9   : > { %v3185_v49 = vsel %vm3095_vm7, %v3086_v12, 0  ;;  %4804 = vmatmul.mubr.msk.bf16.vlgmr.msra.gmra.mxu1 %vm3075_vm8, %v4969_v53  ;;  %4819 = vmatprep.subr.bf16.mxu0 %v4970_v14 }
 0x5da   : > { %4814 = vmatpush3.bf16.msra.mxu1 %v3185_v49  ;;  %4815 = vmatprep.mubr.msk.bf16.mxu1 %vm5092_vm3, %v5091_v32 }
 0x5db   : > { %4810 = vmatmul.mubr.msk.bf16.vlgmr.msra.gmra.mxu0 %vm3075_vm8, %v4969_v53  ;;  %4827 = vmatprep.subr.bf16.mxu1 %v5091_v32 }
 0x5dc   : > { %4820 = vmatpush3.bf16.msra.mxu0 %v4970_v14 }
 0x5dd   : > { %4821 = vmatprep.subr.bf16.mxu0 %v4971_v16 }
 0x5e0   : > { %4822 = vmatpush3.bf16.msra.mxu0 %v4971_v16 }
 0x5e1   : > { %4816 = vmatmul.mubr.msk.bf16.vlgmr.msra.gmra.mxu1 %vm3075_vm8, %v4969_v53  ;;  %4833 = vmatprep.subr.bf16.mxu0 %v5091_v32 }
 0x5e2   : > { %4828 = vmatpush3.bf16.msra.mxu1 %v3561_v13  ;;  %4829 = vmatprep.mubr.msk.bf16.mxu1 %vm5092_vm3, %v5091_v32 }
 0x5e3   : > { %4839 = vmatprep.subr.bf16.mxu1 %v5091_v32 }
 0x5e9   : > { %4830 = vmatmul.mubr.msk.bf16.vlgmr.msra.gmra.mxu1 %vm3075_vm8, %v3555_v19 }
 0x5ea   : > { %4840 = vmatpush3.bf16.msra.mxu1 %v3648_v21  ;;  %4841 = vmatprep.mubr.msk.bf16.mxu1 %vm5092_vm3, %v5091_v32 }
 0x5eb   : > { %4851 = vmatprep.subr.bf16.mxu1 %v5091_v32 }
 0x5f1   : > { %4842 = vmatmul.mubr.msk.bf16.vlgmr.msra.gmra.mxu1 %vm3075_vm8, %v3555_v19 }
 0x5f2   : > { %4853 = vmatprep.mubr.msk.bf16.mxu1 %vm5092_vm3, %v5091_v32 }
 0x699   : > { %v3132_v63 = vpop.f32.mrf.mxu1 }
 0x69b   : > { %v4805_v0 = vpop.f32.mrf.mxu1  ;;  %v3178_v48 = vpop.f32.mrf.mxu0 }
 0x69c   : > { %v3231_v50 = vrot.slane %v3178_v48, 7 }
 0x69d   : > { %v3135_v33 = vpop.f32.mrf.mxu1  ;;  %v4811_v3 = vpop.f32.mrf.mxu0 }
 0x69e   : > { %v3244_v4 = vsel %vm3230_vm9, %v3135_v33, %v3231_v50 }
 0x69f   : > { %v4806_v37 = vpop.f32.mrf.mxu1  ;;  %v3246_v38 = vpack.c.bf16 %v3244_v4, %v3132_v63  ;;  %v3181_v20 = vpop.f32.mrf.mxu0 }
 0x6a0   : > { %v3232_v25 = vrot.slane %v3181_v20, 7 }
 0x6a1   : > { %v3221_v23 = vpop.f32.mrf.mxu1  ;;  %4823 = vmatprep.mubr.msk.bf16.mxu0 %vm857_vm0, %v3246_v38  ;;  %v4812_v26 = vpop.f32.mrf.mxu0 }
 0x6a2   : > { %v3239_v51 = vrot.slane %v3221_v23, 6  ;;  %v3233_v34 = vsel %vm3230_vm9, %v3231_v50, %v3232_v25 }
 0x6a3   : > { %v4817_v29 = vpop.f32.mrf.mxu1 }
 0x6a4   : > { %v3245_v40 = vsel %vm3238_vm10, %v3233_v34, %v3239_v51 }
 0x6a5   : > { %v3224_v18 = vpop.f32.mrf.mxu1 }
 0x6a6   : > { %v3240_v24 = vrot.slane %v3224_v18, 6 }
 0x6a7   : > { %v4818_v31 = vpop.f32.mrf.mxu1 }
 0x6a8   : > { %v3241_v36 = vsel %vm3238_vm10, %v3239_v51, %v3240_v24 }
 0x6a9   : > { %v3247_v42 = vpack.c.bf16 %v3241_v36, %v3245_v40  ;;  %v3597_v59 = vpop.f32.mrf.mxu1  ;;  %v4973_v40 = vld [vmem:[%s6841_s8] sm:$0xff]  }
 0x6ab   : > { %4824 = vmatmul.mubr.msk.bf16.vlgmr.msra.gmra.mxu0 %vm857_vm0, %v3247_v42  ;;  %v4831_v45 = vpop.f32.mrf.mxu1 }
 0x6ac   : > { %4834 = vmatpush3.bf16.msra.mxu0 %v3606_v55  ;;  %4835 = vmatprep.mubr.msk.bf16.mxu0 %vm5092_vm3, %v5091_v32  ;;  %v4020_v55 = vld [vmem:[%s6851_s18] sm:$0x7] }
 0x6ad   : > { %4845 = vmatprep.subr.bf16.mxu0 %v5091_v32  ;;  %v3600_v46 = vpop.f32.mrf.mxu1 }
 0x6af   : > { %v4832_v54 = vpop.f32.mrf.mxu1 }
 0x6b0   : > { %v4021_v54 = vld [vmem:[%s6852_s19] sm:$0xf] }
 0x6b1   : > { %v3684_v56 = vpop.f32.mrf.mxu1 }
 0x6b3   : > { %4836 = vmatmul.mubr.msk.bf16.vlgmr.msra.gmra.mxu0 %vm3075_vm8, %v3555_v19  ;;  %v4843_v57 = vpop.f32.mrf.mxu1 }
 0x6b4   : > { %4847 = vmatprep.mubr.msk.bf16.mxu0 %vm5092_vm3, %v5091_v32  ;;  %4846 = vmatpush3.bf16.msra.mxu0 %v4972_v28  ;;  %v4072_v28 = vsel %vm3095_vm7, %v4021_v54, 0 }
 0x6b5   : > { %v3687_v6 = vpop.f32.mrf.mxu1  ;;  %4857 = vmatprep.subr.bf16.mxu0 %v5091_v32 }
 0x6b7   : > { %v4844_v15 = vpop.f32.mrf.mxu1 }
 0x76b   : > { %v5797_v9 = vpop.f32.mrf.mxu0 }
 0x76c   : > { %6908 = vst [vmem:[#allocation8_spill] sm:$0xff] %v5797_v9 }
 0x76d   : > { %v5799_v53 = vpop.f32.mrf.mxu0 }
 0x76e   : > { %6909 = vst [vmem:[#allocation9_spill] sm:$0xff] %v5799_v53 }
 0x76f   : > { %v5801_v8 = vpop.f32.mrf.mxu0 }
 0x770   : > { %6910 = vst [vmem:[#allocation10_spill] sm:$0xff] %v5801_v8 }
 0x771   : > { %v5803_v10 = vpop.f32.mrf.mxu0 }
 0x772   : > { %6911 = vst [vmem:[#allocation11_spill] sm:$0xff] %v5803_v10 }
 0x773   : > { %v3642_v11 = vpop.f32.mrf.mxu0 }
 0x774   : > { %v3691_v12 = vrot.slane %v3642_v11, 4 }
 0x775   : > { %v4837_v49 = vpop.f32.mrf.mxu0 }
 0x776   : > { %v3693_v13 = vsel %vm3095_vm7, %v3597_v59, %v3691_v12  ;;  %v4974_v59 = vld [vmem:[%s6842_s9] sm:$0xff]  }
 0x777   : > { %v3694_v19 = vpack.c.bf16 %v3684_v56, %v3693_v13  ;;  %v3645_v21 = vpop.f32.mrf.mxu0 }
 0x779   : > { %4848 = vmatmul.mubr.msk.bf16.vlgmr.msra.gmra.mxu0 %vm2227_vm5, %v3694_v19  ;;  %v4838_v14 = vpop.f32.mrf.mxu0 }
 0x77a   : > { %4859 = vmatprep.mubr.msk.bf16.mxu0 %vm5092_vm3, %v5091_v32  ;;  %4858 = vmatpush3.bf16.msra.mxu0 %v4974_v59 }
 0x77b   : > { %4869 = vmatprep.subr.bf16.mxu0 %v5091_v32 }
 0x839   : > { %v3738_v16 = vpop.f32.mrf.mxu0 }
 0x83a   : > { %v3750_v63 = vmul.f32 %v3738_v16, %v3738_v16 }
 0x83b   : > { %v4849_v0 = vpop.f32.mrf.mxu0 }
 0x83c   : > { %3754 = vrot.lane.b32.xlu0 %v3750_v63, %s5098_s4 }
 0x83d   : > { %v3741_v48 = vpop.f32.mrf.mxu0 }
 0x83e   : > { %v3751_v50 = vmul.f32 %v3741_v48, %v3741_v48  ;;  %v3749_v18 = vpack.c.bf16 %v3741_v48, %v3738_v16 }
 0x83f   : > { %v4850_v33 = vpop.f32.mrf.mxu0 }
 0x840   : > { %3765 = vrot.lane.b32.xlu0 %v3738_v16, %s5098_s4  ;;  %3756 = vrot.lane.b32.xlu1 %v3751_v50, %s5098_s4  ;;  %v4025_v42 = vsel %vm3795_vm12, %v3749_v18, 0 }
 0x844   : > { %3767 = vrot.lane.b32.xlu1 %v3741_v48, %s5098_s4  ;;  %s5102_s4 = smov 6  }
 0x8ae   : > { %v3755_v3 = vpop.permute.xlu0 %3754 }
 0x8af   : > { %v3760_v37 = vadd.f32 %v3755_v3, %v3750_v63 }
 0x8b2   : > { %v3757_v4 = vpop.permute.xlu1 %3756  ;;  %v3766_v20 = vpop.permute.xlu0 %3765 }
 0x8b3   : > { %v3761_v38 = vadd.f32 %v3757_v4, %v3751_v50  ;;  %v3771_v26 = vmul.f32 %v3766_v20, %v3738_v16 }
 0x8b5   : > { %v3762_v23 = vpack.c.bf16 %v3761_v38, %v3760_v37 }
 0x8b6   : > { %v3768_v25 = vpop.permute.xlu1 %3767 }
 0x8b7   : > { %v3772_v29 = vmul.f32 %v3768_v25, %v3741_v48  ;;  %3775 = vrot.lane.b32.xlu0 %v3762_v23, %s5099_s1  ;;  %s5103_s1 = smov 4  }
 0x8b9   : > { %v3773_v51 = vpack.c.bf16 %v3772_v29, %v3771_v26 }
 0x8bb   : > { %3778 = vrot.lane.b32.xlu1 %v3773_v51, %s5100_s28  ;;  %s5107_s28 = smov 10  }
 0x929   : > { %v3776_v34 = vpop.permute.xlu0 %3775 }
 0x92a   : > { %v3783_v24 = vsel %vm3075_vm8, %v3749_v18, %v3776_v34 }
 0x92d   : > { %v3779_v27 = vpop.permute.xlu1 %3778 }
 0x92e   : > { %v3786_v31 = vsel %vm3784_vm11, %v3783_v24, %v3779_v27 }
 0x92f   : > { %v3796_v36 = vsel %vm3795_vm12, %v3786_v31, 0 }
 0x930   : > { %4852 = vmatpush3.bf16.msra.mxu1 %v3796_v36 }
 0x931   : > { %4863 = vmatprep.subr.bf16.mxu1 %v5091_v32 }
 0x933   : > { %4854 = vmatmul.mubr.msk.bf16.vlgmr.msra.gmra.mxu1 %vm3784_vm11, %v4973_v40 }
 0x934   : > { %4864 = vmatpush3.bf16.msra.mxu1 %v4025_v42  ;;  %4865 = vmatprep.mubr.msk.bf16.mxu1 %vm5092_vm3, %v5091_v32 }
 0x935   : > { %4875 = vmatprep.subr.bf16.mxu1 %v5091_v32 }
 0x93b   : > { %4866 = vmatmul.mubr.msk.bf16.vlgmr.msra.gmra.mxu1 %vm3784_vm11, %v4020_v55 }
 0x93c   : > { %4877 = vmatprep.mubr.msk.bf16.mxu1 %vm5092_vm3, %v5091_v32 }
 0x9f3   : > { %v3832_v45 = vpop.f32.mrf.mxu1 }
 0x9f5   : > { %v4855_v46 = vpop.f32.mrf.mxu1 }
 0x9f7   : > { %v3835_v56 = vpop.f32.mrf.mxu1 }
 0x9f8   : > { %v3839_v57 = vpack.c.bf16 %v3835_v56, %v3832_v45 }
 0x9f9   : > { %v4856_v6 = vpop.f32.mrf.mxu1 }
 0x9fa   : > { %4860 = vmatmul.mubr.msk.bf16.vlgmr.msra.gmra.mxu0 %vm2227_vm5, %v3839_v57 }
 0x9fb   : > { %v4061_v15 = vpop.f32.mrf.mxu1  ;;  %4870 = vmatpush3.bf16.msra.mxu0 %v4072_v28  ;;  %4871 = vmatprep.mubr.msk.bf16.mxu0 %vm5092_vm3, %v5091_v32 }
 0x9fc   : > { %4881 = vmatprep.subr.bf16.mxu0 %v5091_v32  ;;  %v4067_v12 = vpack.c.bf16 %v4061_v15, %v4061_v15 }
 0x9fd   : > { %v4867_v11 = vpop.f32.mrf.mxu1 }
 0x9ff   : > { %v4064_v49 = vpop.f32.mrf.mxu1 }
 0xa01   : > { %v4868_v13 = vpop.f32.mrf.mxu1 }
 0xa02   : > { %4872 = vmatmul.mubr.msk.bf16.vlgmr.msra.gmra.mxu0 %vm3075_vm8, %v4067_v12 }
 0xa03   : > { %4883 = vmatprep.mubr.msk.bf16.mxu0 %vm5092_vm3, %v5091_v32  ;;  %vm3986_vm3 = vcmask 38912  }
 0xaba   : > { %v5837_v19 = vpop.f32.mrf.mxu0 }
 0xabb   : > { %6912 = vst [vmem:[#allocation12_spill] sm:$0xff] %v5837_v19 }
 0xabc   : > { %v4861_v21 = vpop.f32.mrf.mxu0 }
 0xabe   : > { %v5839_v14 = vpop.f32.mrf.mxu0 }
 0xabf   : > { %6913 = vst [vmem:[#allocation13_spill] sm:$0xff] %v5839_v14 }
 0xac0   : > { %v4862_v16 = vpop.f32.mrf.mxu0 }
 0xac2   : > { %v4108_v63 = vpop.f32.mrf.mxu0 }
 0xac3   : > { %4126 = vrot.lane.b32.xlu1 %v4108_v63, %s5101_s22  ;;  %v4118_v0 = vmul.f32 %v4108_v63, %v4108_v63  ;;  %v4117_v25 = vpack.c.bf16 %v4108_v63, %v4108_v63 }
 0xac4   : > { %v4873_v48 = vpop.f32.mrf.mxu0 }
 0xac5   : > { %4120 = vrot.lane.b32.xlu0 %v4118_v0, %s5101_s22  ;;  %v5936_v48 = vmul.f32 %v5677_v47, %v5677_v47  ;;  %s5111_s22 = smov 123  }
 0xac6   : > { %v4111_v50 = vpop.f32.mrf.mxu0 }
 0xac7   : > { %v5942_v50 = vmul.f32 %v5679_v60, %v5679_v60 }
 0xac8   : > { %v4874_v33 = vpop.f32.mrf.mxu0 }
 0xac9   : > { %v5948_v33 = vmul.f32 %v5675_v44, %v5675_v44 }
 0xb35   : > { %v4127_v3 = vpop.permute.xlu1 %4126 }
 0xb36   : > { %v4129_v4 = vmul.f32 %v4127_v3, %v4108_v63  ;;  %v5954_v3 = vmul.f32 %v5689_v5, %v5689_v5 }
 0xb37   : > { %v4121_v37 = vpop.permute.xlu0 %4120 }
 0xb38   : > { %v4130_v38 = vpack.c.bf16 %v4129_v4, %v4129_v4  ;;  %v4123_v20 = vadd.f32 %v4121_v37, %v4118_v0  ;;  %v5930_v0 = vmul.f32 %v5681_v61, %v5681_v61  ;;  %v5960_v4 = vmul.f32 %v5685_v1, %v5685_v1 }
 0xb39   : > { %v5966_v37 = vmul.f32 %v5687_v2, %v5687_v2 }
 0xb3a   : > { %v4124_v32 = vpack.c.bf16 %v4123_v20, %v4123_v20  ;;  %4135 = vrot.lane.b32.xlu1 %v4130_v38, %s5102_s4  ;;  %v5972_v38 = vmul.f32 %v5683_v62, %v5683_v62  ;;  %v5978_v20 = vmul.f32 %v5703_v17, %v5703_v17 }
 0xb3c   : > { %4132 = vrot.lane.b32.xlu0 %v4124_v32, %s5103_s1  ;;  %v5984_v32 = vmul.f32 %v5695_v52, %v5695_v52  ;;  %s6945_s1 = smov 48  }
 0xb3e   : > { %1232 = vrot.lane.b32.xlu1 %v5681_v61, %s5089_s27 }
 0xb40   : > { %1230 = vrot.lane.b32.xlu0 %v5677_v47, %s5089_s27 }
 0xb42   : > { %1236 = vrot.lane.b32.xlu1 %v5679_v60, %s5089_s27 }
 0xb44   : > { %1234 = vrot.lane.b32.xlu0 %v5675_v44, %s5089_s27 }
 0xb46   : > { %1240 = vrot.lane.b32.xlu1 %v5689_v5, %s5089_s27 }
 0xb48   : > { %1238 = vrot.lane.b32.xlu0 %v5685_v1, %s5089_s27 }
 0xb4a   : > { %1244 = vrot.lane.b32.xlu1 %v5687_v2, %s5089_s27 }
 0xb4c   : > { %1242 = vrot.lane.b32.xlu0 %v5683_v62, %s5089_s27 }
 0xb4e   : > { %1248 = vrot.lane.b32.xlu1 %v5703_v17, %s5089_s27 }
 0xb50   : > { %1246 = vrot.lane.b32.xlu0 %v5695_v52, %s5089_s27 }
 0xb52   : > { %1252 = vrot.lane.b32.xlu1 %v5701_v7, %s5089_s27 }
 0xb54   : > { %1250 = vrot.lane.b32.xlu0 %v5691_v22, %s5089_s27 }
 0xbac   : > { %v4136_v23 = vpop.permute.xlu1 %4135 }
 0xbae   : > { %v4133_v26 = vpop.permute.xlu0 %4132 }
 0xbaf   : > { %v4140_v29 = vsel %vm3780_vm13, %v4117_v25, %v4133_v26  ;;  %v5996_v25 = vmul.f32 %v5691_v22, %v5691_v22 }
 0xbb0   : > { %v4143_v51 = vsel %vm4141_vm14, %v4140_v29, %v4136_v23  ;;  %v1233_v34 = vpop.permute.xlu1 %1232  ;;  %v5990_v23 = vmul.f32 %v5701_v7, %v5701_v7 }
 0xbb1   : > { %v5869_v18 = vmul.f32 %v1233_v34, %v5681_v61  ;;  %v4153_v24 = vsel %vm4152_vm15, %v4143_v51, 0  ;;  %6925 = vst [vmem:[#allocation25_spill] sm:$0xff] %v5996_v25 }
 0xbb2   : > { %v1231_v27 = vpop.permute.xlu0 %1230  ;;  %4876 = vmatpush3.bf16.msra.mxu1 %v4153_v24  ;;  %6924 = vst [vmem:[#allocation24_spill] sm:$0xff] %v5990_v23 }
 0xbb3   : > { %v5872_v31 = vmul.f32 %v1231_v27, %v5677_v47  ;;  %1292 = vrot.lane.b32.xlu1 %v5869_v18, %s5089_s27 }
 0xbb4   : > { %v1237_v36 = vpop.permute.xlu1 %1236 }
 0xbb5   : > { %v5877_v40 = vmul.f32 %v5679_v60, %v1237_v36  ;;  %1290 = vrot.lane.b32.xlu0 %v5872_v31, %s5089_s27 }
 0xbb6   : > { %v1235_v42 = vpop.permute.xlu0 %1234 }
 0xbb7   : > { %6914 = vst [vmem:[#allocation14_spill] sm:$0xff] %v5877_v40  ;;  %v5882_v55 = vmul.f32 %v5675_v44, %v1235_v42  ;;  %1296 = vrot.lane.b32.xlu1 %v5877_v40, %s5089_s27 }
 0xbb8   : > { %v1241_v59 = vpop.permute.xlu1 %1240 }
 0xbb9   : > { %6915 = vst [vmem:[#allocation15_spill] sm:$0xff] %v5882_v55  ;;  %v5887_v45 = vmul.f32 %v1241_v59, %v5689_v5  ;;  %1294 = vrot.lane.b32.xlu0 %v5882_v55, %s5089_s27 }
 0xbba   : > { %v1239_v46 = vpop.permute.xlu0 %1238 }
 0xbbb   : > { %6916 = vst [vmem:[#allocation16_spill] sm:$0xff] %v5887_v45  ;;  %v5892_v54 = vmul.f32 %v1239_v46, %v5685_v1  ;;  %1300 = vrot.lane.b32.xlu1 %v5887_v45, %s5089_s27 }
 0xbbc   : > { %v1245_v56 = vpop.permute.xlu1 %1244 }
 0xbbd   : > { %6917 = vst [vmem:[#allocation17_spill] sm:$0xff] %v5892_v54  ;;  %v5897_v57 = vmul.f32 %v5687_v2, %v1245_v56  ;;  %1298 = vrot.lane.b32.xlu0 %v5892_v54, %s5089_s27 }
 0xbbe   : > { %v1243_v28 = vpop.permute.xlu0 %1242 }
 0xbbf   : > { %6918 = vst [vmem:[#allocation18_spill] sm:$0xff] %v5897_v57  ;;  %v5902_v6 = vmul.f32 %v5683_v62, %v1243_v28  ;;  %1304 = vrot.lane.b32.xlu1 %v5897_v57, %s5089_s27 }
 0xbc0   : > { %v1249_v15 = vpop.permute.xlu1 %1248 }
 0xbc1   : > { %6919 = vst [vmem:[#allocation19_spill] sm:$0xff] %v5902_v6  ;;  %v5907_v11 = vmul.f32 %v1249_v15, %v5703_v17  ;;  %1302 = vrot.lane.b32.xlu0 %v5902_v6, %s5089_s27 }
 0xbc2   : > { %v1247_v12 = vpop.permute.xlu0 %1246 }
 0xbc3   : > { %6920 = vst [vmem:[#allocation20_spill] sm:$0xff] %v5907_v11  ;;  %v5912_v49 = vmul.f32 %v1247_v12, %v5695_v52  ;;  %1308 = vrot.lane.b32.xlu1 %v5907_v11, %s5089_s27 }
 0xbc4   : > { %v1253_v13 = vpop.permute.xlu1 %1252 }
 0xbc5   : > { %6921 = vst [vmem:[#allocation21_spill] sm:$0xff] %v5912_v49  ;;  %v5917_v21 = vmul.f32 %v5701_v7, %v1253_v13  ;;  %1306 = vrot.lane.b32.xlu0 %v5912_v49, %s5089_s27 }
 0xbc6   : > { %v1251_v16 = vpop.permute.xlu0 %1250 }
 0xbc7   : > { %6922 = vst [vmem:[#allocation22_spill] sm:$0xff] %v5917_v21  ;;  %v5922_v63 = vmul.f32 %v5691_v22, %v1251_v16  ;;  %1312 = vrot.lane.b32.xlu1 %v5917_v21, %s5089_s27 }
 0xbc9   : > { %6923 = vst [vmem:[#allocation23_spill] sm:$0xff] %v5922_v63  ;;  %1310 = vrot.lane.b32.xlu0 %v5922_v63, %s5089_s27 }
 0xbcb   : > { %1376 = vrot.lane.b32.xlu1 %v5930_v0, %s5090_s3 }
 0xbcd   : > { %1374 = vrot.lane.b32.xlu0 %v5936_v48, %s5090_s3 }
 0xbcf   : > { %1380 = vrot.lane.b32.xlu1 %v5942_v50, %s5090_s3 }
 0xbd1   : > { %1378 = vrot.lane.b32.xlu0 %v5948_v33, %s5090_s3 }
 0xbd3   : > { %1384 = vrot.lane.b32.xlu1 %v5954_v3, %s5090_s3 }
 0xbd5   : > { %1382 = vrot.lane.b32.xlu0 %v5960_v4, %s5090_s3 }
 0xbd7   : > { %1388 = vrot.lane.b32.xlu1 %v5966_v37, %s5090_s3 }
 0xbd9   : > { %1386 = vrot.lane.b32.xlu0 %v5972_v38, %s5090_s3 }
 0xbdb   : > { %1392 = vrot.lane.b32.xlu1 %v5978_v20, %s5090_s3 }
 0xbdd   : > { %1390 = vrot.lane.b32.xlu0 %v5984_v32, %s5090_s3 }
 0xbdf   : > { %1396 = vrot.lane.b32.xlu1 %v5990_v23, %s5090_s3 }
 0xbe1   : > { %1394 = vrot.lane.b32.xlu0 %v5996_v25, %s5090_s3 }
 0xbe3   : > { %1424 = vrot.lane.b32.xlu1 %v5930_v0, %s5088_s23 }
 0xbe5   : > { %1422 = vrot.lane.b32.xlu0 %v5936_v48, %s5088_s23 }
 0xbe7   : > { %1428 = vrot.lane.b32.xlu1 %v5942_v50, %s5088_s23 }
 0xbe9   : > { %1426 = vrot.lane.b32.xlu0 %v5948_v33, %s5088_s23 }
 0xbeb   : > { %1432 = vrot.lane.b32.xlu1 %v5954_v3, %s5088_s23 }
 0xbed   : > { %1430 = vrot.lane.b32.xlu0 %v5960_v4, %s5088_s23 }
 0xbef   : > { %1436 = vrot.lane.b32.xlu1 %v5966_v37, %s5088_s23 }
 0xbf1   : > { %1434 = vrot.lane.b32.xlu0 %v5972_v38, %s5088_s23 }
 0xbf3   : > { %1440 = vrot.lane.b32.xlu1 %v5978_v20, %s5088_s23 }
 0xbf5   : > { %1438 = vrot.lane.b32.xlu0 %v5984_v32, %s5088_s23 }
 0xbf7   : > { %1444 = vrot.lane.b32.xlu1 %v5990_v23, %s5088_s23 }
 0xbf9   : > { %1442 = vrot.lane.b32.xlu0 %v5996_v25, %s5088_s23 }
 0xbfb   : > { %1496 = vrot.lane.b32.xlu1 %v5930_v0, %s5089_s27 }
 0xbfd   : > { %1494 = vrot.lane.b32.xlu0 %v5936_v48, %s5089_s27 }
 0xbff   : > { %1500 = vrot.lane.b32.xlu1 %v5942_v50, %s5089_s27 }
 0xc01   : > { %1498 = vrot.lane.b32.xlu0 %v5948_v33, %s5089_s27 }
 0xc03   : > { %1504 = vrot.lane.b32.xlu1 %v5954_v3, %s5089_s27 }
 0xc05   : > { %1502 = vrot.lane.b32.xlu0 %v5960_v4, %s5089_s27 }
 0xc07   : > { %1508 = vrot.lane.b32.xlu1 %v5966_v37, %s5089_s27 }
 0xc09   : > { %1506 = vrot.lane.b32.xlu0 %v5972_v38, %s5089_s27 }
 0xc0b   : > { %1512 = vrot.lane.b32.xlu1 %v5978_v20, %s5089_s27 }
 0xc0d   : > { %1510 = vrot.lane.b32.xlu0 %v5984_v32, %s5089_s27 }
 0xc0f   : > { %1516 = vrot.lane.b32.xlu1 %v5990_v23, %s5089_s27 }
 0xc11   : > { %1514 = vrot.lane.b32.xlu0 %v5996_v25, %s5089_s27 }
 0xc25   : > { %v6048_v26 = vpop.permute.xlu1 %1292 }
 0xc27   : > { %v6050_v29 = vpop.permute.xlu0 %1290 }
 0xc29   : > { %v6052_v51 = vpop.permute.xlu1 %1296 }
 0xc2b   : > { %v6054_v34 = vpop.permute.xlu0 %1294 }
 0xc2d   : > { %v6056_v24 = vpop.permute.xlu1 %1300 }
 0xc2f   : > { %v6058_v27 = vpop.permute.xlu0 %1298 }
 0xc31   : > { %v6060_v36 = vpop.permute.xlu1 %1304 }
 0xc33   : > { %v6062_v42 = vpop.permute.xlu0 %1302 }
 0xc35   : > { %v6064_v59 = vpop.permute.xlu1 %1308 }
 0xc37   : > { %v6066_v46 = vpop.permute.xlu0 %1306 }
 0xc39   : > { %v6068_v56 = vpop.permute.xlu1 %1312 }
 0xc3b   : > { %v6070_v28 = vpop.permute.xlu0 %1310 }
 0xc3d   : > { %v1377_v15 = vpop.permute.xlu1 %1376 }
 0xc3e   : > { %v1411_v41 = vsub.f32 %v5681_v61, %v1377_v15 }
 0xc3f   : > { %v1375_v12 = vpop.permute.xlu0 %1374 }
 0xc40   : > { %v1410_v35 = vsub.f32 %v5677_v47, %v1375_v12 }
 0xc41   : > { %v1381_v13 = vpop.permute.xlu1 %1380 }
 0xc42   : > { %v1413_v21 = vsub.f32 %v5679_v60, %v1381_v13 }
 0xc43   : > { %v1379_v16 = vpop.permute.xlu0 %1378 }
 0xc44   : > { %v1412_v57 = vsub.f32 %v5675_v44, %v1379_v16 }
 0xc45   : > { %v1385_v14 = vpop.permute.xlu1 %1384 }
 0xc46   : > { %v1415_v55 = vsub.f32 %v5689_v5, %v1385_v14 }
 0xc47   : > { %v1383_v19 = vpop.permute.xlu0 %1382 }
 0xc49   : > { %v1389_v8 = vpop.permute.xlu1 %1388 }
 0xc4b   : > { %v1387_v9 = vpop.permute.xlu0 %1386 }
 0xc4d   : > { %v1393_v10 = vpop.permute.xlu1 %1392 }
 0xc4f   : > { %v1391_v53 = vpop.permute.xlu0 %1390 }
 0xc51   : > { %v1397_v58 = vpop.permute.xlu1 %1396 }
 0xc53   : > { %v6072_v43 = vpop.permute.xlu0 %1394 }
 0xc55   : > { %v1425_v39 = vpop.permute.xlu1 %1424 }
 0xc56   : > { %v1459_v30 = vsub.f32 %v1411_v41, %v1425_v39  ;;  %v1414_v39 = vsub.f32 %v5685_v1, %v1383_v19 }
 0xc57   : > { %v1423_v63 = vpop.permute.xlu0 %1422 }
 0xc58   : > { %v1471_v49 = vadd.f32 0.0009, %v1459_v30  ;;  %v1458_v11 = vsub.f32 %v1410_v35, %v1423_v63  ;;  %v1417_v35 = vsub.f32 %v5687_v2, %v1389_v8 }
 0xc59   : > { %v1429_v6 = vpop.permute.xlu1 %1428 }
 0xc5a   : > { %4976 = vrcp.f32 %v1471_v49  ;;  %v1470_v54 = vadd.f32 0.0009, %v1458_v11  ;;  %v1461_v45 = vsub.f32 %v1413_v21, %v1429_v6  ;;  %v1416_v6 = vsub.f32 %v5683_v62, %v1387_v9 }
 0xc5b   : > { %v1427_v25 = vpop.permute.xlu0 %1426  ;;  %v1421_v9 = vsub.f32 %v5701_v7, %v1397_v58 }
 0xc5c   : > { %4978 = vrcp.f32 %v1470_v54  ;;  %v1473_v15 = vadd.f32 0.0009, %v1461_v45  ;;  %v1460_v40 = vsub.f32 %v1412_v57, %v1427_v25  ;;  %v1419_v57 = vsub.f32 %v5703_v17, %v1393_v10 }
 0xc5d   : > { %v1433_v23 = vpop.permute.xlu1 %1432 }
 0xc5e   : > { %4980 = vrcp.f32 %v1473_v15  ;;  %v1472_v41 = vadd.f32 0.0009, %v1460_v40  ;;  %v1463_v12 = vsub.f32 %v1415_v55, %v1433_v23  ;;  %v1418_v55 = vsub.f32 %v5695_v52, %v1391_v53 }
 0xc5f   : > { %v1431_v30 = vpop.permute.xlu0 %1430  ;;  %v1420_v53 = vsub.f32 %v5691_v22, %v6072_v43 }
 0xc60   : > { %4982 = vrcp.f32 %v1472_v41  ;;  %v1475_v63 = vadd.f32 0.0009, %v1463_v12  ;;  %v1462_v49 = vsub.f32 %v1414_v39, %v1431_v30 }
 0xc61   : > { %v1437_v11 = vpop.permute.xlu1 %1436 }
 0xc62   : > { %4984 = vrcp.f32 %v1475_v63  ;;  %v1474_v14 = vadd.f32 0.0009, %v1462_v49  ;;  %v1465_v54 = vsub.f32 %v1417_v35, %v1437_v11 }
 0xc63   : > { %v1435_v45 = vpop.permute.xlu0 %1434 }
 0xc64   : > { %4986 = vrcp.f32 %v1474_v14  ;;  %v1477_v19 = vadd.f32 0.0009, %v1465_v54  ;;  %v1464_v21 = vsub.f32 %v1416_v6, %v1435_v45  ;;  %v1327_v45 = vsub.f32 %v5681_v61, %v6048_v26 }
 0xc65   : > { %v1441_v40 = vpop.permute.xlu1 %1440  ;;  %v1328_v61 = vsub.f32 %v5675_v44, %v6054_v34 }
 0xc66   : > { %4988 = vrcp.f32 %v1477_v19  ;;  %v1476_v8 = vadd.f32 0.0009, %v1464_v21  ;;  %v1467_v23 = vsub.f32 %v1419_v57, %v1441_v40  ;;  %v1326_v19 = vsub.f32 %v5677_v47, %v6050_v29 }
 0xc67   : > { %v6084_v25 = vpop.eup %4976  ;;  %v1439_v13 = vpop.permute.xlu0 %1438  ;;  %v1339_v40 = vmul.f32 2.0, %v1327_v45  ;;  %v1331_v29 = vsub.f32 %v5689_v5, %v6056_v24 }
 0xc68   : > { %4990 = vrcp.f32 %v1476_v8  ;;  %v1479_v16 = vadd.f32 0.0009, %v1467_v23  ;;  %v1466_v15 = vsub.f32 %v1418_v55, %v1439_v13  ;;  %1580 = vrot.lane.b32.xlu1 %v6084_v25, %s5088_s23  ;;  %v1329_v55 = vsub.f32 %v5679_v60, %v6052_v51 }
 0xc69   : > { %v6089_v10 = vpop.eup %4978  ;;  %v1445_v39 = vpop.permute.xlu1 %1444  ;;  %v1338_v23 = vmul.f32 2.0, %v1326_v19  ;;  %v6130_v13 = vadd.f32 0.0009, %v1339_v40  ;;  %v1340_v60 = vmul.f32 2.0, %v1328_v61  ;;  %v1330_v51 = vsub.f32 %v5685_v1, %v6058_v27 }
 0xc6a   : > { %4992 = vrcp.f32 %v1479_v16  ;;  %v1478_v41 = vadd.f32 0.0009, %v1466_v15  ;;  %v1469_v12 = vsub.f32 %v1421_v9, %v1445_v39  ;;  %1578 = vrot.lane.b32.xlu0 %v6089_v10, %s5088_s23  ;;  %v1341_v47 = vmul.f32 2.0, %v1329_v55 }
 0xc6b   : > { %v6095_v30 = vpop.eup %4980  ;;  %v1443_v58 = vpop.permute.xlu0 %1442  ;;  %v6135_v9 = vadd.f32 0.0009, %v1338_v23  ;;  %v1343_v34 = vmul.f32 2.0, %v1331_v29  ;;  %v1333_v16 = vsub.f32 %v5687_v2, %v6060_v36  ;;  %v6147_v5 = vadd.f32 0.0009, %v1340_v60 }
 0xc6c   : > { %4994 = vrcp.f32 %v1478_v41  ;;  %v1481_v35 = vadd.f32 0.0009, %v1469_v12  ;;  %v1468_v63 = vsub.f32 %v1420_v53, %v1443_v58  ;;  %1584 = vrot.lane.b32.xlu1 %v6095_v30, %s5088_s23  ;;  %v6141_v44 = vadd.f32 0.0009, %v1341_v47 }
 0xc6d   : > { %v6099_v49 = vpop.eup %4982  ;;  %v1342_v24 = vmul.f32 2.0, %v1330_v51  ;;  %v1332_v15 = vsub.f32 %v5683_v62, %v6062_v42  ;;  %v6153_v1 = vadd.f32 0.0009, %v1343_v34  ;;  %v1345_v27 = vmul.f32 2.0, %v1333_v16 }
 0xc6e   : > { %4996 = vrcp.f32 %v1481_v35  ;;  %v1480_v11 = vadd.f32 0.0009, %v1468_v63  ;;  %1582 = vrot.lane.b32.xlu0 %v6099_v49, %s5088_s23  ;;  %v1335_v39 = vsub.f32 %v5703_v17, %v6064_v59  ;;  %v1334_v53 = vsub.f32 %v5695_v52, %v6066_v46 }
 0xc6f   : > { %v6103_v43 = vpop.eup %4984  ;;  %v6159_v2 = vadd.f32 0.0009, %v1342_v24  ;;  %v1344_v36 = vmul.f32 2.0, %v1332_v15  ;;  %v6165_v62 = vadd.f32 0.0009, %v1345_v27  ;;  %v1337_v41 = vsub.f32 %v5701_v7, %v6068_v56 }
 0xc70   : > { %4998 = vrcp.f32 %v1480_v11  ;;  %1588 = vrot.lane.b32.xlu1 %v6103_v43, %s5088_s23  ;;  %v1347_v42 = vmul.f32 2.0, %v1335_v39  ;;  %v1346_v59 = vmul.f32 2.0, %v1334_v53  ;;  %v1336_v12 = vsub.f32 %v5691_v22, %v6070_v28  ;;  %v4975_v28 = vld [vmem:[%s6843_s10] sm:$0x1f]  }
 0xc71   : > { %v6107_v6 = vpop.eup %4986  ;;  %v6171_v17 = vadd.f32 0.0009, %v1344_v36  ;;  %v1349_v46 = vmul.f32 2.0, %v1337_v41  ;;  %4878 = vmatmul.mubr.msk.bf16.vlgmr.msra.gmra.mxu1 %vm4141_vm14, %v4975_v28 }
 0xc72   : > { %1586 = vrot.lane.b32.xlu0 %v6107_v6, %s5088_s23  ;;  %v6177_v52 = vadd.f32 0.0009, %v1347_v42  ;;  %v6181_v58 = vadd.f32 0.0009, %v1346_v59  ;;  %v1348_v7 = vmul.f32 2.0, %v1336_v12 }
 0xc73   : > { %v6111_v14 = vpop.eup %4988  ;;  %v6185_v56 = vadd.f32 0.0009, %v1349_v46 }
 0xc74   : > { %1592 = vrot.lane.b32.xlu1 %v6111_v14, %s5088_s23  ;;  %v6189_v22 = vadd.f32 0.0009, %v1348_v7 }
 0xc75   : > { %v6115_v54 = vpop.eup %4990 }
 0xc76   : > { %1590 = vrot.lane.b32.xlu0 %v6115_v54, %s5088_s23 }
 0xc77   : > { %v4993_v57 = vpop.eup %4992 }
 0xc78   : > { %1596 = vrot.lane.b32.xlu1 %v4993_v57, %s5088_s23 }
 0xc79   : > { %v4995_v21 = vpop.eup %4994 }
 0xc7a   : > { %1594 = vrot.lane.b32.xlu0 %v4995_v21, %s5088_s23 }
 0xc7b   : > { %v4997_v8 = vpop.eup %4996 }
 0xc7c   : > { %1600 = vrot.lane.b32.xlu1 %v4997_v8, %s5088_s23 }
 0xc7d   : > { %v4999_v26 = vpop.eup %4998 }
 0xc7e   : > { %1598 = vrot.lane.b32.xlu0 %v4999_v26, %s5088_s23 }
 0xc80   : > { %1664 = vrot.lane.b32.xlu1 %v6130_v13, %s5088_s23 }
 0xc82   : > { %1662 = vrot.lane.b32.xlu0 %v6135_v9, %s5088_s23 }
 0xc84   : > { %1668 = vrot.lane.b32.xlu1 %v6141_v44, %s5088_s23 }
 0xc86   : > { %1666 = vrot.lane.b32.xlu0 %v6147_v5, %s5088_s23 }
 0xc88   : > { %1672 = vrot.lane.b32.xlu1 %v6153_v1, %s5088_s23 }
 0xc8a   : > { %1670 = vrot.lane.b32.xlu0 %v6159_v2, %s5088_s23 }
 0xc8c   : > { %1676 = vrot.lane.b32.xlu1 %v6165_v62, %s5088_s23 }
 0xc8e   : > { %1674 = vrot.lane.b32.xlu0 %v6171_v17, %s5088_s23 }
 0xc90   : > { %1680 = vrot.lane.b32.xlu1 %v6177_v52, %s5088_s23 }
 0xc92   : > { %1678 = vrot.lane.b32.xlu0 %v6181_v58, %s5088_s23 }
 0xc94   : > { %1684 = vrot.lane.b32.xlu1 %v6185_v56, %s5088_s23 }
 0xc96   : > { %1682 = vrot.lane.b32.xlu0 %v6189_v22, %s5088_s23 }
 0xc98   : > { %1712 = vrot.lane.b32.xlu1 %v6084_v25, %s5090_s3  ;;  %v1497_v25 = vpop.permute.xlu1 %1496 }
 0xc9a   : > { %1710 = vrot.lane.b32.xlu0 %v6089_v10, %s5090_s3  ;;  %v1495_v10 = vpop.permute.xlu0 %1494 }
 0xc9b   : > { %v1530_v36 = vadd.f32 %v1495_v10, %v5936_v48 }
 0xc9c   : > { %1716 = vrot.lane.b32.xlu1 %v6095_v30, %s5090_s3  ;;  %v1501_v30 = vpop.permute.xlu1 %1500 }
 0xc9d   : > { %v1542_v59 = vadd.f32 0.0001, %v1530_v36 }
 0xc9e   : > { %1714 = vrot.lane.b32.xlu0 %v6099_v49, %s5090_s3  ;;  %v1499_v35 = vpop.permute.xlu0 %1498 }
 0xca0   : > { %1720 = vrot.lane.b32.xlu1 %v6103_v43, %s5090_s3  ;;  %v1505_v63 = vpop.permute.xlu1 %1504 }
 0xca1   : > { %v1535_v12 = vadd.f32 %v1505_v63, %v5954_v3 }
 0xca2   : > { %1718 = vrot.lane.b32.xlu0 %v6107_v6, %s5090_s3  ;;  %v1503_v49 = vpop.permute.xlu0 %1502 }
 0xca4   : > { %1724 = vrot.lane.b32.xlu1 %v6111_v14, %s5090_s3  ;;  %v1509_v11 = vpop.permute.xlu1 %1508 }
 0xca6   : > { %1722 = vrot.lane.b32.xlu0 %v6115_v54, %s5090_s3  ;;  %v1507_v43 = vpop.permute.xlu0 %1506 }
 0xca7   : > { %v1536_v3 = vadd.f32 %v1507_v43, %v5972_v38 }
 0xca8   : > { %1728 = vrot.lane.b32.xlu1 %v4993_v57, %s5090_s3  ;;  %v6219_v6 = vpop.permute.xlu1 %1512 }
 0xca9   : > { %v1548_v38 = vadd.f32 0.0001, %v1536_v3 }
 0xcaa   : > { %1726 = vrot.lane.b32.xlu0 %v4995_v21, %s5090_s3  ;;  %v6221_v14 = vpop.permute.xlu0 %1510 }
 0xcab   : > { %v1538_v43 = vadd.f32 %v6221_v14, %v5984_v32  ;;  %v6929_v32 = vld [vmem:[#allocation25_spill] sm:$0xff] }
 0xcac   : > { %1732 = vrot.lane.b32.xlu1 %v4997_v8, %s5090_s3  ;;  %v6223_v54 = vpop.permute.xlu1 %1516 }
 0xcae   : > { %1730 = vrot.lane.b32.xlu0 %v4999_v26, %s5090_s3  ;;  %v6225_v45 = vpop.permute.xlu0 %1514  ;;  %s6938_s3 = smov 112  }
 0xcaf   : > { %v1540_v14 = vadd.f32 %v6225_v45, %v6929_v32 }
 0xcb1   : > { %v1552_v45 = vadd.f32 0.0001, %v1540_v14 }
 0xcda   : > { %v1581_v57 = vpop.permute.xlu1 %1580 }
 0xcdb   : > { %v1615_v8 = vmul.f32 %v1581_v57, %v6130_v13 }
 0xcdc   : > { %v1579_v19 = vpop.permute.xlu0 %1578 }
 0xcdd   : > { %v1614_v21 = vmul.f32 %v1579_v19, %v6135_v9 }
 0xcde   : > { %v1585_v40 = vpop.permute.xlu1 %1584 }
 0xcdf   : > { %1815 = vrot.lane.b32.xlu1 %v1614_v21, %s5088_s23  ;;  %v1617_v60 = vmul.f32 %v1585_v40, %v6141_v44  ;;  %v1531_v44 = vadd.f32 %v1497_v25, %v5930_v0  ;;  %v1532_v0 = vadd.f32 %v1499_v35, %v5948_v33  ;;  %v1547_v33 = vadd.f32 0.0001, %v1535_v12  ;;  %v6927_v21 = vld [vmem:[#allocation14_spill] sm:$0xff]  ;;  %v6928_v40 = vld [vmem:[#allocation15_spill] sm:$0xff] }
 0xce0   : > { %v1583_v55 = vpop.permute.xlu0 %1582  ;;  %v1537_v25 = vadd.f32 %v1509_v11, %v5966_v37 }
 0xce1   : > { %v1616_v26 = vmul.f32 %v1583_v55, %v6147_v5  ;;  %v1543_v53 = vadd.f32 0.0001, %v1531_v44  ;;  %v1628_v55 = vmul.f32 2.0, %v6928_v40  ;;  %v6935_v40 = vld [vmem:[#allocation21_spill] sm:$0xff] }
 0xce2   : > { %v1589_v23 = vpop.permute.xlu1 %1588  ;;  %v1549_v63 = vadd.f32 0.0001, %v1537_v25 }
 0xce3   : > { %1817 = vrot.lane.b32.xlu1 %v1615_v8, %s5088_s23  ;;  %v1619_v24 = vmul.f32 %v1589_v23, %v6153_v1  ;;  %v1533_v1 = vadd.f32 %v1501_v30, %v5942_v50  ;;  %5000 = vrcp.f32 %v1543_v53  ;;  %v1544_v50 = vadd.f32 0.0001, %v1532_v0 }
 0xce4   : > { %v1587_v61 = vpop.permute.xlu0 %1586  ;;  %5002 = vrcp.f32 %v1542_v59 }
 0xce5   : > { %v1618_v34 = vmul.f32 %v1587_v61, %v6159_v2  ;;  %v1545_v48 = vadd.f32 0.0001, %v1533_v1  ;;  %v1550_v61 = vadd.f32 0.0001, %v1538_v43  ;;  %v1640_v1 = vadd.f32 0.0001, %v1628_v55 }
 0xce6   : > { %v1593_v47 = vpop.permute.xlu1 %1592  ;;  %v1634_v55 = vmul.f32 2.0, %v6935_v40 }
 0xce7   : > { %1819 = vrot.lane.b32.xlu1 %v1616_v26, %s5088_s23  ;;  %v1621_v42 = vmul.f32 %v1593_v47, %v6165_v62  ;;  %v1534_v62 = vadd.f32 %v1503_v49, %v5960_v4  ;;  %5004 = vrcp.f32 %v1545_v48  ;;  %v1627_v4 = vmul.f32 2.0, %v5869_v18  ;;  %v6926_v18 = vld [vmem:[#allocation24_spill] sm:$0xff] }
 0xce8   : > { %v1591_v29 = vpop.permute.xlu0 %1590  ;;  %5006 = vrcp.f32 %v1544_v50  ;;  %v1539_v49 = vadd.f32 %v6219_v6, %v5978_v20  ;;  %v1541_v57 = vadd.f32 %v6223_v54, %v6926_v18  ;;  %v6934_v18 = vld [vmem:[#allocation20_spill] sm:$0xff] }
 0xce9   : > { %v1620_v27 = vmul.f32 %v1591_v29, %v6171_v17  ;;  %5008 = vrcp.f32 %v1547_v33  ;;  %v1639_v6 = vadd.f32 0.0001, %v1627_v4  ;;  %v6930_v29 = vld [vmem:[#allocation16_spill] sm:$0xff] }
 0xcea   : > { %v1597_v51 = vpop.permute.xlu1 %1596  ;;  %v1551_v20 = vadd.f32 0.0001, %v1539_v49 }
 0xceb   : > { %1821 = vrot.lane.b32.xlu1 %v1617_v60, %s5088_s23  ;;  %v1623_v46 = vmul.f32 %v1597_v51, %v6177_v52  ;;  %v1546_v52 = vadd.f32 0.0001, %v1534_v62  ;;  %v1631_v60 = vmul.f32 2.0, %v6930_v29  ;;  %v1553_v51 = vadd.f32 0.0001, %v1541_v57 }
 0xcec   : > { %v6235_v9 = vpop.permute.xlu0 %1594 }
 0xced   : > { %5010 = vrcp.f32 %v1546_v52  ;;  %v1643_v12 = vadd.f32 0.0001, %v1631_v60  ;;  %v6933_v52 = vld [vmem:[#allocation19_spill] sm:$0xff] }
 0xcee   : > { %v1601_v13 = vpop.permute.xlu1 %1600  ;;  %5012 = vrcp.f32 %v1549_v63  ;;  %v1632_v4 = vmul.f32 2.0, %v6933_v52 }
 0xcef   : > { %1823 = vrot.lane.b32.xlu1 %v1618_v34, %s5088_s23  ;;  %v1625_v37 = vmul.f32 %v1601_v13, %v6185_v56  ;;  %5014 = vrcp.f32 %v1548_v38 }
 0xcf0   : > { %v1599_v16 = vpop.permute.xlu0 %1598  ;;  %v5001_v56 = vpop.eup %5000  ;;  %5016 = vrcp.f32 %v1551_v20 }
 0xcf1   : > { %v1624_v10 = vmul.f32 %v1599_v16, %v6189_v22  ;;  %v1626_v22 = vmul.f32 2.0, %v5872_v31  ;;  %v1629_v31 = vmul.f32 2.0, %v6927_v21  ;;  %v5003_v54 = vpop.eup %5002  ;;  %5018 = vrcp.f32 %v1550_v61 }
 0xcf2   : > { %v1665_v5 = vpop.permute.xlu1 %1664  ;;  %5020 = vrcp.f32 %v1553_v51 }
 0xcf3   : > { %1825 = vrot.lane.b32.xlu1 %v1619_v24, %s5088_s23  ;;  %v1638_v8 = vadd.f32 0.0001, %v1626_v22  ;;  %v1699_v26 = vmul.f32 %v1665_v5, %v1639_v6  ;;  %v1641_v53 = vadd.f32 0.0001, %v1629_v31  ;;  %5022 = vrcp.f32 %v1552_v45 }
 0xcf4   : > { %v6241_v15 = vpop.permute.xlu0 %1662  ;;  %v5005_v44 = vpop.eup %5004 }
 0xcf5   : > { %v1698_v13 = vmul.f32 %v6241_v15, %v1638_v8  ;;  %v5007_v0 = vpop.eup %5006 }
 0xcf6   : > { %v6245_v39 = vpop.permute.xlu1 %1668  ;;  %v5009_v25 = vpop.eup %5008 }
 0xcf7   : > { %1827 = vrot.lane.b32.xlu1 %v1620_v27, %s5088_s23  ;;  %v6931_v27 = vld [vmem:[#allocation17_spill] sm:$0xff]  ;;  %v1701_v48 = vmul.f32 %v6245_v39, %v1641_v53 }
 0xcf8   : > { %v6249_v2 = vpop.permute.xlu0 %1666  ;;  %v1630_v36 = vmul.f32 2.0, %v6931_v27 }
 0xcf9   : > { %v1700_v15 = vmul.f32 %v6249_v2, %v1640_v1  ;;  %v1635_v2 = vmul.f32 2.0, %v6934_v18  ;;  %v1646_v1 = vadd.f32 0.0001, %v1634_v55 }
 0xcfa   : > { %v6253_v41 = vpop.permute.xlu1 %1672  ;;  %v1642_v63 = vadd.f32 0.0001, %v1630_v36  ;;  %v5011_v43 = vpop.eup %5010  ;;  %v6937_v36 = vld [vmem:[#allocation23_spill] sm:$0xff] }
 0xcfb   : > { %1829 = vrot.lane.b32.xlu1 %v1621_v42, %s5088_s23  ;;  %v1703_v20 = vmul.f32 %v6253_v41, %v1643_v12  ;;  %v5013_v31 = vpop.eup %5012  ;;  %v1647_v60 = vadd.f32 0.0001, %v1635_v2  ;;  %v1636_v53 = vmul.f32 2.0, %v6937_v36 }
 0xcfc   : > { %v6257_v17 = vpop.permute.xlu0 %1670  ;;  %v5015_v14 = vpop.eup %5014 }
 0xcfd   : > { %v1702_v6 = vmul.f32 %v6257_v17, %v1642_v63 }
 0xcfe   : > { %v6261_v7 = vpop.permute.xlu1 %1676 }
 0xcff   : > { %1833 = vrot.lane.b32.xlu1 %v1623_v46, %s5088_s23 }
 0xd00   : > { %v6265_v28 = vpop.permute.xlu0 %1674 }
 0xd02   : > { %v6270_v30 = vpop.permute.xlu1 %1680 }
 0xd03   : > { %1835 = vrot.lane.b32.xlu1 %v1624_v10, %s5088_s23  ;;  %v6932_v10 = vld [vmem:[#allocation18_spill] sm:$0xff] }
 0xd04   : > { %v6274_v35 = vpop.permute.xlu0 %1678  ;;  %v1633_v3 = vmul.f32 2.0, %v6932_v10  ;;  %v1648_v10 = vadd.f32 0.0001, %v1636_v53 }
 0xd06   : > { %v6280_v11 = vpop.permute.xlu1 %1684  ;;  %v1645_v8 = vadd.f32 0.0001, %v1633_v3 }
 0xd07   : > { %1837 = vrot.lane.b32.xlu1 %v1625_v37, %s5088_s23 }
 0xd08   : > { %v6287_v19 = vpop.permute.xlu0 %1682  ;;  %v1705_v17 = vmul.f32 %v6261_v7, %v1645_v8  ;;  %v6940_v8 = vld [vmem:[#allocation3_spill] sm:$0xff] }
 0xd0a   : > { %v1713_v23 = vpop.permute.xlu1 %1712 }
 0xd0b   : > { %v1747_v47 = vmul.f32 %v5001_v56, %v1713_v23  ;;  %v1644_v23 = vadd.f32 0.0001, %v1632_v4 }
 0xd0c   : > { %v1711_v34 = vpop.permute.xlu0 %1710 }
 0xd0d   : > { %v1759_v16 = vmul.f32 %v1747_v47, %v1699_v26  ;;  %v1746_v24 = vmul.f32 %v5003_v54, %v1711_v34  ;;  %v1704_v34 = vmul.f32 %v6265_v28, %v1644_v23  ;;  %v6941_v23 = vld [vmem:[#allocation4_spill] sm:$0xff] }
 0xd0e   : > { %v1717_v42 = vpop.permute.xlu1 %1716 }
 0xd0f   : > { %v1758_v5 = vmul.f32 %v1746_v24, %v1698_v13  ;;  %v1749_v59 = vmul.f32 %v5005_v44, %v1717_v42  ;;  %v1771_v50 = vsel %vm857_vm0, %v1759_v16, 0.0  ;;  %v5017_v24 = vpop.eup %5016  ;;  %v6936_v44 = vld [vmem:[#allocation22_spill] sm:$0xff] }
 0xd10   : > { %v1715_v46 = vpop.permute.xlu0 %1714  ;;  %v1637_v27 = vmul.f32 2.0, %v6936_v44  ;;  %v5019_v12 = vpop.eup %5018 }
 0xd11   : > { %v1770_v62 = vsel %vm857_vm0, %v1758_v5, 0.0  ;;  %v1748_v33 = vmul.f32 %v5007_v0, %v1715_v46  ;;  %v1761_v22 = vmul.f32 %v1749_v59, %v1701_v48  ;;  %v5021_v28 = vpop.eup %5020 }
 0xd12   : > { %v1772_v49 = vadd.f32 %v1771_v50, %v1770_v62  ;;  %v1721_v37 = vpop.permute.xlu1 %1720  ;;  %v1706_v50 = vmul.f32 %v6274_v35, %v1646_v1 }
 0xd13   : > { %v1760_v39 = vmul.f32 %v1748_v33, %v1700_v15  ;;  %v1751_v38 = vmul.f32 %v5009_v25, %v1721_v37  ;;  %v1775_v26 = vsel %vm857_vm0, %v1761_v22, 0.0  ;;  %v1707_v15 = vmul.f32 %v6270_v30, %v1647_v60  ;;  %v5023_v22 = vpop.eup %5022 }
 0xd14   : > { %v1719_v57 = vpop.permute.xlu0 %1718  ;;  %v1649_v25 = vadd.f32 0.0001, %v1637_v27  ;;  %v1708_v30 = vmul.f32 %v6287_v19, %v1648_v10  ;;  %v6939_v19 = vld [vmem:[#allocation2_spill] sm:$0xff] }
 0xd15   : > { %v1773_v56 = vsel %vm857_vm0, %v1760_v39, 0.0  ;;  %v1750_v21 = vmul.f32 %v5011_v43, %v1719_v57  ;;  %v1763_v47 = vmul.f32 %v1751_v38, %v1703_v20 }
 0xd16   : > { %v1774_v61 = vadd.f32 %v1773_v56, %v1772_v49  ;;  %v1725_v32 = vpop.permute.xlu1 %1724  ;;  %v1709_v43 = vmul.f32 %v6280_v11, %v1649_v25  ;;  %v1622_v11 = vmul.f32 %v6235_v9, %v6181_v58  ;;  %v4116_v9 = vld [vmem:[%s6844_s11] sm:$0xf] }
 0xd17   : > { %v1762_v54 = vmul.f32 %v1750_v21, %v1702_v6  ;;  %v1753_v29 = vmul.f32 %v5013_v31, %v1725_v32  ;;  %v1779_v5 = vsel %vm857_vm0, %v1763_v47, 0.0  ;;  %v6943_v32 = vld [vmem:[#allocation6_spill] sm:$0xff] }
 0xd18   : > { %v1776_v41 = vadd.f32 %v1775_v26, %v1774_v61  ;;  %v1723_v51 = vpop.permute.xlu0 %1722  ;;  %v6942_v61 = vld [vmem:[#allocation5_spill] sm:$0xff]  ;;  %v4201_v26 = vsel %vm3095_vm7, %v4116_v9, 0  ;;  %vm4137_vm7 = vcmask 15360  }
 0xd19   : > { %v1777_v13 = vsel %vm857_vm0, %v1762_v54, 0.0  ;;  %v1752_v16 = vmul.f32 %v5015_v14, %v1723_v51  ;;  %v1765_v59 = vmul.f32 %v1753_v29, %v1705_v17  ;;  %v6944_v14 = vld [vmem:[#allocation7_spill] sm:$0xff]  ;;  %4882 = vmatpush3.bf16.msra.mxu0 %v4201_v26 }
 0xd1a   : > { %v1778_v42 = vadd.f32 %v1777_v13, %v1776_v41  ;;  %v1729_v45 = vpop.permute.xlu1 %1728 }
 0xd1b   : > { %v1764_v0 = vmul.f32 %v1752_v16, %v1704_v34  ;;  %v1755_v48 = vmul.f32 %v5017_v24, %v1729_v45  ;;  %v1783_v4 = vsel %vm857_vm0, %v1765_v59, 0.0 }
 0xd1c   : > { %v1780_v7 = vadd.f32 %v1779_v5, %v1778_v42  ;;  %v1727_v46 = vpop.permute.xlu0 %1726 }
 0xd1d   : > { %v1781_v62 = vsel %vm857_vm0, %v1764_v0, 0.0  ;;  %v1754_v33 = vmul.f32 %v5019_v12, %v1727_v46  ;;  %v1767_v63 = vmul.f32 %v1755_v48, %v1707_v15 }
 0xd1e   : > { %v1782_v3 = vadd.f32 %v1781_v62, %v1780_v7  ;;  %v1733_v52 = vpop.permute.xlu1 %1732 }
 0xd1f   : > { %v1766_v49 = vmul.f32 %v1754_v33, %v1706_v50  ;;  %v1757_v37 = vmul.f32 %v5021_v28, %v1733_v52  ;;  %v1787_v57 = vsel %vm857_vm0, %v1767_v63, 0.0 }
 0xd20   : > { %v1784_v39 = vadd.f32 %v1783_v4, %v1782_v3  ;;  %v1731_v38 = vpop.permute.xlu0 %1730 }
 0xd21   : > { %v1785_v35 = vsel %vm857_vm0, %v1766_v49, 0.0  ;;  %v1756_v18 = vmul.f32 %v5023_v22, %v1731_v38  ;;  %v1769_v20 = vmul.f32 %v1757_v37, %v1709_v43 }
 0xd22   : > { %v1786_v2 = vadd.f32 %v1785_v35, %v1784_v39 }
 0xd23   : > { %v1768_v6 = vmul.f32 %v1756_v18, %v1708_v30  ;;  %v1791_v40 = vsel %vm857_vm0, %v1769_v20, 0.0 }
 0xd24   : > { %v1788_v56 = vadd.f32 %v1787_v57, %v1786_v2 }
 0xd25   : > { %v1789_v21 = vsel %vm857_vm0, %v1768_v6, 0.0 }
 0xd26   : > { %v1790_v31 = vadd.f32 %v1789_v21, %v1788_v56 }
 0xd28   : > { %v1792_v55 = vadd.f32 %v1791_v40, %v1790_v31 }
 0xd2a   : > { %1793 = vadd.xlane.f32.xlu0 %v1792_v55 }
 0xd31   : > { %v4189_v58 = vpop.f32.mrf.mxu1 }
 0xd33   : > { %v4879_v47 = vpop.f32.mrf.mxu1 }
 0xd34   : > { %v6388_v47 = vmul.f32 %v6939_v19, %v6939_v19 }
 0xd35   : > { %v4192_v54 = vpop.f32.mrf.mxu1 }
 0xd36   : > { %v4196_v29 = vpack.c.bf16 %v4192_v54, %v4189_v58  ;;  %v6392_v54 = vmul.f32 %v6940_v8, %v6940_v8 }
 0xd37   : > { %v4880_v60 = vpop.f32.mrf.mxu1 }
 0xd38   : > { %4884 = vmatmul.mubr.msk.bf16.vlgmr.msra.gmra.mxu0 %vm3075_vm8, %v4196_v29  ;;  %v6400_v29 = vmul.f32 %v6941_v23, %v6941_v23  ;;  %v6404_v60 = vmul.f32 %v6942_v61, %v6942_v61  ;;  %vm4379_vm8 = vcmask 32768  }
 0xd40   : > { %1831 = vrot.lane.b32.xlu0 %v1622_v11, %s5088_s23 }
 0xd44   : > { %2483 = vrot.lane.b32.xlu0 %v6939_v19, %s6938_s3 }
 0xd48   : > { %2485 = vrot.lane.b32.xlu0 %v6940_v8, %s6938_s3 }
 0xd4c   : > { %2487 = vrot.lane.b32.xlu0 %v6941_v23, %s6938_s3 }
 0xd50   : > { %2489 = vrot.lane.b32.xlu0 %v6942_v61, %s6938_s3 }
 0xd51   : > { %v1816_v41 = vpop.permute.xlu1 %1815 }
 0xd52   : > { %v1851_v36 = vsel %vm857_vm0, %v1816_v41, 0.0  ;;  %v6412_v41 = vmul.f32 %v6943_v32, %v6943_v32 }
 0xd54   : > { %2491 = vrot.lane.b32.xlu0 %v6943_v32, %s6938_s3 }
 0xd55   : > { %v1818_v51 = vpop.permute.xlu1 %1817 }
 0xd56   : > { %v1852_v44 = vsel %vm857_vm0, %v1818_v51, 0.0  ;;  %v6416_v51 = vmul.f32 %v6944_v14, %v6944_v14 }
 0xd57   : > { %v1853_v1 = vadd.f32 %v1852_v44, %v1851_v36 }
 0xd58   : > { %2493 = vrot.lane.b32.xlu0 %v6944_v14, %s6938_s3 }
 0xd59   : > { %v1820_v17 = vpop.permute.xlu1 %1819 }
 0xd5a   : > { %v1854_v53 = vsel %vm857_vm0, %v1820_v17, 0.0 }
 0xd5b   : > { %v1855_v45 = vadd.f32 %v1854_v53, %v1853_v1 }
 0xd5d   : > { %v1822_v34 = vpop.permute.xlu1 %1821 }
 0xd5e   : > { %v1856_v42 = vsel %vm857_vm0, %v1822_v34, 0.0 }
 0xd5f   : > { %v1857_v59 = vadd.f32 %v1856_v42, %v1855_v45 }
 0xd61   : > { %v1824_v13 = vpop.permute.xlu1 %1823 }
 0xd62   : > { %v1858_v5 = vsel %vm857_vm0, %v1824_v13, 0.0 }
 0xd63   : > { %v1859_v12 = vadd.f32 %v1858_v5, %v1857_v59 }
 0xd65   : > { %v1826_v16 = vpop.permute.xlu1 %1825 }
 0xd66   : > { %v1860_v48 = vsel %vm857_vm0, %v1826_v16, 0.0 }
 0xd67   : > { %v1861_v46 = vadd.f32 %v1860_v48, %v1859_v12 }
 0xd69   : > { %v1828_v24 = vpop.permute.xlu1 %1827 }
 0xd6a   : > { %v1862_v7 = vsel %vm857_vm0, %v1828_v24, 0.0 }
 0xd6b   : > { %v1863_v62 = vadd.f32 %v1862_v7, %v1861_v46 }
 0xd6d   : > { %v1830_v27 = vpop.permute.xlu1 %1829 }
 0xd6e   : > { %v1864_v15 = vsel %vm857_vm0, %v1830_v27, 0.0 }
 0xd6f   : > { %v1865_v10 = vadd.f32 %v1864_v15, %v1863_v62 }
 0xd71   : > { %v1834_v0 = vpop.permute.xlu1 %1833 }
 0xd72   : > { %v1868_v49 = vsel %vm857_vm0, %v1834_v0, 0.0 }
 0xd75   : > { %v1836_v33 = vpop.permute.xlu1 %1835 }
 0xd76   : > { %v1870_v43 = vsel %vm857_vm0, %v1836_v33, 0.0 }
 0xd79   : > { %v1838_v22 = vpop.permute.xlu1 %1837 }
 0xd7a   : > { %v1872_v2 = vsel %vm857_vm0, %v1838_v22, 0.0 }
 0xdb3   : > { %v1794_v28 = vpop.xlane.xlu0 %1793 }
 0xdb4   : > { %v1795_v50 = vrot.slane %v1794_v28, 4 }
 0xdb6   : > { %v1796_v25 = vadd.f32 %v1795_v50, %v1794_v28 }
 0xdb7   : > { %v1832_v3 = vpop.permute.xlu0 %1831 }
 0xdb8   : > { %v1866_v52 = vsel %vm857_vm0, %v1832_v3, 0.0  ;;  %v1797_v4 = vrot.slane %v1796_v25, 2  ;;  %vm3503_vm0 = vcmask 72704  }
 0xdb9   : > { %v1867_v63 = vadd.f32 %v1866_v52, %v1865_v10 }
 0xdba   : > { %v1798_v37 = vadd.f32 %v1797_v4, %v1796_v25 }
 0xdbb   : > { %v1869_v39 = vadd.f32 %v1868_v49, %v1867_v63  ;;  %v2484_v38 = vpop.permute.xlu0 %2483 }
 0xdbc   : > { %v6356_v30 = vmul.f32 %v2484_v38, %v6939_v19  ;;  %v1799_v35 = vrot.slane %v1798_v37, 1 }
 0xdbd   : > { %v1871_v18 = vadd.f32 %v1870_v43, %v1869_v39 }
 0xdbe   : > { %2513 = vrot.lane.b32.xlu0 %v6356_v30, %s6945_s1  ;;  %v1800_v57 = vadd.f32 %v1799_v35, %v1798_v37 }
 0xdbf   : > { %v2486_v20 = vpop.permute.xlu0 %2485  ;;  %v1873_v6 = vadd.f32 %v1872_v2, %v1871_v18 }
 0xdc0   : > { %4887 = vpush %v1800_v57  ;;  %v6377_v9 = vmul.f32 %v2486_v20, %v6940_v8 }
 0xdc1   : > { %1874 = vadd.xlane.f32.xlu1 %v1873_v6 }
 0xdc3   : > { %v2488_v56 = vpop.permute.xlu0 %2487 }
 0xdc4   : > { %v6362_v21 = vmul.f32 %v2488_v56, %v6941_v23 }
 0xdc6   : > { %2517 = vrot.lane.b32.xlu0 %v6362_v21, %s6945_s1 }
 0xdc7   : > { %v2490_v31 = vpop.permute.xlu0 %2489 }
 0xdc8   : > { %v6367_v40 = vmul.f32 %v2490_v31, %v6942_v61 }
 0xdca   : > { %2519 = vrot.lane.b32.xlu0 %v6367_v40, %s6945_s1 }
 0xdcb   : > { %v2492_v55 = vpop.permute.xlu0 %2491 }
 0xdcc   : > { %v6372_v11 = vmul.f32 %v2492_v55, %v6943_v32 }
 0xdce   : > { %2521 = vrot.lane.b32.xlu0 %v6372_v11, %s6945_s1 }
 0xdcf   : > { %v2494_v58 = vpop.permute.xlu0 %2493 }
 0xdd0   : > { %v6380_v26 = vmul.f32 %v2494_v58, %v6944_v14 }
 0xdd2   : > { %2523 = vrot.lane.b32.xlu0 %v6380_v26, %s6945_s1  ;;  %2515 = vrot.lane.b32.xlu1 %v6377_v9, %s6945_s1  ;;  %s5112_s1 = smov 125  }
 0xdd6   : > { %2555 = vrot.lane.b32.xlu0 %v6388_v47, %s5088_s23  ;;  %2557 = vrot.lane.b32.xlu1 %v6392_v54, %s5088_s23 }
 0xdda   : > { %2559 = vrot.lane.b32.xlu0 %v6400_v29, %s5088_s23  ;;  %2561 = vrot.lane.b32.xlu1 %v6404_v60, %s5088_s23 }
 0xdde   : > { %2563 = vrot.lane.b32.xlu0 %v6412_v41, %s5088_s23  ;;  %2565 = vrot.lane.b32.xlu1 %v6416_v51, %s5088_s23  ;;  %s5104_s23 = smov 80  }
 0xde2   : > { %2579 = vrot.lane.b32.xlu0 %v6388_v47, %s5096_s30  ;;  %2581 = vrot.lane.b32.xlu1 %v6392_v54, %s5096_s30 }
 0xde6   : > { %2583 = vrot.lane.b32.xlu0 %v6400_v29, %s5096_s30  ;;  %2585 = vrot.lane.b32.xlu1 %v6404_v60, %s5096_s30 }
 0xdea   : > { %2587 = vrot.lane.b32.xlu0 %v6412_v41, %s5096_s30  ;;  %2589 = vrot.lane.b32.xlu1 %v6416_v51, %s5096_s30 }
 0xdee   : > { %2615 = vrot.lane.b32.xlu0 %v6388_v47, %s6938_s3  ;;  %2617 = vrot.lane.b32.xlu1 %v6392_v54, %s6938_s3 }
 0xdf2   : > { %2619 = vrot.lane.b32.xlu0 %v6400_v29, %s6938_s3  ;;  %2621 = vrot.lane.b32.xlu1 %v6404_v60, %s6938_s3 }
 0xdf6   : > { %2623 = vrot.lane.b32.xlu0 %v6412_v41, %s6938_s3  ;;  %2625 = vrot.lane.b32.xlu1 %v6416_v51, %s6938_s3  ;;  %s5109_s3 = smov 119  }
 0xdf8   : > { %v6454_v44 = vpop.f32.mrf.mxu0 }
 0xdfa   : > { %v4885_v27 = vpop.f32.mrf.mxu0 }
 0xdfc   : > { %v6456_v5 = vpop.f32.mrf.mxu0 }
 0xdfe   : > { %v4886_v48 = vpop.f32.mrf.mxu0 }
 0xe30   : > { %v2514_v17 = vpop.permute.xlu0 %2513 }
 0xe38   : > { %v6446_v34 = vpop.permute.xlu0 %2517 }
 0xe3c   : > { %v6448_v13 = vpop.permute.xlu0 %2519 }
 0xe40   : > { %v6450_v16 = vpop.permute.xlu0 %2521 }
 0xe44   : > { %v6452_v24 = vpop.permute.xlu0 %2523 }
 0xe48   : > { %v2556_v36 = vpop.permute.xlu0 %2555 }
 0xe49   : > { %v2573_v28 = vsub.f32 %v6939_v19, %v2556_v36  ;;  %v2531_v36 = vsub.f32 %v6939_v19, %v2514_v17 }
 0xe4a   : > { %v1875_v53 = vpop.xlane.xlu1 %1874 }
 0xe4b   : > { %v1876_v1 = vrot.slane %v1875_v53, 4 }
 0xe4c   : > { %v2560_v42 = vpop.permute.xlu0 %2559 }
 0xe4d   : > { %v1877_v45 = vadd.f32 %v1876_v1, %v1875_v53  ;;  %v2575_v10 = vsub.f32 %v6941_v23, %v2560_v42  ;;  %v2537_v42 = vmul.f32 2.0, %v2531_v36 }
 0xe4e   : > { %v6458_v59 = vpop.permute.xlu1 %2515 }
 0xe4f   : > { %v1878_v0 = vrot.slane %v1877_v45, 2  ;;  %v2532_v19 = vsub.f32 %v6940_v8, %v6458_v59  ;;  %v2536_v59 = vsub.f32 %v6944_v14, %v6452_v24 }
 0xe50   : > { %v2564_v12 = vpop.permute.xlu0 %2563 }
 0xe51   : > { %v1879_v7 = vadd.f32 %v1878_v0, %v1877_v45  ;;  %v2577_v49 = vsub.f32 %v6943_v32, %v2564_v12  ;;  %v2533_v45 = vsub.f32 %v6941_v23, %v6446_v34  ;;  %v6472_v12 = vadd.f32 0.0009, %v2537_v42 }
 0xe52   : > { %v2558_v46 = vpop.permute.xlu1 %2557 }
 0xe53   : > { %v1880_v15 = vrot.slane %v1879_v7, 1  ;;  %v2574_v39 = vsub.f32 %v6940_v8, %v2558_v46  ;;  %v2535_v46 = vsub.f32 %v6943_v32, %v6450_v16 }
 0xe54   : > { %v2580_v50 = vpop.permute.xlu0 %2579 }
 0xe55   : > { %v2597_v62 = vsub.f32 %v2573_v28, %v2580_v50  ;;  %v1881_v33 = vadd.f32 %v1880_v15, %v1879_v7  ;;  %v2539_v7 = vmul.f32 2.0, %v2533_v45  ;;  %v2541_v34 = vmul.f32 2.0, %v2535_v46 }
 0xe56   : > { %v2562_v25 = vpop.permute.xlu1 %2561  ;;  %v2534_v28 = vsub.f32 %v6942_v61, %v6448_v13  ;;  %v2538_v15 = vmul.f32 2.0, %v2532_v19  ;;  %v2542_v13 = vmul.f32 2.0, %v2536_v59  ;;  %v2682_v59 = vmul.f32 2.0, %v6377_v9 }
 0xe57   : > { %v2603_v3 = vadd.f32 0.0009, %v2597_v62  ;;  %4889 = vpush %v1881_v33  ;;  %v2576_v2 = vsub.f32 %v6942_v61, %v2562_v25  ;;  %v6481_v17 = vadd.f32 0.0009, %v2539_v7  ;;  %v6488_v16 = vadd.f32 0.0009, %v2541_v34 }
 0xe58   : > { %v2584_v52 = vpop.permute.xlu0 %2583  ;;  %v2540_v8 = vmul.f32 2.0, %v2534_v28  ;;  %v6493_v50 = vadd.f32 0.0009, %v2538_v15  ;;  %v6504_v62 = vadd.f32 0.0009, %v2542_v13  ;;  %v6947_v33 = vld [vmem:[#allocation11_spill] sm:$0xff] }
 0xe59   : > { %5024 = vrcp.f32 %v2603_v3  ;;  %v2599_v4 = vsub.f32 %v2575_v10, %v2584_v52  ;;  %v6520_v25 = vmul.f32 %v6947_v33, %v6947_v33  ;;  %v6948_v10 = vld [vmem:[#allocation8_spill] sm:$0xff]  ;;  %v6949_v52 = vld [vmem:[#allocation10_spill] sm:$0xff] }
 0xe5a   : > { %v2566_v63 = vpop.permute.xlu1 %2565  ;;  %v6499_v61 = vadd.f32 0.0009, %v2540_v8  ;;  %v6525_v3 = vmul.f32 %v6948_v10, %v6948_v10 }
 0xe5b   : > { %v2605_v37 = vadd.f32 0.0009, %v2599_v4  ;;  %v2578_v56 = vsub.f32 %v6944_v14, %v2566_v63  ;;  %v6946_v14 = vld [vmem:[#allocation9_spill] sm:$0xff]  ;;  %v6534_v4 = vmul.f32 %v6949_v52, %v6949_v52  ;;  %v6950_v63 = vld [vmem:[#allocation12_spill] sm:$0xff] }
 0xe5c   : > { %v2588_v22 = vpop.permute.xlu0 %2587  ;;  %v6515_v24 = vmul.f32 %v6946_v14, %v6946_v14 }
 0xe5d   : > { %5026 = vrcp.f32 %v2605_v37  ;;  %v2601_v38 = vsub.f32 %v2577_v49, %v2588_v22  ;;  %v6541_v49 = vmul.f32 %v6950_v63, %v6950_v63  ;;  %v6951_v37 = vld [vmem:[#allocation13_spill] sm:$0xff] }
 0xe5e   : > { %v2582_v43 = vpop.permute.xlu1 %2581  ;;  %v6551_v22 = vmul.f32 %v6951_v37, %v6951_v37 }
 0xe5f   : > { %v2607_v35 = vadd.f32 0.0009, %v2601_v38  ;;  %v2598_v18 = vsub.f32 %v2574_v39, %v2582_v43  ;;  %v6561_v39 = vmul.f32 %v6454_v44, %v6454_v44  ;;  %v6569_v43 = vmul.f32 %v6456_v5, %v6456_v5 }
 0xe60   : > { %v2616_v38 = vpop.permute.xlu0 %2615 }
 0xe61   : > { %5028 = vrcp.f32 %v2607_v35  ;;  %v2604_v57 = vadd.f32 0.0009, %v2598_v18 }
 0xe62   : > { %v2586_v20 = vpop.permute.xlu1 %2585 }
 0xe63   : > { %5030 = vrcp.f32 %v2604_v57  ;;  %v2600_v6 = vsub.f32 %v2576_v2, %v2586_v20 }
 0xe64   : > { %v2620_v35 = vpop.permute.xlu0 %2619 }
 0xe65   : > { %v2606_v31 = vadd.f32 0.0009, %v2600_v6 }
 0xe66   : > { %v5025_v55 = vpop.eup %5024  ;;  %v2590_v58 = vpop.permute.xlu1 %2589 }
 0xe67   : > { %5032 = vrcp.f32 %v2606_v31  ;;  %v2602_v27 = vsub.f32 %v2578_v56, %v2590_v58  ;;  %2657 = vrot.lane.b32.xlu0 %v5025_v55, %s5096_s30 }
 0xe68   : > { %v2624_v2 = vpop.permute.xlu0 %2623 }
 0xe69   : > { %v2608_v53 = vadd.f32 0.0009, %v2602_v27  ;;  %v2633_v27 = vadd.f32 %v2616_v38, %v6388_v47 }
 0xe6a   : > { %v5027_v1 = vpop.eup %5026  ;;  %v2618_v18 = vpop.permute.xlu1 %2617 }
 0xe6b   : > { %5034 = vrcp.f32 %v2608_v53  ;;  %2661 = vrot.lane.b32.xlu0 %v5027_v1, %s5096_s30  ;;  %v2635_v53 = vadd.f32 %v2620_v35, %v6400_v29  ;;  %v2639_v42 = vadd.f32 0.0001, %v2633_v27  ;;  %v2634_v45 = vadd.f32 %v2618_v18, %v6392_v54 }
 0xe6d   : > { %5036 = vrcp.f32 %v2639_v42  ;;  %v2640_v46 = vadd.f32 0.0001, %v2634_v45 }
 0xe6e   : > { %v5029_v0 = vpop.eup %5028  ;;  %v2622_v57 = vpop.permute.xlu1 %2621 }
 0xe6f   : > { %2665 = vrot.lane.b32.xlu0 %v5029_v0, %s5096_s30  ;;  %v2636_v19 = vadd.f32 %v2622_v57, %v6404_v60  ;;  %v2683_v60 = vmul.f32 2.0, %v6362_v21  ;;  %v2684_v57 = vmul.f32 2.0, %v6367_v40 }
 0xe70   : > { %v5031_v48 = vpop.eup %5030 }
 0xe71   : > { %2659 = vrot.lane.b32.xlu1 %v5031_v48, %s5096_s30  ;;  %v2642_v29 = vadd.f32 0.0001, %v2636_v19  ;;  %v2686_v19 = vmul.f32 2.0, %v6380_v26 }
 0xe73   : > { %2699 = vrot.lane.b32.xlu0 %v6472_v12, %s5104_s23 }
 0xe74   : > { %v5033_v23 = vpop.eup %5032 }
 0xe75   : > { %2663 = vrot.lane.b32.xlu1 %v5033_v23, %s5096_s30 }
 0xe77   : > { %2703 = vrot.lane.b32.xlu0 %v6481_v17, %s5104_s23 }
 0xe78   : > { %v5035_v32 = vpop.eup %5034 }
 0xe79   : > { %2667 = vrot.lane.b32.xlu1 %v5035_v32, %s5096_s30  ;;  %s5105_s30 = smov 18  }
 0xe7a   : > { %v5037_v13 = vpop.eup %5036 }
 0xe7b   : > { %2707 = vrot.lane.b32.xlu0 %v6488_v16, %s5104_s23 }
 0xe7d   : > { %2701 = vrot.lane.b32.xlu1 %v6493_v50, %s5104_s23 }
 0xe7f   : > { %2723 = vrot.lane.b32.xlu0 %v5025_v55, %s5089_s27  ;;  %v2626_v55 = vpop.permute.xlu1 %2625 }
 0xe80   : > { %v2638_v34 = vadd.f32 %v2626_v55, %v6416_v51  ;;  %v2685_v51 = vmul.f32 2.0, %v6372_v11 }
 0xe81   : > { %2705 = vrot.lane.b32.xlu1 %v6499_v61, %s5104_s23 }
 0xe82   : > { %v2644_v15 = vadd.f32 0.0001, %v2638_v34 }
 0xe83   : > { %2727 = vrot.lane.b32.xlu0 %v5027_v1, %s5089_s27 }
 0xe85   : > { %2709 = vrot.lane.b32.xlu1 %v6504_v62, %s5104_s23 }
 0xe87   : > { %2731 = vrot.lane.b32.xlu0 %v5029_v0, %s5089_s27 }
 0xe89   : > { %2725 = vrot.lane.b32.xlu1 %v5031_v48, %s5089_s27  ;;  %v2641_v48 = vadd.f32 0.0001, %v2635_v53 }
 0xe8b   : > { %5038 = vrcp.f32 %v2641_v48  ;;  %v2691_v48 = vadd.f32 0.0001, %v2685_v51 }
 0xe8c   : > { %5040 = vrcp.f32 %v2640_v46 }
 0xe8d   : > { %2729 = vrot.lane.b32.xlu1 %v5033_v23, %s5089_s27 }
 0xe91   : > { %2733 = vrot.lane.b32.xlu1 %v5035_v32, %s5089_s27  ;;  %s5106_s27 = smov 9   ;;  %v2681_v32 = vmul.f32 2.0, %v6356_v30 }
 0xe93   : > { %v2687_v35 = vadd.f32 0.0001, %v2681_v32 }
 0xe95   : > { %3371 = vrot.lane.b32.xlu1 %v6515_v24, %s5105_s30 }
 0xe99   : > { %3373 = vrot.lane.b32.xlu1 %v6520_v25, %s5105_s30 }
 0xe9d   : > { %3375 = vrot.lane.b32.xlu1 %v6525_v3, %s5105_s30 }
 0xea1   : > { %3387 = vrot.lane.b32.xlu1 %v6515_v24, %s5106_s27 }
 0xea5   : > { %3389 = vrot.lane.b32.xlu1 %v6520_v25, %s5106_s27 }
 0xea9   : > { %3377 = vrot.lane.b32.xlu1 %v6534_v4, %s5105_s30  ;;  %s5114_s30 = smov 15  }
 0xead   : > { %3391 = vrot.lane.b32.xlu1 %v6525_v3, %s5106_s27 }
 0xeb1   : > { %3918 = vrot.lane.b32.xlu1 %v6541_v49, %s5107_s28 }
 0xeb5   : > { %3393 = vrot.lane.b32.xlu1 %v6534_v4, %s5106_s27 }
 0xeb9   : > { %3926 = vrot.lane.b32.xlu1 %v6541_v49, %s5108_s0 }
 0xebd   : > { %3928 = vrot.lane.b32.xlu1 %v6551_v22, %s5108_s0 }
 0xec1   : > { %3323 = vrot.lane.b32.xlu1 %v6946_v14, %s5109_s3 }
 0xec5   : > { %3327 = vrot.lane.b32.xlu1 %v6948_v10, %s5109_s3 }
 0xec9   : > { %4272 = vrot.lane.b32.xlu1 %v6561_v39, %s5102_s4 }
 0xecd   : > { %4280 = vrot.lane.b32.xlu1 %v6561_v39, %s5110_s5 }
 0xed1   : > { %4274 = vrot.lane.b32.xlu1 %v6569_v43, %s5102_s4  ;;  %s5113_s4 = smov 27  }
 0xed5   : > { %3894 = vrot.lane.b32.xlu1 %v6950_v63, %s5111_s22 }
 0xed9   : > { %v2658_v20 = vpop.permute.xlu0 %2657  ;;  %4248 = vrot.lane.b32.xlu1 %v6454_v44, %s5112_s1 }
 0xeda   : > { %v2675_v6 = vmul.f32 %v2658_v20, %v6472_v12  ;;  %v2637_v12 = vadd.f32 %v2624_v2, %v6412_v41  ;;  %v5039_v2 = vpop.eup %5038 }
 0xedb   : > { %v5041_v30 = vpop.eup %5040 }
 0xedc   : > { %v2643_v47 = vadd.f32 0.0001, %v2637_v12  ;;  %v2690_v12 = vadd.f32 0.0001, %v2684_v57 }
 0xedd   : > { %v2662_v56 = vpop.permute.xlu0 %2661  ;;  %2780 = vrot.lane.b32.xlu1 %v2675_v6, %s5104_s23  ;;  %v2689_v6 = vadd.f32 0.0001, %v2683_v60 }
 0xede   : > { %v2677_v31 = vmul.f32 %v2662_v56, %v6481_v17  ;;  %5042 = vrcp.f32 %v2643_v47  ;;  %v2688_v56 = vadd.f32 0.0001, %v2682_v59 }
 0xedf   : > { %5044 = vrcp.f32 %v2642_v29 }
 0xee0   : > { %5046 = vrcp.f32 %v2644_v15 }
 0xee1   : > { %v6580_v58 = vpop.permute.xlu0 %2665  ;;  %2784 = vrot.lane.b32.xlu1 %v2677_v31, %s5104_s23 }
 0xee3   : > { %v6584_v36 = vpop.permute.xlu1 %2659 }
 0xee5   : > { %v2700_v1 = vpop.permute.xlu0 %2699 }
 0xee6   : > { %v2717_v20 = vmul.f32 %v2700_v1, %v2687_v35 }
 0xee7   : > { %v6588_v0 = vpop.permute.xlu1 %2663 }
 0xee9   : > { %v2704_v7 = vpop.permute.xlu0 %2703 }
 0xeea   : > { %v2719_v53 = vmul.f32 %v2704_v7, %v2689_v6 }
 0xeeb   : > { %v6592_v23 = vpop.permute.xlu1 %2667  ;;  %v5043_v45 = vpop.eup %5042 }
 0xeec   : > { %v5045_v40 = vpop.eup %5044 }
 0xeed   : > { %v2708_v17 = vpop.permute.xlu0 %2707 }
 0xeee   : > { %v2721_v1 = vmul.f32 %v2708_v17, %v2691_v48 }
 0xeef   : > { %v2702_v54 = vpop.permute.xlu1 %2701 }
 0xef0   : > { %v2718_v21 = vmul.f32 %v2702_v54, %v2688_v56 }
 0xef1   : > { %v2724_v28 = vpop.permute.xlu0 %2723 }
 0xef2   : > { %v2741_v18 = vmul.f32 %v5037_v13, %v2724_v28  ;;  %v5047_v13 = vpop.eup %5046 }
 0xef3   : > { %v2706_v41 = vpop.permute.xlu1 %2705 }
 0xef4   : > { %v2747_v42 = vmul.f32 %v2741_v18, %v2717_v20  ;;  %v2720_v28 = vmul.f32 %v2706_v41, %v2690_v12 }
 0xef5   : > { %v2728_v8 = vpop.permute.xlu0 %2727 }
 0xef6   : > { %v2743_v31 = vmul.f32 %v5039_v2, %v2728_v8  ;;  %v2753_v34 = vsel %vm2227_vm5, %v2747_v42, 0.0  ;;  %v2692_v8 = vadd.f32 0.0001, %v2686_v19 }
 0xef7   : > { %v2710_v38 = vpop.permute.xlu1 %2709 }
 0xef8   : > { %v2749_v46 = vmul.f32 %v2743_v31, %v2719_v53  ;;  %v2722_v18 = vmul.f32 %v2710_v38, %v2692_v8 }
 0xef9   : > { %v2732_v55 = vpop.permute.xlu0 %2731 }
 0xefa   : > { %v2745_v11 = vmul.f32 %v5043_v45, %v2732_v55  ;;  %v2756_v32 = vsel %vm2227_vm5, %v2749_v46, 0.0 }
 0xefb   : > { %v2726_v27 = vpop.permute.xlu1 %2725 }
 0xefc   : > { %v2742_v9 = vmul.f32 %v5041_v30, %v2726_v27  ;;  %v2751_v60 = vmul.f32 %v2745_v11, %v2721_v1  ;;  %v2676_v1 = vmul.f32 %v6584_v36, %v6493_v50 }
 0xefe   : > { %v2748_v47 = vmul.f32 %v2742_v9, %v2718_v21  ;;  %v2760_v57 = vsel %vm2227_vm5, %v2751_v60, 0.0 }
 0xeff   : > { %v2730_v29 = vpop.permute.xlu1 %2729 }
 0xf00   : > { %v2754_v15 = vsel %vm2227_vm5, %v2748_v47, 0.0  ;;  %v2744_v7 = vmul.f32 %v5045_v40, %v2730_v29 }
 0xf01   : > { %v2755_v54 = vadd.f32 %v2754_v15, %v2753_v34 }
 0xf02   : > { %v2750_v59 = vmul.f32 %v2744_v7, %v2720_v28 }
 0xf03   : > { %v2757_v35 = vadd.f32 %v2756_v32, %v2755_v54  ;;  %v2734_v26 = vpop.permute.xlu1 %2733 }
 0xf04   : > { %v2758_v2 = vsel %vm2227_vm5, %v2750_v59, 0.0  ;;  %v2746_v17 = vmul.f32 %v5047_v13, %v2734_v26 }
 0xf05   : > { %v2759_v51 = vadd.f32 %v2758_v2, %v2757_v35 }
 0xf06   : > { %v2752_v41 = vmul.f32 %v2746_v17, %v2722_v18 }
 0xf07   : > { %v3372_v20 = vpop.permute.xlu1 %3371  ;;  %v2761_v6 = vadd.f32 %v2760_v57, %v2759_v51 }
 0xf08   : > { %v2762_v56 = vsel %vm2227_vm5, %v2752_v41, 0.0  ;;  %v3383_v40 = vsub.f32 %v6946_v14, %v3372_v20 }
 0xf09   : > { %v2763_v31 = vadd.f32 %v2762_v56, %v2761_v6  ;;  %v2678_v6 = vmul.f32 %v6588_v0, %v6499_v61  ;;  %v2680_v56 = vmul.f32 %v6592_v23, %v6504_v62 }
 0xf0b   : > { %2764 = vadd.xlane.f32.xlu0 %v2763_v31  ;;  %v3374_v30 = vpop.permute.xlu1 %3373 }
 0xf0c   : > { %v3384_v53 = vsub.f32 %v6947_v33, %v3374_v30 }
 0xf0f   : > { %v3376_v55 = vpop.permute.xlu1 %3375 }
 0xf10   : > { %v3385_v28 = vsub.f32 %v6948_v10, %v3376_v55 }
 0xf13   : > { %v3388_v27 = vpop.permute.xlu1 %3387 }
 0xf14   : > { %v3399_v34 = vsub.f32 %v3383_v40, %v3388_v27 }
 0xf16   : > { %v3403_v54 = vadd.f32 0.0009, %v3399_v34 }
 0xf17   : > { %v3390_v21 = vpop.permute.xlu1 %3389 }
 0xf18   : > { %v6608_v38 = vsub.f32 %v3384_v53, %v3390_v21  ;;  %5048 = vrcp.f32 %v3403_v54 }
 0xf1a   : > { %v3404_v23 = vadd.f32 0.0009, %v6608_v38 }
 0xf1b   : > { %v3378_v42 = vpop.permute.xlu1 %3377 }
 0xf1c   : > { %v3386_v48 = vsub.f32 %v6949_v52, %v3378_v42 }
 0xf1f   : > { %v3392_v9 = vpop.permute.xlu1 %3391 }
 0xf20   : > { %v3401_v32 = vsub.f32 %v3385_v28, %v3392_v9 }
 0xf21   : > { %3920 = vrot.lane.b32.xlu0 %v6551_v22, %s5107_s28  ;;  %s5115_s28 = smov 101  }
 0xf22   : > { %v3405_v60 = vadd.f32 0.0009, %v3401_v32 }
 0xf23   : > { %v3919_v45 = vpop.permute.xlu1 %3918 }
 0xf24   : > { %v3924_v8 = vsub.f32 %v6950_v63, %v3919_v45  ;;  %5050 = vrcp.f32 %v3405_v60 }
 0xf25   : > { %3325 = vrot.lane.b32.xlu0 %v6947_v33, %s5109_s3  ;;  %v6650_v2 = vpop.eup %5048 }
 0xf27   : > { %v3394_v12 = vpop.permute.xlu1 %3393 }
 0xf28   : > { %v6615_v46 = vsub.f32 %v3386_v48, %v3394_v12 }
 0xf29   : > { %3329 = vrot.lane.b32.xlu0 %v6949_v52, %s5109_s3 }
 0xf2a   : > { %v3406_v45 = vadd.f32 0.0009, %v6615_v46 }
 0xf2b   : > { %v3927_v19 = vpop.permute.xlu1 %3926 }
 0xf2c   : > { %v3932_v59 = vsub.f32 %v3924_v8, %v3927_v19 }
 0xf2d   : > { %3896 = vrot.lane.b32.xlu0 %v6951_v37, %s5111_s22 }
 0xf2e   : > { %v3934_v35 = vadd.f32 0.0009, %v3932_v59 }
 0xf2f   : > { %v6621_v11 = vpop.permute.xlu1 %3928 }
 0xf30   : > { %5052 = vrcp.f32 %v3934_v35 }
 0xf31   : > { %4282 = vrot.lane.b32.xlu0 %v6569_v43, %s5110_s5  ;;  %v6655_v57 = vpop.eup %5050 }
 0xf33   : > { %v3324_v47 = vpop.permute.xlu1 %3323 }
 0xf34   : > { %v6633_v15 = vmul.f32 %v3324_v47, %v6946_v14 }
 0xf35   : > { %4250 = vrot.lane.b32.xlu0 %v6456_v5, %s5112_s1 }
 0xf37   : > { %v3328_v29 = vpop.permute.xlu1 %3327 }
 0xf38   : > { %v6639_v50 = vmul.f32 %v6948_v10, %v3328_v29 }
 0xf39   : > { %2782 = vrot.lane.b32.xlu0 %v2676_v1, %s5104_s23 }
 0xf3b   : > { %v4273_v7 = vpop.permute.xlu1 %4272 }
 0xf3c   : > { %v4278_v17 = vsub.f32 %v6454_v44, %v4273_v7 }
 0xf3d   : > { %3343 = vrot.lane.b32.xlu0 %v6633_v15, %s5113_s4  ;;  %v6659_v20 = vpop.eup %5052 }
 0xf3f   : > { %v4281_v36 = vpop.permute.xlu1 %4280 }
 0xf40   : > { %v4286_v51 = vsub.f32 %v4278_v17, %v4281_v36 }
 0xf41   : > { %3347 = vrot.lane.b32.xlu0 %v6639_v50, %s5113_s4 }
 0xf42   : > { %v4288_v41 = vadd.f32 0.0009, %v4286_v51 }
 0xf43   : > { %v6643_v13 = vpop.permute.xlu1 %4274 }
 0xf44   : > { %5054 = vrcp.f32 %v4288_v41  ;;  %v4279_v29 = vsub.f32 %v6456_v5, %v6643_v13  ;;  %v2679_v13 = vmul.f32 %v6580_v58, %v6488_v16 }
 0xf45   : > { %5056 = vrcp.f32 %v3404_v23 }
 0xf46   : > { %5058 = vrcp.f32 %v3406_v45 }
 0xf47   : > { %v3895_v26 = vpop.permute.xlu1 %3894 }
 0xf48   : > { %v6646_v18 = vmul.f32 %v3895_v26, %v6950_v63 }
 0xf4a   : > { %3904 = vrot.lane.b32.xlu0 %v6646_v18, %s5114_s30 }
 0xf4b   : > { %v4249_v31 = vpop.permute.xlu1 %4248 }
 0xf4c   : > { %v6670_v30 = vmul.f32 %v4249_v31, %v6454_v44 }
 0xf4e   : > { %3439 = vrot.lane.b32.xlu0 %v6650_v2, %s5106_s27 }
 0xf4f   : > { %v2781_v58 = vpop.permute.xlu1 %2780 }
 0xf51   : > { %v6674_v55 = vpop.eup %5054 }
 0xf52   : > { %3443 = vrot.lane.b32.xlu0 %v6655_v57, %s5106_s27  ;;  %v5057_v28 = vpop.eup %5056 }
 0xf53   : > { %v6716_v8 = vpop.eup %5058 }
 0xf56   : > { %3952 = vrot.lane.b32.xlu0 %v6659_v20, %s5108_s0 }
 0xf5a   : > { %2786 = vrot.lane.b32.xlu0 %v2678_v6, %s5104_s23 }
 0xf5e   : > { %2790 = vrot.lane.b32.xlu0 %v2680_v56, %s5104_s23 }
 0xf62   : > { %4258 = vrot.lane.b32.xlu0 %v6670_v30, %s5106_s27 }
 0xf66   : > { %4306 = vrot.lane.b32.xlu0 %v6674_v55, %s5110_s5 }
 0xf6a   : > { %3411 = vrot.lane.b32.xlu0 %v6515_v24, %s5109_s3 }
 0xf6e   : > { %3413 = vrot.lane.b32.xlu0 %v6520_v25, %s5109_s3 }
 0xf72   : > { %3415 = vrot.lane.b32.xlu0 %v6525_v3, %s5109_s3 }
 0xf76   : > { %3417 = vrot.lane.b32.xlu0 %v6534_v4, %s5109_s3 }
 0xf7a   : > { %3938 = vrot.lane.b32.xlu0 %v6541_v49, %s5111_s22 }
 0xf7e   : > { %3940 = vrot.lane.b32.xlu0 %v6551_v22, %s5111_s22 }
 0xf82   : > { %4292 = vrot.lane.b32.xlu0 %v6561_v39, %s5112_s1 }
 0xf86   : > { %4294 = vrot.lane.b32.xlu0 %v6569_v43, %s5112_s1 }
 0xf94   : > { %v2765_v61 = vpop.xlane.xlu0 %2764 }
 0xf95   : > { %v2766_v62 = vrot.slane %v2765_v61, 4 }
 0xf97   : > { %v2767_v0 = vadd.f32 %v2766_v62, %v2765_v61  ;;  %v2785_v61 = vpop.permute.xlu1 %2784 }
 0xf98   : > { %v3921_v27 = vpop.permute.xlu0 %3920 }
 0xf99   : > { %v2768_v53 = vrot.slane %v2767_v0, 2  ;;  %v3925_v21 = vsub.f32 %v6951_v37, %v3921_v27 }
 0xf9b   : > { %v2769_v42 = vadd.f32 %v2768_v53, %v2767_v0  ;;  %v3933_v48 = vsub.f32 %v3925_v21, %v6621_v11 }
 0xf9c   : > { %v3326_v9 = vpop.permute.xlu0 %3325 }
 0xf9d   : > { %v6699_v12 = vmul.f32 %v3326_v9, %v6947_v33  ;;  %v2770_v19 = vrot.slane %v2769_v42, 1  ;;  %v3935_v40 = vadd.f32 0.0009, %v3933_v48 }
 0xf9f   : > { %3345 = vrot.lane.b32.xlu1 %v6699_v12, %s5113_s4  ;;  %v2771_v47 = vadd.f32 %v2770_v19, %v2769_v42  ;;  %5060 = vrcp.f32 %v3935_v40  ;;  %v2798_v40 = vsel %vm2227_vm5, %v2781_v58, 0.0 }
 0xfa0   : > { %v3330_v38 = vpop.permute.xlu0 %3329 }
 0xfa1   : > { %v6704_v1 = vmul.f32 %v6949_v52, %v3330_v38  ;;  %4891 = vpush %v2771_v47 }
 0xfa3   : > { %3349 = vrot.lane.b32.xlu1 %v6704_v1, %s5113_s4 }
 0xfa4   : > { %v3897_v46 = vpop.permute.xlu0 %3896 }
 0xfa5   : > { %v6709_v11 = vmul.f32 %v3897_v46, %v6951_v37 }
 0xfa7   : > { %3906 = vrot.lane.b32.xlu1 %v6709_v11, %s5114_s30 }
 0xfa8   : > { %v4283_v34 = vpop.permute.xlu0 %4282 }
 0xfa9   : > { %v4287_v7 = vsub.f32 %v4279_v29, %v4283_v34  ;;  %v2801_v34 = vsel %vm2227_vm5, %v2785_v61, 0.0 }
 0xfab   : > { %3441 = vrot.lane.b32.xlu1 %v5057_v28, %s5106_s27  ;;  %v4289_v32 = vadd.f32 0.0009, %v4287_v7 }
 0xfac   : > { %v4251_v54 = vpop.permute.xlu0 %4250  ;;  %v6720_v60 = vpop.eup %5060 }
 0xfad   : > { %5062 = vrcp.f32 %v4289_v32  ;;  %v6729_v17 = vmul.f32 %v4251_v54, %v6456_v5 }
 0xfaf   : > { %3445 = vrot.lane.b32.xlu1 %v6716_v8, %s5106_s27 }
 0xfb0   : > { %v2783_v36 = vpop.permute.xlu0 %2782 }
 0xfb1   : > { %v2799_v47 = vsel %vm2227_vm5, %v2783_v36, 0.0 }
 0xfb2   : > { %v2800_v46 = vadd.f32 %v2799_v47, %v2798_v40 }
 0xfb3   : > { %3954 = vrot.lane.b32.xlu1 %v6720_v60, %s5108_s0  ;;  %s5116_s0 = smov 110  }
 0xfb4   : > { %v3344_v59 = vpop.permute.xlu0 %3343  ;;  %v2802_v7 = vadd.f32 %v2801_v34, %v2800_v46 }
 0xfb5   : > { %v3355_v35 = vsub.f32 %v6946_v14, %v3344_v59 }
 0xfb7   : > { %v3359_v26 = vmul.f32 2.0, %v3355_v35  ;;  %2788 = vrot.lane.b32.xlu1 %v2679_v13, %s5104_s23  ;;  %s5117_s23 = smov 113  }
 0xfb8   : > { %v3348_v41 = vpop.permute.xlu0 %3347 }
 0xfb9   : > { %v3363_v51 = vadd.f32 0.0009, %v3359_v26  ;;  %v3357_v6 = vsub.f32 %v6948_v10, %v3348_v41 }
 0xfba   : > { %v5063_v56 = vpop.eup %5062 }
 0xfbb   : > { %4260 = vrot.lane.b32.xlu1 %v6729_v17, %s5106_s27  ;;  %3467 = vrot.lane.b32.xlu0 %v3363_v51, %s5115_s28  ;;  %v3361_v16 = vmul.f32 2.0, %v3357_v6  ;;  %s5118_s27 = smov 118  }
 0xfbc   : > { %v3905_v31 = vpop.permute.xlu0 %3904 }
 0xfbd   : > { %v3365_v14 = vadd.f32 0.0009, %v3361_v16  ;;  %v3910_v42 = vsub.f32 %v6950_v63, %v3905_v31 }
 0xfbf   : > { %4308 = vrot.lane.b32.xlu1 %v5063_v56, %s5110_s5  ;;  %3483 = vrot.lane.b32.xlu0 %v6650_v2, %s5116_s0  ;;  %v3912_v48 = vmul.f32 2.0, %v3910_v42  ;;  %s5119_s5 = smov 122  }
 0xfc0   : > { %v3440_v10 = vpop.permute.xlu0 %3439 }
 0xfc3   : > { %3485 = vrot.lane.b32.xlu0 %v5057_v28, %s5116_s0 }
 0xfc4   : > { %v3444_v0 = vpop.permute.xlu0 %3443 }
 0xfc5   : > { %v3453_v36 = vmul.f32 %v3444_v0, %v3365_v14 }
 0xfc7   : > { %3471 = vrot.lane.b32.xlu0 %v3365_v14, %s5115_s28 }
 0xfc8   : > { %v3953_v2 = vpop.permute.xlu0 %3952 }
 0xfcb   : > { %3487 = vrot.lane.b32.xlu0 %v6655_v57, %s5116_s0  ;;  %v3451_v57 = vmul.f32 %v3440_v10, %v3363_v51 }
 0xfcc   : > { %v2787_v19 = vpop.permute.xlu0 %2786 }
 0xfcd   : > { %v2803_v28 = vsel %vm2227_vm5, %v2787_v19, 0.0 }
 0xfce   : > { %v2804_v54 = vadd.f32 %v2803_v28, %v2802_v7 }
 0xfd0   : > { %v2791_v63 = vpop.permute.xlu0 %2790 }
 0xfd1   : > { %v2807_v26 = vsel %vm2227_vm5, %v2791_v63, 0.0 }
 0xfd4   : > { %v4259_v13 = vpop.permute.xlu0 %4258 }
 0xfd5   : > { %v4264_v16 = vsub.f32 %v6454_v44, %v4259_v13  ;;  %v3457_v13 = vmul.f32 2.0, %v6639_v50 }
 0xfd8   : > { %v4307_v0 = vpop.permute.xlu0 %4306 }
0x1011   : > { %v3346_v62 = vpop.permute.xlu1 %3345 }
0x1012   : > { %v3356_v61 = vsub.f32 %v6947_v33, %v3346_v62 }
0x1015   : > { %v3350_v23 = vpop.permute.xlu1 %3349 }
0x1016   : > { %v3358_v27 = vsub.f32 %v6949_v52, %v3350_v23  ;;  %v3914_v52 = vadd.f32 0.0009, %v3912_v48 }
0x1018   : > { %v3362_v53 = vmul.f32 2.0, %v3358_v27  ;;  %v3958_v6 = vmul.f32 %v3953_v2, %v3914_v52  ;;  %v3360_v27 = vmul.f32 2.0, %v3356_v61 }
0x1019   : > { %v3907_v21 = vpop.permute.xlu1 %3906 }
0x101a   : > { %v3366_v9 = vadd.f32 0.0009, %v3362_v53  ;;  %v3364_v44 = vadd.f32 0.0009, %v3360_v27 }
0x101c   : > { %3473 = vrot.lane.b32.xlu0 %v3366_v9, %s5115_s28 }
0x101d   : > { %v3442_v45 = vpop.permute.xlu1 %3441 }
0x101e   : > { %v3452_v53 = vmul.f32 %v3442_v45, %v3364_v44 }
0x1020   : > { %3526 = vrot.lane.b32.xlu0 %v3451_v57, %s5115_s28 }
0x1021   : > { %v3446_v38 = vpop.permute.xlu1 %3445 }
0x1022   : > { %v3454_v62 = vmul.f32 %v3446_v38, %v3366_v9 }
0x1024   : > { %3966 = vrot.lane.b32.xlu0 %v3914_v52, %s5117_s23 }
0x1025   : > { %v3955_v29 = vpop.permute.xlu1 %3954 }
0x1028   : > { %3974 = vrot.lane.b32.xlu0 %v6659_v20, %s5118_s27  ;;  %v4266_v20 = vmul.f32 2.0, %v4264_v16 }
0x1029   : > { %v2789_v32 = vpop.permute.xlu1 %2788 }
0x102a   : > { %v2805_v59 = vsel %vm2227_vm5, %v2789_v32, 0.0  ;;  %v4268_v31 = vadd.f32 0.0009, %v4266_v20  ;;  %vm4340_vm5 = vcmask 16384  }
0x102b   : > { %v2806_v35 = vadd.f32 %v2805_v59, %v2804_v54 }
0x102c   : > { %3530 = vrot.lane.b32.xlu0 %v3453_v36, %s5115_s28  ;;  %v4312_v23 = vmul.f32 %v4307_v0, %v4268_v31 }
0x102d   : > { %v2808_v51 = vadd.f32 %v2807_v26, %v2806_v35  ;;  %v4261_v41 = vpop.permute.xlu1 %4260 }
0x102e   : > { %v4265_v58 = vsub.f32 %v6456_v5, %v4261_v41  ;;  %v3911_v5 = vsub.f32 %v6951_v37, %v3907_v21 }
0x102f   : > { %2809 = vadd.xlane.f32.xlu1 %v2808_v51 }
0x1030   : > { %4001 = vrot.lane.b32.xlu0 %v3958_v6, %s5117_s23  ;;  %v4267_v14 = vmul.f32 2.0, %v4265_v58 }
0x1031   : > { %v4309_v37 = vpop.permute.xlu1 %4308 }
0x1032   : > { %v4269_v10 = vadd.f32 0.0009, %v4267_v14  ;;  %v3458_v14 = vmul.f32 2.0, %v6704_v1 }
0x1034   : > { %4330 = vrot.lane.b32.xlu0 %v5063_v56, %s5119_s5  ;;  %v3913_v56 = vmul.f32 2.0, %v3911_v5  ;;  %v4313_v21 = vmul.f32 %v4309_v37, %v4269_v10 }
0x1036   : > { %v3915_v33 = vadd.f32 0.0009, %v3913_v56  ;;  %v3462_v56 = vadd.f32 0.0001, %v3458_v14 }
0x1038   : > { %4322 = vrot.lane.b32.xlu0 %v4269_v10, %s5109_s3  ;;  %v3959_v2 = vmul.f32 %v3955_v29, %v3915_v33 }
0x103c   : > { %4355 = vrot.lane.b32.xlu0 %v4312_v23, %s5109_s3 }
0x1040   : > { %3469 = vrot.lane.b32.xlu1 %v3364_v44, %s5115_s28 }
0x1044   : > { %3489 = vrot.lane.b32.xlu1 %v6716_v8, %s5116_s0  ;;  %v3412_v8 = vpop.permute.xlu0 %3411 }
0x1045   : > { %v3423_v40 = vadd.f32 %v3412_v8, %v6515_v24 }
0x1047   : > { %v3427_v63 = vadd.f32 0.0001, %v3423_v40 }
0x1048   : > { %3528 = vrot.lane.b32.xlu1 %v3452_v53, %s5115_s28  ;;  %v3414_v42 = vpop.permute.xlu0 %3413 }
0x1049   : > { %v3424_v29 = vadd.f32 %v3414_v42, %v6520_v25  ;;  %5064 = vrcp.f32 %v3427_v63  ;;  %v3456_v25 = vmul.f32 2.0, %v6699_v12  ;;  %v3960_v63 = vmul.f32 2.0, %v6646_v18 }
0x104b   : > { %v3428_v7 = vadd.f32 0.0001, %v3424_v29  ;;  %v3460_v61 = vadd.f32 0.0001, %v3456_v25 }
0x104c   : > { %3968 = vrot.lane.b32.xlu1 %v3915_v33, %s5117_s23  ;;  %v3416_v45 = vpop.permute.xlu0 %3415 }
0x104d   : > { %v3425_v46 = vadd.f32 %v3416_v45, %v6525_v3  ;;  %v3455_v3 = vmul.f32 2.0, %v6633_v15 }
0x104f   : > { %v3429_v28 = vadd.f32 0.0001, %v3425_v46 }
0x1050   : > { %3976 = vrot.lane.b32.xlu1 %v6720_v60, %s5118_s27  ;;  %v3418_v48 = vpop.permute.xlu0 %3417 }
0x1051   : > { %v3426_v54 = vadd.f32 %v3418_v48, %v6534_v4  ;;  %5066 = vrcp.f32 %v3429_v28  ;;  %v3459_v4 = vadd.f32 0.0001, %v3455_v3  ;;  %v3961_v28 = vmul.f32 2.0, %v6709_v11 }
0x1052   : > { %5068 = vrcp.f32 %v3428_v7 }
0x1053   : > { %v3430_v36 = vadd.f32 0.0001, %v3426_v54  ;;  %v3963_v25 = vadd.f32 0.0001, %v3961_v28 }
0x1054   : > { %4328 = vrot.lane.b32.xlu1 %v6674_v55, %s5119_s5  ;;  %v3939_v57 = vpop.permute.xlu0 %3938 }
0x1055   : > { %5070 = vrcp.f32 %v3430_v36  ;;  %v3944_v24 = vadd.f32 %v3939_v57, %v6541_v49  ;;  %v3461_v49 = vadd.f32 0.0001, %v3457_v13 }
0x1056   : > { %v5065_v35 = vpop.eup %5064 }
0x1057   : > { %v3946_v26 = vadd.f32 0.0001, %v3944_v24  ;;  %v3962_v24 = vadd.f32 0.0001, %v3960_v63 }
0x1058   : > { %3532 = vrot.lane.b32.xlu1 %v3454_v62, %s5115_s28  ;;  %v3941_v60 = vpop.permute.xlu0 %3940 }
0x1059   : > { %v3945_v51 = vadd.f32 %v3941_v60, %v6551_v22  ;;  %5072 = vrcp.f32 %v3946_v26 }
0x105b   : > { %v3947_v15 = vadd.f32 0.0001, %v3945_v51 }
0x105c   : > { %4003 = vrot.lane.b32.xlu1 %v3959_v2, %s5117_s23  ;;  %v6775_v19 = vpop.permute.xlu0 %4292 }
0x105d   : > { %5074 = vrcp.f32 %v3947_v15  ;;  %v4298_v7 = vadd.f32 %v6775_v19, %v6561_v39 }
0x105e   : > { %v5067_v20 = vpop.eup %5066 }
0x105f   : > { %v5069_v12 = vpop.eup %5068  ;;  %v4300_v3 = vadd.f32 0.0001, %v4298_v7 }
0x1060   : > { %4320 = vrot.lane.b32.xlu1 %v4268_v31, %s5109_s3  ;;  %v6777_v55 = vpop.permute.xlu0 %4294 }
0x1062   : > { %v5071_v2 = vpop.eup %5070 }
0x1064   : > { %4357 = vrot.lane.b32.xlu1 %v4313_v21, %s5109_s3  ;;  %v3468_v9 = vpop.permute.xlu0 %3467  ;;  %s4888_s3 = spop %4887 }
0x1065   : > { %v3479_v31 = vmul.f32 %v3468_v9, %v3459_v4  ;;  %s4890_s22 = spop %4889 }
0x1066   : > { %v5073_v54 = vpop.eup %5072  ;;  %s4892_s1 = spop %4891 }
0x1068   : > { %v3484_v47 = vpop.permute.xlu0 %3483 }
0x1069   : > { %v3495_v41 = vmul.f32 %v5065_v35, %v3484_v47 }
0x106a   : > { %v5075_v18 = vpop.eup %5074 }
0x106b   : > { %v3499_v0 = vmul.f32 %v3495_v41, %v3479_v31  ;;  %v4315_v31 = vmul.f32 2.0, %v6729_v17 }
0x106c   : > { %v3486_v38 = vpop.permute.xlu0 %3485 }
0x106d   : > { %v3496_v22 = vmul.f32 %v5069_v12, %v3486_v38  ;;  %v3504_v37 = vsel %vm3503_vm0, %v3499_v0, 0.0  ;;  %v4299_v38 = vadd.f32 %v6777_v55, %v6569_v43  ;;  %v4314_v12 = vmul.f32 2.0, %v6670_v30 }
0x106e   : > { %v4317_v0 = vadd.f32 0.0001, %v4315_v31 }
0x1070   : > { %v3472_v52 = vpop.permute.xlu0 %3471 }
0x1071   : > { %v3481_v27 = vmul.f32 %v3472_v52, %v3461_v49 }
0x1074   : > { %v3488_v34 = vpop.permute.xlu0 %3487 }
0x1075   : > { %v3497_v50 = vmul.f32 %v5067_v20, %v3488_v34 }
0x1077   : > { %v3501_v33 = vmul.f32 %v3497_v50, %v3481_v27 }
0x1079   : > { %v3507_v60 = vsel %vm3503_vm0, %v3501_v33, 0.0 }
0x108e   : > { %v3474_v32 = vpop.permute.xlu0 %3473 }
0x108f   : > { %v3482_v21 = vmul.f32 %v3474_v32, %v3462_v56  ;;  %v4301_v32 = vadd.f32 0.0001, %v4299_v38 }
0x1091   : > { %5076 = vrcp.f32 %v4301_v32 }
0x1092   : > { %v6783_v59 = vpop.permute.xlu0 %3526  ;;  %5078 = vrcp.f32 %v4300_v3 }
0x1093   : > { %v3538_v39 = vsel %vm3503_vm0, %v6783_v59, 0.0 }
0x1096   : > { %v3967_v6 = vpop.permute.xlu0 %3966 }
0x1097   : > { %v3972_v13 = vmul.f32 %v3967_v6, %v3962_v24 }
0x109a   : > { %v3975_v53 = vpop.permute.xlu0 %3974 }
0x109b   : > { %v3980_v43 = vmul.f32 %v5073_v54, %v3975_v53  ;;  %v4316_v53 = vadd.f32 0.0001, %v4314_v12 }
0x109d   : > { %v3982_v26 = vmul.f32 %v3980_v43, %v3972_v13 }
0x109e   : > { %v3531_v40 = vpop.permute.xlu0 %3530 }
0x109f   : > { %v3985_v6 = vsel %vm3984_vm2, %v3982_v26, 0.0  ;;  %v3541_v49 = vsel %vm3503_vm0, %v3531_v40, 0.0 }
0x10a2   : > { %v4002_v55 = vpop.permute.xlu0 %4001 }
0x10a3   : > { %v4007_v27 = vsel %vm3984_vm2, %v4002_v55, 0.0 }
0x10a6   : > { %v4331_v41 = vpop.permute.xlu0 %4330 }
0x10b8   : > { %v2810_v16 = vpop.xlane.xlu1 %2809 }
0x10b9   : > { %v2811_v58 = vrot.slane %v2810_v16, 4 }
0x10bb   : > { %v2812_v10 = vadd.f32 %v2811_v58, %v2810_v16 }
0x10bc   : > { %v3470_v23 = vpop.permute.xlu1 %3469 }
0x10bd   : > { %v2813_v44 = vrot.slane %v2812_v10, 2  ;;  %v3480_v5 = vmul.f32 %v3470_v23, %v3460_v61 }
0x10bf   : > { %v3500_v1 = vmul.f32 %v3496_v22, %v3480_v5  ;;  %v2814_v62 = vadd.f32 %v2813_v44, %v2812_v10  ;;  %v4323_v10 = vpop.permute.xlu0 %4322  ;;  %v5077_v22 = vpop.eup %5076 }
0x10c0   : > { %v3490_v8 = vpop.permute.xlu1 %3489  ;;  %v4327_v44 = vmul.f32 %v4323_v10, %v4317_v0  ;;  %v4335_v56 = vmul.f32 %v5077_v22, %v4331_v41  ;;  %v5079_v33 = vpop.eup %5078 }
0x10c1   : > { %v3505_v42 = vsel %vm3503_vm0, %v3500_v1, 0.0  ;;  %v3498_v45 = vmul.f32 %v5071_v2, %v3490_v8  ;;  %v2815_v48 = vrot.slane %v2814_v62, 1 }
0x10c2   : > { %v3506_v57 = vadd.f32 %v3505_v42, %v3504_v37 }
0x10c3   : > { %v3502_v9 = vmul.f32 %v3498_v45, %v3482_v21  ;;  %v2816_v47 = vadd.f32 %v2815_v48, %v2814_v62  ;;  %v4337_v62 = vmul.f32 %v4335_v56, %v4327_v44  ;;  %v4356_v30 = vpop.permute.xlu0 %4355  ;;  %v1802_v44 = vstv %s4888_s3  ;;  %s685_s3 = scalar_lea.vmem %s6854_s21, %s6955_s25 }
0x10c4   : > { %v3529_v52 = vpop.permute.xlu1 %3528  ;;  %v3508_v46 = vadd.f32 %v3507_v60, %v3506_v57  ;;  %v4361_v42 = vsel %vm4338_vm4, %v4356_v30, 0.0  ;;  %v1883_v56 = vstv %s4890_s22 }
0x10c5   : > { %v3510_v29 = vsel %vm3509_vm1, %v3502_v9, 0.0  ;;  %4893 = vpush %v2816_v47  ;;  %v3539_v51 = vsel %vm3503_vm0, %v3529_v52, 0.0  ;;  %v4341_v48 = vsel %vm4340_vm5, %v4337_v62, 0.0 }
0x10c6   : > { %v3511_v34 = vadd.f32 %v3510_v29, %v3508_v46  ;;  %v3540_v16 = vadd.f32 %v3539_v51, %v3538_v39 }
0x10c8   : > { %3512 = vadd.xlane.f32.xlu0 %v3511_v34  ;;  %v3969_v36 = vpop.permute.xlu1 %3968  ;;  %v3542_v61 = vadd.f32 %v3541_v49, %v3540_v16 }
0x10c9   : > { %v3973_v11 = vmul.f32 %v3969_v36, %v3963_v25 }
0x10cc   : > { %v3977_v35 = vpop.permute.xlu1 %3976 }
0x10cd   : > { %v3981_v4 = vmul.f32 %v5075_v18, %v3977_v35 }
0x10cf   : > { %v3983_v19 = vmul.f32 %v3981_v4, %v3973_v11 }
0x10d0   : > { %v4329_v58 = vpop.permute.xlu1 %4328 }
0x10d1   : > { %v3987_v20 = vsel %vm3986_vm3, %v3983_v19, 0.0  ;;  %v4334_v2 = vmul.f32 %v5079_v33, %v4329_v58 }
0x10d2   : > { %v3988_v14 = vadd.f32 %v3987_v20, %v3985_v6 }
0x10d4   : > { %3989 = vadd.xlane.f32.xlu0 %v3988_v14  ;;  %v3533_v15 = vpop.permute.xlu1 %3532 }
0x10d5   : > { %v3543_v50 = vsel %vm3509_vm1, %v3533_v15, 0.0 }
0x10d6   : > { %v3544_v59 = vadd.f32 %v3543_v50, %v3542_v61 }
0x10d8   : > { %3545 = vadd.xlane.f32.xlu1 %v3544_v59  ;;  %v4004_v23 = vpop.permute.xlu1 %4003 }
0x10d9   : > { %v4008_v17 = vsel %vm3986_vm3, %v4004_v23, 0.0  ;;  %v2773_v23 = vstv %s4892_s1 }
0x10da   : > { %v4009_v5 = vadd.f32 %v4008_v17, %v4007_v27 }
0x10dc   : > { %4010 = vadd.xlane.f32.xlu0 %v4009_v5  ;;  %v4321_v1 = vpop.permute.xlu1 %4320 }
0x10dd   : > { %v4326_v37 = vmul.f32 %v4321_v1, %v4316_v53  ;;  %v4375_v53 = vsel %vm4374_vm6, %v1802_v44, %v2773_v23 }
0x10df   : > { %v4336_v8 = vmul.f32 %v4334_v2, %v4326_v37 }
0x10e0   : > { %v4358_v21 = vpop.permute.xlu1 %4357 }
0x10e1   : > { %v4339_v45 = vsel %vm4338_vm4, %v4336_v8, 0.0  ;;  %v4362_v57 = vsel %vm4340_vm5, %v4358_v21, 0.0 }
0x10e2   : > { %v4342_v60 = vadd.f32 %v4341_v48, %v4339_v45  ;;  %v4363_v9 = vadd.f32 %v4362_v57, %v4361_v42 }
0x10e4   : > { %4343 = vadd.xlane.f32.xlu1 %v4342_v60  ;;  %4364 = vadd.xlane.f32.xlu0 %v4363_v9 }
0x10f6   : > { %s4894_s4 = spop %4893 }
0x10f7   : > { %v2818_v22 = vstv %s4894_s4 }
0x10f8   : > { %v4381_v1 = vsel %vm4374_vm6, %v1883_v56, %v2818_v22 }
0x1151   : > { %v3513_v47 = vpop.xlane.xlu0 %3512 }
0x1152   : > { %v3514_v38 = vrot.slane %v3513_v47, 4 }
0x1154   : > { %v3515_v40 = vadd.f32 %v3514_v38, %v3513_v47 }
0x1156   : > { %v3516_v52 = vrot.slane %v3515_v40, 2 }
0x1158   : > { %v3517_v46 = vadd.f32 %v3516_v52, %v3515_v40 }
0x115a   : > { %v3518_v63 = vrot.slane %v3517_v46, 1 }
0x115c   : > { %v3519_v29 = vadd.f32 %v3518_v63, %v3517_v46 }
0x115d   : > { %v3990_v34 = vpop.xlane.xlu0 %3989 }
0x115e   : > { %v3991_v28 = vrot.slane %v3990_v34, 4  ;;  %4895 = vpush %v3519_v29 }
0x1160   : > { %v3992_v7 = vadd.f32 %v3991_v28, %v3990_v34 }
0x1161   : > { %v3546_v54 = vpop.xlane.xlu1 %3545 }
0x1162   : > { %v3993_v32 = vrot.slane %v3992_v7, 2  ;;  %v3547_v36 = vrot.slane %v3546_v54, 4 }
0x1164   : > { %v3548_v24 = vadd.f32 %v3547_v36, %v3546_v54  ;;  %v3994_v55 = vadd.f32 %v3993_v32, %v3992_v7 }
0x1165   : > { %v4011_v43 = vpop.xlane.xlu0 %4010 }
0x1166   : > { %v3549_v3 = vrot.slane %v3548_v24, 2  ;;  %v4012_v13 = vrot.slane %v4011_v43, 4  ;;  %v3995_v35 = vrot.slane %v3994_v55, 1 }
0x1168   : > { %v4013_v25 = vadd.f32 %v4012_v13, %v4011_v43  ;;  %v3550_v18 = vadd.f32 %v3549_v3, %v3548_v24  ;;  %v3996_v41 = vadd.f32 %v3995_v35, %v3994_v55 }
0x116a   : > { %v4014_v26 = vrot.slane %v4013_v25, 2  ;;  %v3551_v51 = vrot.slane %v3550_v18, 1 }
0x116c   : > { %v3552_v11 = vadd.f32 %v3551_v51, %v3550_v18  ;;  %v4015_v4 = vadd.f32 %v4014_v26, %v4013_v25 }
0x116d   : > { %v4365_v39 = vpop.xlane.xlu0 %4364  ;;  %v4344_v19 = vpop.xlane.xlu1 %4343 }
0x116e   : > { %v4366_v16 = vrot.slane %v4365_v39, 4  ;;  %v4345_v58 = vrot.slane %v4344_v19, 4  ;;  %4897 = vpush %v3552_v11  ;;  %v4016_v6 = vrot.slane %v4015_v4, 1 }
0x116f   : > { %4899 = vpush %v3996_v41 }
0x1170   : > { %v4367_v20 = vadd.f32 %v4366_v16, %v4365_v39  ;;  %v4346_v14 = vadd.f32 %v4345_v58, %v4344_v19  ;;  %v4017_v31 = vadd.f32 %v4016_v6, %v4015_v4 }
0x1172   : > { %v4368_v49 = vrot.slane %v4367_v20, 2  ;;  %v4347_v61 = vrot.slane %v4346_v14, 2  ;;  %4901 = vpush %v4017_v31 }
0x1174   : > { %v4369_v15 = vadd.f32 %v4368_v49, %v4367_v20  ;;  %v4348_v50 = vadd.f32 %v4347_v61, %v4346_v14 }
0x1176   : > { %v4349_v10 = vrot.slane %v4348_v50, 1  ;;  %v4370_v59 = vrot.slane %v4369_v15, 1 }
0x1178   : > { %v4350_v12 = vadd.f32 %v4349_v10, %v4348_v50  ;;  %v4371_v0 = vadd.f32 %v4370_v59, %v4369_v15 }
0x117a   : > { %4903 = vpush %v4350_v12 }
0x117b   : > { %4905 = vpush %v4371_v0 }
0x118f   : > { %s4896_s30 = spop %4895 }
0x1190   : > { %v3521_v27 = vstv %s4896_s30 }
0x1191   : > { %v4376_v62 = vsel %vm4137_vm7, %v4375_v53, %v3521_v27 }
0x119f   : > { %s4898_s28 = spop %4897 }
0x11a0   : > { %s4900_s0 = spop %4899  ;;  %v3554_v17 = vstv %s4898_s28 }
0x11a1   : > { %v3998_v5 = vstv %s4900_s0  ;;  %v4382_v2 = vsel %vm4137_vm7, %v4381_v1, %v3554_v17 }
0x11a2   : > { %v4377_v37 = vsel %vm4338_vm4, %v4376_v62, %v3998_v5 }
0x11a3   : > { %s4902_s23 = spop %4901 }
0x11a4   : > { %v4019_v33 = vstv %s4902_s23 }
0x11a5   : > { %v4383_v8 = vsel %vm4338_vm4, %v4382_v2, %v4019_v33 }
0x11ab   : > { %s4904_s7 = spop %4903 }
0x11ac   : > { %v4352_v30 = vstv %s4904_s7  ;;  %s4906_s30 = spop %4905 }
0x11ad   : > { %v4378_v21 = vsel %vm3780_vm13, %v4377_v37, %v4352_v30  ;;  %v4373_v42 = vstv %s4906_s30 }
0x11ae   : > { %4380 = vst.msk [vmem:[%s682_s6] sm:$0x1] %vm4379_vm8, %v4378_v21  ;;  %v4384_v45 = vsel %vm3780_vm13, %v4383_v8, %v4373_v42 }
0x11af   : > { %4385 = vst.msk [vmem:[%s685_s3] sm:$0x1] %vm4379_vm8, %v4384_v45 }
0x11b0 PF: > { %s32_s2 = sadd.s32 1, %s5086_s2  }
0x11b1   : > { %p29_p5 = scmp.ge.s32.totalorder %s32_s2, 4  }
0x11b3   :  { %31 = sbr.rel (!%p29_p5) target bundleno = 9 (0x9), region = 145 }

</bundles_post_ra>
